<compile_context>
chip_gen: v7x
topology: tpu7x:2x2x1
jax: 0.10.0
libtpu: 0.0.40
codegen_flags: <defaults>
</compile_context>

<pallas_src>
import jax
import jax.numpy as jnp
from jax.experimental import pallas as pl
from jax.experimental.pallas import tpu as pltpu


# -----------------------------------------------------------------------------
# Fused kernel factory:  ConvLSTM stack + MaxPool2d(5,2,2) + Flatten + Linear
# -----------------------------------------------------------------------------
def _make_fused_kernel(num_layers, T, L, K):
    pad = K // 2
    NEG = -1e30  # "-inf" stand-in for max-pool padding (h is bounded by tanh*sigmoid)

    def kernel(x_ref, *refs):
        # refs = [wx_0, wh_0, b_0, ..., wx_{nl-1}, wh_{nl-1}, b_{nl-1}, fc_wt, fc_b, out]
        fc_wt_ref, fc_b_ref, out_ref = refs[-3:]
        lrefs = refs[:-3]
        N = T * L

        # ---- loop-invariant lane masks (hoisted out of every time loop) ----
        lane_step = jax.lax.broadcasted_iota(jnp.int32, (1, L), 1)
        lane_full = jax.lax.broadcasted_iota(jnp.int32, (1, N), 1)
        if L & (L - 1) == 0:
            pos_full = jnp.bitwise_and(lane_full, L - 1)  # lane index within each L-lane time block
        else:
            pos_full = jax.lax.rem(lane_full, L)

        def shift_masks(pos):
            ms = []
            for k in range(K):
                s = k - pad
                if s == 0:
                    ms.append(None)
                elif s > 0:
                    ms.append(pos < (L - s))
                else:
                    ms.append(pos >= (-s))
            return ms

        step_masks = shift_masks(lane_step)   # per-timestep (width L) recurrent path
        full_masks = shift_masks(pos_full)    # whole-sequence (width T*L) input path

        def tap_stack(a, masks):
            # a: (C, n) -> (K*C, n); tap k holds a shifted by (k - pad) lanes with
            # zero "same" padding.  Shifts never leak across 128-lane time blocks
            # thanks to the within-block masks.  Shift itself rides the XLU.
            n = a.shape[1]
            parts = []
            for k in range(K):
                s = k - pad
                if s == 0:
                    parts.append(a)
                else:
                    rolled = pltpu.roll(a, (-s) % n, axis=1)  # rolled[:, l] = a[:, (l+s) % n]
                    parts.append(jnp.where(masks[k], rolled, 0.0))
            return jnp.concatenate(parts, axis=0)

        # ======================= ConvLSTM stack =======================
        cur = x_ref[...]               # (C_in_pad, T*L): time folded into lanes
        h_last = None
        for li in range(num_layers):
            wx = lrefs[3 * li][...]        # (4*cout, K*cin_l)
            wh = lrefs[3 * li + 1][...]    # (4*cout, K*cout)
            bv = lrefs[3 * li + 2][...]    # (4*cout, 1)
            four_cout = wh.shape[0]
            cout = four_cout // 4
            last_layer = li == num_layers - 1

            # (1) time-invariant input contribution for ALL timesteps in one
            #     lane-dense (N = T*L) MXU matmul; conv bias folded in here.
            xg = jnp.dot(wx, tap_stack(cur, full_masks),
                         preferred_element_type=jnp.float32) + bv   # (4*cout, T*L)

            # (2) serial recurrence: per step only the small h-dependent matmul.
            h = jnp.zeros((cout, L), jnp.float32)
            c = jnp.zeros((cout, L), jnp.float32)
            h_blocks = []
            for t in range(T):
                g_t = xg[:, t * L:(t + 1) * L]
                if t > 0:  # h == 0 at t == 0 -> recurrent term is exactly zero
                    g_t = g_t + jnp.dot(wh, tap_stack(h, step_masks),
                                        preferred_element_type=jnp.float32)
                g_t = jax.nn.sigmoid(g_t)   # PyTorch cell: sigmoid on ALL 4 gates (incl. g)
                i_g = g_t[0 * cout:1 * cout]
                f_g = g_t[1 * cout:2 * cout]
                o_g = g_t[2 * cout:3 * cout]
                g_g = g_t[3 * cout:4 * cout]
                c = f_g * c + i_g * g_g
                h = o_g * jnp.tanh(c)
                if not last_layer:
                    h_blocks.append(h)
            if last_layer:
                h_last = h                                    # only t = T-1 is consumed
            else:
                cur = jnp.concatenate(h_blocks, axis=1)       # (cout, T*L) -> next layer

        # ============ MaxPool2d(kernel=5, stride=2, padding=2) over (cout, L) ============
        cout = h_last.shape[0]
        pool_rows = (cout + 4 - 5) // 2 + 1
        l_out = (L + 4 - 5) // 2 + 1

        # (a) channel / sublane direction: static-window elementwise maxes.
        rows = []
        for i in range(pool_rows):
            lo, hi = max(0, 2 * i - 2), min(cout, 2 * i + 3)
            r = h_last[lo:lo + 1]
            for rr in range(lo + 1, hi):
                r = jnp.maximum(r, h_last[rr:rr + 1])
            rows.append(r)
        rp = jnp.concatenate(rows, axis=0)                    # (pool_rows, L)

        # (b) length / lane direction: shifted maxes (XLU rolls + masks) ...
        m_full = rp
        for d in (-2, -1, 1, 2):
            sh = pltpu.roll(rp, (-d) % L, axis=1)             # sh[:, j] = rp[:, j + d]
            valid = (lane_step < (L - d)) if d > 0 else (lane_step >= (-d))
            m_full = jnp.maximum(m_full, jnp.where(valid, sh, NEG))
        # ... then the stride-2 lane downsample as a tiny MXU selection matmul
        p_i = jax.lax.broadcasted_iota(jnp.int32, (L, l_out), 0)
        j_i = jax.lax.broadcasted_iota(jnp.int32, (L, l_out), 1)
        sel = jnp.where(p_i == 2 * j_i, 1.0, 0.0).astype(jnp.float32)
        pooled = jnp.dot(m_full, sel, preferred_element_type=jnp.float32)  # (pool_rows, l_out)

        # ======================= Flatten + Linear =======================
        # Row-blocked contraction avoids an in-kernel cross-dim reshape:
        #   logits = fc_b + sum_r pooled[r, :] @ fc_w[:, r*l_out:(r+1)*l_out].T
        acc = fc_b_ref[...]                                   # (1, n_pad)  lane-dense
        for r in range(pool_rows):
            acc = acc + jnp.dot(pooled[r:r + 1, :], fc_wt_ref[r],
                                preferred_element_type=jnp.float32)
        out_ref[...] = acc

    return kernel


# -----------------------------------------------------------------------------
# Wrapper: weight re-layout + the single fused pallas_call
# -----------------------------------------------------------------------------
def convlstm_audio_forward(x, conv_params, fc_w, fc_b):
    """Logits-only forward of ConvLSTM_audio (is_conv1d=True, labels=None).

    x:           (B, T, Cin, L) f32
    conv_params: list of (w, b); w: (4*Cout, Cin_l + Cout, K), b: (4*Cout,)
    fc_w, fc_b:  (num_classes, hidden_dim), (num_classes,)
    """
    B, T, cin0, L = x.shape
    num_layers = len(conv_params)
    K = conv_params[0][0].shape[-1]

    # Pad layer-0 input channels to a sublane-aligned 8 (review item #3).
    cin_pad = max(8, ((cin0 + 7) // 8) * 8)
    x_p = jnp.pad(x, ((0, 0), (0, 0), (0, cin_pad - cin0), (0, 0)))
    # Fold time into the lane axis: (B, Cin_pad, T*L) — lets the kernel compute
    # the x-contribution of the gates for all timesteps in ONE matmul (item #1).
    x_tl = jnp.transpose(x_p, (0, 2, 1, 3)).reshape(B, cin_pad, T * L)

    # Tap-fused, x/h-split conv weights.
    layer_args, layer_specs = [], []
    in_ch, in_ch_p = cin0, cin_pad
    for (w, b) in conv_params:
        four_cout, ctot, Kl = w.shape
        cout = four_cout // 4
        assert Kl == K and ctot == in_ch + cout
        w_x = w[:, :in_ch, :]
        w_h = w[:, in_ch:, :]
        if in_ch_p != in_ch:  # zero weight columns for the padded input channels
            w_x = jnp.pad(w_x, ((0, 0), (0, in_ch_p - in_ch), (0, 0)))
        wx_f = jnp.concatenate([w_x[:, :, k] for k in range(K)], axis=1)  # (4C, K*Cin_p)
        wh_f = jnp.concatenate([w_h[:, :, k] for k in range(K)], axis=1)  # (4C, K*C)
        layer_args += [wx_f, wh_f, b.reshape(four_cout, 1).astype(jnp.float32)]
        layer_specs += [
            pl.BlockSpec(wx_f.shape, lambda bb: (0, 0)),
            pl.BlockSpec(wh_f.shape, lambda bb: (0, 0)),
            pl.BlockSpec((four_cout, 1), lambda bb: (0, 0)),
        ]
        in_ch, in_ch_p = cout, cout   # next layer consumes this layer's h (already 8-aligned)
    cout_last = in_ch

    # MaxPool2d(5, 2, 2) geometry + FC weight re-layout (row-blocked transpose,
    # classes zero-padded to a lane-dense 128-wide output).
    pool_rows = (cout_last + 4 - 5) // 2 + 1
    l_out = (L + 4 - 5) // 2 + 1
    n_cls = fc_w.shape[0]
    assert fc_w.shape[1] == pool_rows * l_out
    n_pad = pl.cdiv(n_cls, 128) * 128
    fc_wt = jnp.zeros((pool_rows, l_out, n_pad), jnp.float32)
    fc_wt = fc_wt.at[:, :, :n_cls].set(
        jnp.transpose(fc_w.reshape(n_cls, pool_rows, l_out), (1, 2, 0)))
    fc_bp = jnp.zeros((1, n_pad), jnp.float32).at[0, :n_cls].set(fc_b)

    # Advisory cost hint for the XLA scheduler (review: add CostEstimate).
    flops = 0
    ch_p = cin_pad
    for (w, _) in conv_params:
        fc4 = w.shape[0]
        co = fc4 // 4
        flops += 2 * fc4 * (K * ch_p) * (T * L) + (T - 1) * 2 * fc4 * (K * co) * L
        ch_p = co
    flops = B * (flops + 2 * pool_rows * L * l_out + 2 * pool_rows * l_out * n_pad)
    trans = B * sum(T * 5 * (w.shape[0] // 4) * L for (w, _) in conv_params)
    bytes_acc = B * (x_tl.shape[1] * x_tl.shape[2] * 4
                     + sum(a.size * 4 for a in layer_args)
                     + fc_wt.size * 4 + fc_bp.size * 4 + n_pad * 4)

    kernel = _make_fused_kernel(num_layers, T, L, K)

    out = pl.pallas_call(
        kernel,
        out_shape=jax.ShapeDtypeStruct((B, 1, n_pad), jnp.float32),
        grid=(B,),
        in_specs=[pl.BlockSpec((None, cin_pad, T * L), lambda bb: (bb, 0, 0))]
                 + layer_specs
                 + [pl.BlockSpec((pool_rows, l_out, n_pad), lambda bb: (0, 0, 0)),
                    pl.BlockSpec((1, n_pad), lambda bb: (0, 0))],
        out_specs=pl.BlockSpec((None, 1, n_pad), lambda bb: (bb, 0, 0)),
        compiler_params=pltpu.CompilerParams(
            # TODO(synk): pltpu.CORE_PARALLEL on v7x to split B=2 across both TCs.
            dimension_semantics=("parallel",)),
        cost_estimate=pl.CostEstimate(flops=int(flops),
                                      transcendentals=int(trans),
                                      bytes_accessed=int(bytes_acc)),
    )(x_tl, *layer_args, fc_wt, fc_bp)
    return out[:, 0, :n_cls]


# -----------------------------------------------------------------------------
# Pure-JAX reference (mirrors the PyTorch module) for a sanity check
# -----------------------------------------------------------------------------
def _conv1d_ref(x, w, b):
    pad = w.shape[-1] // 2
    y = jax.lax.conv_general_dilated(
        x, w, window_strides=(1,), padding=[(pad, pad)],
        dimension_numbers=('NCH', 'OIH', 'NCH'))
    return y + b[None, :, None]


def reference_forward(x, conv_params, fc_w, fc_b):
    B, T, _, L = x.shape
    cur = x
    h = None
    for (w, b) in conv_params:
        cout = w.shape[0] // 4
        h = jnp.zeros((B, cout, L), jnp.float32)
        c = jnp.zeros((B, cout, L), jnp.float32)
        outs = []
        for t in range(T):
            comb = jnp.concatenate([cur[:, t], h], axis=1)
            gates = _conv1d_ref(comb, w, b)
            i = jax.nn.sigmoid(gates[:, 0 * cout:1 * cout])
            f = jax.nn.sigmoid(gates[:, 1 * cout:2 * cout])
            o = jax.nn.sigmoid(gates[:, 2 * cout:3 * cout])
            g = jax.nn.sigmoid(gates[:, 3 * cout:4 * cout])
            c = f * c + i * g
            h = o * jnp.tanh(c)
            outs.append(h)
        cur = jnp.stack(outs, axis=1)
    pooled = jax.lax.reduce_window(
        h, -jnp.inf, jax.lax.max,
        window_dimensions=(1, 5, 5), window_strides=(1, 2, 2),
        padding=((0, 0), (2, 2), (2, 2)))
    flat = pooled.reshape(B, -1)
    return flat @ fc_w.T + fc_b


if __name__ == "__main__":
    # ConvLSTM_audio config (is_conv1d=True)
    num_classes = 10
    width = 128            # audio length L
    in_channels = 4
    out_channels = 8
    kernel_size = 3
    num_layers = 2
    batch = 2
    time_steps = 8

    hidden_dim = width // 4 * out_channels   # == self.hidden_dim == 256

    key = jax.random.PRNGKey(0)
    k_x, k_fc_w, k_fc_b, *k_layers = jax.random.split(key, 3 + 2 * num_layers)

    x = jax.random.normal(k_x, (batch, time_steps, in_channels, width), jnp.float32)

    # deterministic synthetic parameters (PyTorch-shaped)
    conv_params = []
    cin = in_channels
    for li in range(num_layers):
        kw, kb = k_layers[2 * li], k_layers[2 * li + 1]
        w = 0.1 * jax.random.normal(
            kw, (4 * out_channels, cin + out_channels, kernel_size), jnp.float32)
        b = 0.1 * jax.random.normal(kb, (4 * out_channels,), jnp.float32)
        conv_params.append((w, b))
        cin = out_channels

    fc_w = 0.05 * jax.random.normal(k_fc_w, (num_classes, hidden_dim), jnp.float32)
    fc_b = 0.05 * jax.random.normal(k_fc_b, (num_classes,), jnp.float32)

    logits = convlstm_audio_forward(x, conv_params, fc_w, fc_b)
    logits = jax.block_until_ready(logits)

    ref = reference_forward(x, conv_params, fc_w, fc_b)
    assert logits.shape == (batch, num_classes)
    err = float(jnp.max(jnp.abs(logits - ref)))
    assert jnp.allclose(logits, ref, rtol=1e-2, atol=1e-2), err

    print("KERNEL_OK")
</pallas_src>

<mosaic_0001>
module attributes {stable_mosaic.version = 11 : i64} {
  func.func @kernel(%arg0: i32, %arg1: memref<1x8x1024xf32, #tpu.memory_space<vmem>>, %arg2: memref<32x24xf32, #tpu.memory_space<vmem>>, %arg3: memref<32x24xf32, #tpu.memory_space<vmem>>, %arg4: memref<32x1xf32, #tpu.memory_space<vmem>>, %arg5: memref<32x24xf32, #tpu.memory_space<vmem>>, %arg6: memref<32x24xf32, #tpu.memory_space<vmem>>, %arg7: memref<32x1xf32, #tpu.memory_space<vmem>>, %arg8: memref<4x64x128xf32, #tpu.memory_space<vmem>>, %arg9: memref<1x128xf32, #tpu.memory_space<vmem>>, %arg10: memref<1x1x128xf32, #tpu.memory_space<vmem>>) attributes {dimension_semantics = [#tpu.dimension_semantics<parallel>], iteration_bounds = array<i64: 2>, scalar_prefetch = 0 : i64, scratch_operands = 0 : i64, tpu.core_type = #tpu.core_type<tc>, window_params = [{transform_indices = @transform_0, window_bounds = array<i64: 1, 8, 1024>}, {pipeline_mode = #tpu.pipeline_mode<synchronous>, transform_indices = @transform_1, window_bounds = array<i64: 32, 24>}, {pipeline_mode = #tpu.pipeline_mode<synchronous>, transform_indices = @transform_2, window_bounds = array<i64: 32, 24>}, {pipeline_mode = #tpu.pipeline_mode<synchronous>, transform_indices = @transform_3, window_bounds = array<i64: 32, 1>}, {pipeline_mode = #tpu.pipeline_mode<synchronous>, transform_indices = @transform_4, window_bounds = array<i64: 32, 24>}, {pipeline_mode = #tpu.pipeline_mode<synchronous>, transform_indices = @transform_5, window_bounds = array<i64: 32, 24>}, {pipeline_mode = #tpu.pipeline_mode<synchronous>, transform_indices = @transform_6, window_bounds = array<i64: 32, 1>}, {pipeline_mode = #tpu.pipeline_mode<synchronous>, transform_indices = @transform_7, window_bounds = array<i64: 4, 64, 128>}, {pipeline_mode = #tpu.pipeline_mode<synchronous>, transform_indices = @transform_8, window_bounds = array<i64: 1, 128>}, {transform_indices = @transform_9, window_bounds = array<i64: 1, 1, 128>}]} {
    %0 = tpu.iota {dimensions = array<i32: 1>} : vector<1x128xi32>
    %1 = tpu.iota {dimensions = array<i32: 1>} : vector<1x1024xi32>
    %c127_i32 = arith.constant 127 : i32
    %2 = vector.broadcast %c127_i32 : i32 to vector<1x1024xi32>
    %3 = arith.andi %1, %2 : vector<1x1024xi32>
    %c1_i32 = arith.constant 1 : i32
    %4 = vector.broadcast %c1_i32 : i32 to vector<1x128xi32>
    %5 = arith.cmpi sge, %0, %4 : vector<1x128xi32>
    %c127_i32_0 = arith.constant 127 : i32
    %6 = vector.broadcast %c127_i32_0 : i32 to vector<1x128xi32>
    %7 = arith.cmpi slt, %0, %6 : vector<1x128xi32>
    %c1_i32_1 = arith.constant 1 : i32
    %8 = vector.broadcast %c1_i32_1 : i32 to vector<1x1024xi32>
    %9 = arith.cmpi sge, %3, %8 : vector<1x1024xi32>
    %c127_i32_2 = arith.constant 127 : i32
    %10 = vector.broadcast %c127_i32_2 : i32 to vector<1x1024xi32>
    %11 = arith.cmpi slt, %3, %10 : vector<1x1024xi32>
    %c0 = arith.constant 0 : index
    %c0_3 = arith.constant 0 : index
    %c0_4 = arith.constant 0 : index
    %12 = vector.load %arg1[%c0, %c0_3, %c0_4] : memref<1x8x1024xf32, #tpu.memory_space<vmem>>, vector<1x8x1024xf32>
    %13 = vector.shape_cast %12 : vector<1x8x1024xf32> to vector<8x1024xf32>
    %c0_5 = arith.constant 0 : index
    %c0_6 = arith.constant 0 : index
    %14 = vector.load %arg2[%c0_5, %c0_6] : memref<32x24xf32, #tpu.memory_space<vmem>>, vector<32x24xf32>
    %c0_7 = arith.constant 0 : index
    %c0_8 = arith.constant 0 : index
    %15 = vector.load %arg3[%c0_7, %c0_8] : memref<32x24xf32, #tpu.memory_space<vmem>>, vector<32x24xf32>
    %c0_9 = arith.constant 0 : index
    %c0_10 = arith.constant 0 : index
    %16 = vector.load %arg4[%c0_9, %c0_10] : memref<32x1xf32, #tpu.memory_space<vmem>>, vector<32x1xf32>
    %c1_i32_11 = arith.constant 1 : i32
    %17 = tpu.dynamic_rotate %13 by %c1_i32_11 dim 1 : vector<8x1024xf32>, i32 -> vector<8x1024xf32>
    %cst = arith.constant 0.000000e+00 : f32
    %18 = vector.shape_cast %9 : vector<1x1024xi1> to vector<1x1024xi1>
    %19 = vector.broadcast %18 : vector<1x1024xi1> to vector<8x1024xi1>
    %20 = vector.broadcast %cst : f32 to vector<8x1024xf32>
    %21 = arith.select %19, %17, %20 : vector<8x1024xi1>, vector<8x1024xf32>
    %c1023_i32 = arith.constant 1023 : i32
    %22 = tpu.dynamic_rotate %13 by %c1023_i32 dim 1 : vector<8x1024xf32>, i32 -> vector<8x1024xf32>
    %cst_12 = arith.constant 0.000000e+00 : f32
    %23 = vector.shape_cast %11 : vector<1x1024xi1> to vector<1x1024xi1>
    %24 = vector.broadcast %23 : vector<1x1024xi1> to vector<8x1024xi1>
    %25 = vector.broadcast %cst_12 : f32 to vector<8x1024xf32>
    %26 = arith.select %24, %22, %25 : vector<8x1024xi1>, vector<8x1024xf32>
    %27 = tpu.concatenate %21, %13, %26 in 0 : vector<8x1024xf32>, vector<8x1024xf32>, vector<8x1024xf32> -> vector<24x1024xf32>
    %cst_13 = arith.constant dense<0.000000e+00> : vector<32x1024xf32>
    %28 = tpu.matmul %14, %27, %cst_13 {dimension_numbers = #tpu.dot_dimension_numbers<[1], [0], [0], [1], [0, 0, 1, 1], [], []>} : vector<32x24xf32>, vector<24x1024xf32>, vector<32x1024xf32> -> vector<32x1024xf32>
    %29 = vector.broadcast %16 : vector<32x1xf32> to vector<32x1024xf32>
    %30 = arith.addf %28, %29 : vector<32x1024xf32>
    %cst_14 = arith.constant 0.000000e+00 : f32
    %31 = vector.broadcast %cst_14 : f32 to vector<8x128xf32>
    %32 = vector.extract_strided_slice %30 {offsets = [0, 0], sizes = [32, 128], strides = [1, 1]} : vector<32x1024xf32> to vector<32x128xf32>
    %33 = arith.negf %32 : vector<32x128xf32>
    %34 = math.exp %33 : vector<32x128xf32>
    %cst_15 = arith.constant 1.000000e+00 : f32
    %35 = vector.broadcast %cst_15 : f32 to vector<32x128xf32>
    %36 = arith.addf %35, %34 : vector<32x128xf32>
    %37 = arith.divf %35, %36 : vector<32x128xf32>
    %38 = vector.extract_strided_slice %37 {offsets = [0, 0], sizes = [8, 128], strides = [1, 1]} : vector<32x128xf32> to vector<8x128xf32>
    %39 = vector.extract_strided_slice %37 {offsets = [8, 0], sizes = [8, 128], strides = [1, 1]} : vector<32x128xf32> to vector<8x128xf32>
    %40 = vector.extract_strided_slice %37 {offsets = [16, 0], sizes = [8, 128], strides = [1, 1]} : vector<32x128xf32> to vector<8x128xf32>
    %41 = vector.extract_strided_slice %37 {offsets = [24, 0], sizes = [8, 128], strides = [1, 1]} : vector<32x128xf32> to vector<8x128xf32>
    %42 = arith.mulf %39, %31 : vector<8x128xf32>
    %43 = arith.mulf %38, %41 : vector<8x128xf32>
    %44 = arith.addf %42, %43 : vector<8x128xf32>
    %45 = math.tanh %44 : vector<8x128xf32>
    %46 = arith.mulf %40, %45 : vector<8x128xf32>
    %47 = vector.extract_strided_slice %30 {offsets = [0, 128], sizes = [32, 128], strides = [1, 1]} : vector<32x1024xf32> to vector<32x128xf32>
    %c1_i32_16 = arith.constant 1 : i32
    %48 = tpu.dynamic_rotate %46 by %c1_i32_16 dim 1 : vector<8x128xf32>, i32 -> vector<8x128xf32>
    %cst_17 = arith.constant 0.000000e+00 : f32
    %49 = vector.shape_cast %5 : vector<1x128xi1> to vector<1x128xi1>
    %50 = vector.broadcast %49 : vector<1x128xi1> to vector<8x128xi1>
    %51 = vector.broadcast %cst_17 : f32 to vector<8x128xf32>
    %52 = arith.select %50, %48, %51 : vector<8x128xi1>, vector<8x128xf32>
    %c127_i32_18 = arith.constant 127 : i32
    %53 = tpu.dynamic_rotate %46 by %c127_i32_18 dim 1 : vector<8x128xf32>, i32 -> vector<8x128xf32>
    %cst_19 = arith.constant 0.000000e+00 : f32
    %54 = vector.shape_cast %7 : vector<1x128xi1> to vector<1x128xi1>
    %55 = vector.broadcast %54 : vector<1x128xi1> to vector<8x128xi1>
    %56 = vector.broadcast %cst_19 : f32 to vector<8x128xf32>
    %57 = arith.select %55, %53, %56 : vector<8x128xi1>, vector<8x128xf32>
    %58 = tpu.concatenate %52, %46, %57 in 0 : vector<8x128xf32>, vector<8x128xf32>, vector<8x128xf32> -> vector<24x128xf32>
    %cst_20 = arith.constant dense<0.000000e+00> : vector<32x128xf32>
    %59 = tpu.matmul %15, %58, %cst_20 {dimension_numbers = #tpu.dot_dimension_numbers<[1], [0], [0], [1], [0, 0, 1, 1], [], []>} : vector<32x24xf32>, vector<24x128xf32>, vector<32x128xf32> -> vector<32x128xf32>
    %60 = arith.addf %47, %59 : vector<32x128xf32>
    %61 = arith.negf %60 : vector<32x128xf32>
    %62 = math.exp %61 : vector<32x128xf32>
    %cst_21 = arith.constant 1.000000e+00 : f32
    %63 = vector.broadcast %cst_21 : f32 to vector<32x128xf32>
    %64 = arith.addf %63, %62 : vector<32x128xf32>
    %65 = arith.divf %63, %64 : vector<32x128xf32>
    %66 = vector.extract_strided_slice %65 {offsets = [0, 0], sizes = [8, 128], strides = [1, 1]} : vector<32x128xf32> to vector<8x128xf32>
    %67 = vector.extract_strided_slice %65 {offsets = [8, 0], sizes = [8, 128], strides = [1, 1]} : vector<32x128xf32> to vector<8x128xf32>
    %68 = vector.extract_strided_slice %65 {offsets = [16, 0], sizes = [8, 128], strides = [1, 1]} : vector<32x128xf32> to vector<8x128xf32>
    %69 = vector.extract_strided_slice %65 {offsets = [24, 0], sizes = [8, 128], strides = [1, 1]} : vector<32x128xf32> to vector<8x128xf32>
    %70 = arith.mulf %67, %44 : vector<8x128xf32>
    %71 = arith.mulf %66, %69 : vector<8x128xf32>
    %72 = arith.addf %70, %71 : vector<8x128xf32>
    %73 = math.tanh %72 : vector<8x128xf32>
    %74 = arith.mulf %68, %73 : vector<8x128xf32>
    %75 = vector.extract_strided_slice %30 {offsets = [0, 256], sizes = [32, 128], strides = [1, 1]} : vector<32x1024xf32> to vector<32x128xf32>
    %c1_i32_22 = arith.constant 1 : i32
    %76 = tpu.dynamic_rotate %74 by %c1_i32_22 dim 1 : vector<8x128xf32>, i32 -> vector<8x128xf32>
    %cst_23 = arith.constant 0.000000e+00 : f32
    %77 = vector.shape_cast %5 : vector<1x128xi1> to vector<1x128xi1>
    %78 = vector.broadcast %77 : vector<1x128xi1> to vector<8x128xi1>
    %79 = vector.broadcast %cst_23 : f32 to vector<8x128xf32>
    %80 = arith.select %78, %76, %79 : vector<8x128xi1>, vector<8x128xf32>
    %c127_i32_24 = arith.constant 127 : i32
    %81 = tpu.dynamic_rotate %74 by %c127_i32_24 dim 1 : vector<8x128xf32>, i32 -> vector<8x128xf32>
    %cst_25 = arith.constant 0.000000e+00 : f32
    %82 = vector.shape_cast %7 : vector<1x128xi1> to vector<1x128xi1>
    %83 = vector.broadcast %82 : vector<1x128xi1> to vector<8x128xi1>
    %84 = vector.broadcast %cst_25 : f32 to vector<8x128xf32>
    %85 = arith.select %83, %81, %84 : vector<8x128xi1>, vector<8x128xf32>
    %86 = tpu.concatenate %80, %74, %85 in 0 : vector<8x128xf32>, vector<8x128xf32>, vector<8x128xf32> -> vector<24x128xf32>
    %cst_26 = arith.constant dense<0.000000e+00> : vector<32x128xf32>
    %87 = tpu.matmul %15, %86, %cst_26 {dimension_numbers = #tpu.dot_dimension_numbers<[1], [0], [0], [1], [0, 0, 1, 1], [], []>} : vector<32x24xf32>, vector<24x128xf32>, vector<32x128xf32> -> vector<32x128xf32>
    %88 = arith.addf %75, %87 : vector<32x128xf32>
    %89 = arith.negf %88 : vector<32x128xf32>
    %90 = math.exp %89 : vector<32x128xf32>
    %cst_27 = arith.constant 1.000000e+00 : f32
    %91 = vector.broadcast %cst_27 : f32 to vector<32x128xf32>
    %92 = arith.addf %91, %90 : vector<32x128xf32>
    %93 = arith.divf %91, %92 : vector<32x128xf32>
    %94 = vector.extract_strided_slice %93 {offsets = [0, 0], sizes = [8, 128], strides = [1, 1]} : vector<32x128xf32> to vector<8x128xf32>
    %95 = vector.extract_strided_slice %93 {offsets = [8, 0], sizes = [8, 128], strides = [1, 1]} : vector<32x128xf32> to vector<8x128xf32>
    %96 = vector.extract_strided_slice %93 {offsets = [16, 0], sizes = [8, 128], strides = [1, 1]} : vector<32x128xf32> to vector<8x128xf32>
    %97 = vector.extract_strided_slice %93 {offsets = [24, 0], sizes = [8, 128], strides = [1, 1]} : vector<32x128xf32> to vector<8x128xf32>
    %98 = arith.mulf %95, %72 : vector<8x128xf32>
    %99 = arith.mulf %94, %97 : vector<8x128xf32>
    %100 = arith.addf %98, %99 : vector<8x128xf32>
    %101 = math.tanh %100 : vector<8x128xf32>
    %102 = arith.mulf %96, %101 : vector<8x128xf32>
    %103 = vector.extract_strided_slice %30 {offsets = [0, 384], sizes = [32, 128], strides = [1, 1]} : vector<32x1024xf32> to vector<32x128xf32>
    %c1_i32_28 = arith.constant 1 : i32
    %104 = tpu.dynamic_rotate %102 by %c1_i32_28 dim 1 : vector<8x128xf32>, i32 -> vector<8x128xf32>
    %cst_29 = arith.constant 0.000000e+00 : f32
    %105 = vector.shape_cast %5 : vector<1x128xi1> to vector<1x128xi1>
    %106 = vector.broadcast %105 : vector<1x128xi1> to vector<8x128xi1>
    %107 = vector.broadcast %cst_29 : f32 to vector<8x128xf32>
    %108 = arith.select %106, %104, %107 : vector<8x128xi1>, vector<8x128xf32>
    %c127_i32_30 = arith.constant 127 : i32
    %109 = tpu.dynamic_rotate %102 by %c127_i32_30 dim 1 : vector<8x128xf32>, i32 -> vector<8x128xf32>
    %cst_31 = arith.constant 0.000000e+00 : f32
    %110 = vector.shape_cast %7 : vector<1x128xi1> to vector<1x128xi1>
    %111 = vector.broadcast %110 : vector<1x128xi1> to vector<8x128xi1>
    %112 = vector.broadcast %cst_31 : f32 to vector<8x128xf32>
    %113 = arith.select %111, %109, %112 : vector<8x128xi1>, vector<8x128xf32>
    %114 = tpu.concatenate %108, %102, %113 in 0 : vector<8x128xf32>, vector<8x128xf32>, vector<8x128xf32> -> vector<24x128xf32>
    %cst_32 = arith.constant dense<0.000000e+00> : vector<32x128xf32>
    %115 = tpu.matmul %15, %114, %cst_32 {dimension_numbers = #tpu.dot_dimension_numbers<[1], [0], [0], [1], [0, 0, 1, 1], [], []>} : vector<32x24xf32>, vector<24x128xf32>, vector<32x128xf32> -> vector<32x128xf32>
    %116 = arith.addf %103, %115 : vector<32x128xf32>
    %117 = arith.negf %116 : vector<32x128xf32>
    %118 = math.exp %117 : vector<32x128xf32>
    %cst_33 = arith.constant 1.000000e+00 : f32
    %119 = vector.broadcast %cst_33 : f32 to vector<32x128xf32>
    %120 = arith.addf %119, %118 : vector<32x128xf32>
    %121 = arith.divf %119, %120 : vector<32x128xf32>
    %122 = vector.extract_strided_slice %121 {offsets = [0, 0], sizes = [8, 128], strides = [1, 1]} : vector<32x128xf32> to vector<8x128xf32>
    %123 = vector.extract_strided_slice %121 {offsets = [8, 0], sizes = [8, 128], strides = [1, 1]} : vector<32x128xf32> to vector<8x128xf32>
    %124 = vector.extract_strided_slice %121 {offsets = [16, 0], sizes = [8, 128], strides = [1, 1]} : vector<32x128xf32> to vector<8x128xf32>
    %125 = vector.extract_strided_slice %121 {offsets = [24, 0], sizes = [8, 128], strides = [1, 1]} : vector<32x128xf32> to vector<8x128xf32>
    %126 = arith.mulf %123, %100 : vector<8x128xf32>
    %127 = arith.mulf %122, %125 : vector<8x128xf32>
    %128 = arith.addf %126, %127 : vector<8x128xf32>
    %129 = math.tanh %128 : vector<8x128xf32>
    %130 = arith.mulf %124, %129 : vector<8x128xf32>
    %131 = vector.extract_strided_slice %30 {offsets = [0, 512], sizes = [32, 128], strides = [1, 1]} : vector<32x1024xf32> to vector<32x128xf32>
    %c1_i32_34 = arith.constant 1 : i32
    %132 = tpu.dynamic_rotate %130 by %c1_i32_34 dim 1 : vector<8x128xf32>, i32 -> vector<8x128xf32>
    %cst_35 = arith.constant 0.000000e+00 : f32
    %133 = vector.shape_cast %5 : vector<1x128xi1> to vector<1x128xi1>
    %134 = vector.broadcast %133 : vector<1x128xi1> to vector<8x128xi1>
    %135 = vector.broadcast %cst_35 : f32 to vector<8x128xf32>
    %136 = arith.select %134, %132, %135 : vector<8x128xi1>, vector<8x128xf32>
    %c127_i32_36 = arith.constant 127 : i32
    %137 = tpu.dynamic_rotate %130 by %c127_i32_36 dim 1 : vector<8x128xf32>, i32 -> vector<8x128xf32>
    %cst_37 = arith.constant 0.000000e+00 : f32
    %138 = vector.shape_cast %7 : vector<1x128xi1> to vector<1x128xi1>
    %139 = vector.broadcast %138 : vector<1x128xi1> to vector<8x128xi1>
    %140 = vector.broadcast %cst_37 : f32 to vector<8x128xf32>
    %141 = arith.select %139, %137, %140 : vector<8x128xi1>, vector<8x128xf32>
    %142 = tpu.concatenate %136, %130, %141 in 0 : vector<8x128xf32>, vector<8x128xf32>, vector<8x128xf32> -> vector<24x128xf32>
    %cst_38 = arith.constant dense<0.000000e+00> : vector<32x128xf32>
    %143 = tpu.matmul %15, %142, %cst_38 {dimension_numbers = #tpu.dot_dimension_numbers<[1], [0], [0], [1], [0, 0, 1, 1], [], []>} : vector<32x24xf32>, vector<24x128xf32>, vector<32x128xf32> -> vector<32x128xf32>
    %144 = arith.addf %131, %143 : vector<32x128xf32>
    %145 = arith.negf %144 : vector<32x128xf32>
    %146 = math.exp %145 : vector<32x128xf32>
    %cst_39 = arith.constant 1.000000e+00 : f32
    %147 = vector.broadcast %cst_39 : f32 to vector<32x128xf32>
    %148 = arith.addf %147, %146 : vector<32x128xf32>
    %149 = arith.divf %147, %148 : vector<32x128xf32>
    %150 = vector.extract_strided_slice %149 {offsets = [0, 0], sizes = [8, 128], strides = [1, 1]} : vector<32x128xf32> to vector<8x128xf32>
    %151 = vector.extract_strided_slice %149 {offsets = [8, 0], sizes = [8, 128], strides = [1, 1]} : vector<32x128xf32> to vector<8x128xf32>
    %152 = vector.extract_strided_slice %149 {offsets = [16, 0], sizes = [8, 128], strides = [1, 1]} : vector<32x128xf32> to vector<8x128xf32>
    %153 = vector.extract_strided_slice %149 {offsets = [24, 0], sizes = [8, 128], strides = [1, 1]} : vector<32x128xf32> to vector<8x128xf32>
    %154 = arith.mulf %151, %128 : vector<8x128xf32>
    %155 = arith.mulf %150, %153 : vector<8x128xf32>
    %156 = arith.addf %154, %155 : vector<8x128xf32>
    %157 = math.tanh %156 : vector<8x128xf32>
    %158 = arith.mulf %152, %157 : vector<8x128xf32>
    %159 = vector.extract_strided_slice %30 {offsets = [0, 640], sizes = [32, 128], strides = [1, 1]} : vector<32x1024xf32> to vector<32x128xf32>
    %c1_i32_40 = arith.constant 1 : i32
    %160 = tpu.dynamic_rotate %158 by %c1_i32_40 dim 1 : vector<8x128xf32>, i32 -> vector<8x128xf32>
    %cst_41 = arith.constant 0.000000e+00 : f32
    %161 = vector.shape_cast %5 : vector<1x128xi1> to vector<1x128xi1>
    %162 = vector.broadcast %161 : vector<1x128xi1> to vector<8x128xi1>
    %163 = vector.broadcast %cst_41 : f32 to vector<8x128xf32>
    %164 = arith.select %162, %160, %163 : vector<8x128xi1>, vector<8x128xf32>
    %c127_i32_42 = arith.constant 127 : i32
    %165 = tpu.dynamic_rotate %158 by %c127_i32_42 dim 1 : vector<8x128xf32>, i32 -> vector<8x128xf32>
    %cst_43 = arith.constant 0.000000e+00 : f32
    %166 = vector.shape_cast %7 : vector<1x128xi1> to vector<1x128xi1>
    %167 = vector.broadcast %166 : vector<1x128xi1> to vector<8x128xi1>
    %168 = vector.broadcast %cst_43 : f32 to vector<8x128xf32>
    %169 = arith.select %167, %165, %168 : vector<8x128xi1>, vector<8x128xf32>
    %170 = tpu.concatenate %164, %158, %169 in 0 : vector<8x128xf32>, vector<8x128xf32>, vector<8x128xf32> -> vector<24x128xf32>
    %cst_44 = arith.constant dense<0.000000e+00> : vector<32x128xf32>
    %171 = tpu.matmul %15, %170, %cst_44 {dimension_numbers = #tpu.dot_dimension_numbers<[1], [0], [0], [1], [0, 0, 1, 1], [], []>} : vector<32x24xf32>, vector<24x128xf32>, vector<32x128xf32> -> vector<32x128xf32>
    %172 = arith.addf %159, %171 : vector<32x128xf32>
    %173 = arith.negf %172 : vector<32x128xf32>
    %174 = math.exp %173 : vector<32x128xf32>
    %cst_45 = arith.constant 1.000000e+00 : f32
    %175 = vector.broadcast %cst_45 : f32 to vector<32x128xf32>
    %176 = arith.addf %175, %174 : vector<32x128xf32>
    %177 = arith.divf %175, %176 : vector<32x128xf32>
    %178 = vector.extract_strided_slice %177 {offsets = [0, 0], sizes = [8, 128], strides = [1, 1]} : vector<32x128xf32> to vector<8x128xf32>
    %179 = vector.extract_strided_slice %177 {offsets = [8, 0], sizes = [8, 128], strides = [1, 1]} : vector<32x128xf32> to vector<8x128xf32>
    %180 = vector.extract_strided_slice %177 {offsets = [16, 0], sizes = [8, 128], strides = [1, 1]} : vector<32x128xf32> to vector<8x128xf32>
    %181 = vector.extract_strided_slice %177 {offsets = [24, 0], sizes = [8, 128], strides = [1, 1]} : vector<32x128xf32> to vector<8x128xf32>
    %182 = arith.mulf %179, %156 : vector<8x128xf32>
    %183 = arith.mulf %178, %181 : vector<8x128xf32>
    %184 = arith.addf %182, %183 : vector<8x128xf32>
    %185 = math.tanh %184 : vector<8x128xf32>
    %186 = arith.mulf %180, %185 : vector<8x128xf32>
    %187 = vector.extract_strided_slice %30 {offsets = [0, 768], sizes = [32, 128], strides = [1, 1]} : vector<32x1024xf32> to vector<32x128xf32>
    %c1_i32_46 = arith.constant 1 : i32
    %188 = tpu.dynamic_rotate %186 by %c1_i32_46 dim 1 : vector<8x128xf32>, i32 -> vector<8x128xf32>
    %cst_47 = arith.constant 0.000000e+00 : f32
    %189 = vector.shape_cast %5 : vector<1x128xi1> to vector<1x128xi1>
    %190 = vector.broadcast %189 : vector<1x128xi1> to vector<8x128xi1>
    %191 = vector.broadcast %cst_47 : f32 to vector<8x128xf32>
    %192 = arith.select %190, %188, %191 : vector<8x128xi1>, vector<8x128xf32>
    %c127_i32_48 = arith.constant 127 : i32
    %193 = tpu.dynamic_rotate %186 by %c127_i32_48 dim 1 : vector<8x128xf32>, i32 -> vector<8x128xf32>
    %cst_49 = arith.constant 0.000000e+00 : f32
    %194 = vector.shape_cast %7 : vector<1x128xi1> to vector<1x128xi1>
    %195 = vector.broadcast %194 : vector<1x128xi1> to vector<8x128xi1>
    %196 = vector.broadcast %cst_49 : f32 to vector<8x128xf32>
    %197 = arith.select %195, %193, %196 : vector<8x128xi1>, vector<8x128xf32>
    %198 = tpu.concatenate %192, %186, %197 in 0 : vector<8x128xf32>, vector<8x128xf32>, vector<8x128xf32> -> vector<24x128xf32>
    %cst_50 = arith.constant dense<0.000000e+00> : vector<32x128xf32>
    %199 = tpu.matmul %15, %198, %cst_50 {dimension_numbers = #tpu.dot_dimension_numbers<[1], [0], [0], [1], [0, 0, 1, 1], [], []>} : vector<32x24xf32>, vector<24x128xf32>, vector<32x128xf32> -> vector<32x128xf32>
    %200 = arith.addf %187, %199 : vector<32x128xf32>
    %201 = arith.negf %200 : vector<32x128xf32>
    %202 = math.exp %201 : vector<32x128xf32>
    %cst_51 = arith.constant 1.000000e+00 : f32
    %203 = vector.broadcast %cst_51 : f32 to vector<32x128xf32>
    %204 = arith.addf %203, %202 : vector<32x128xf32>
    %205 = arith.divf %203, %204 : vector<32x128xf32>
    %206 = vector.extract_strided_slice %205 {offsets = [0, 0], sizes = [8, 128], strides = [1, 1]} : vector<32x128xf32> to vector<8x128xf32>
    %207 = vector.extract_strided_slice %205 {offsets = [8, 0], sizes = [8, 128], strides = [1, 1]} : vector<32x128xf32> to vector<8x128xf32>
    %208 = vector.extract_strided_slice %205 {offsets = [16, 0], sizes = [8, 128], strides = [1, 1]} : vector<32x128xf32> to vector<8x128xf32>
    %209 = vector.extract_strided_slice %205 {offsets = [24, 0], sizes = [8, 128], strides = [1, 1]} : vector<32x128xf32> to vector<8x128xf32>
    %210 = arith.mulf %207, %184 : vector<8x128xf32>
    %211 = arith.mulf %206, %209 : vector<8x128xf32>
    %212 = arith.addf %210, %211 : vector<8x128xf32>
    %213 = math.tanh %212 : vector<8x128xf32>
    %214 = arith.mulf %208, %213 : vector<8x128xf32>
    %215 = vector.extract_strided_slice %30 {offsets = [0, 896], sizes = [32, 128], strides = [1, 1]} : vector<32x1024xf32> to vector<32x128xf32>
    %c1_i32_52 = arith.constant 1 : i32
    %216 = tpu.dynamic_rotate %214 by %c1_i32_52 dim 1 : vector<8x128xf32>, i32 -> vector<8x128xf32>
    %cst_53 = arith.constant 0.000000e+00 : f32
    %217 = vector.shape_cast %5 : vector<1x128xi1> to vector<1x128xi1>
    %218 = vector.broadcast %217 : vector<1x128xi1> to vector<8x128xi1>
    %219 = vector.broadcast %cst_53 : f32 to vector<8x128xf32>
    %220 = arith.select %218, %216, %219 : vector<8x128xi1>, vector<8x128xf32>
    %c127_i32_54 = arith.constant 127 : i32
    %221 = tpu.dynamic_rotate %214 by %c127_i32_54 dim 1 : vector<8x128xf32>, i32 -> vector<8x128xf32>
    %cst_55 = arith.constant 0.000000e+00 : f32
    %222 = vector.shape_cast %7 : vector<1x128xi1> to vector<1x128xi1>
    %223 = vector.broadcast %222 : vector<1x128xi1> to vector<8x128xi1>
    %224 = vector.broadcast %cst_55 : f32 to vector<8x128xf32>
    %225 = arith.select %223, %221, %224 : vector<8x128xi1>, vector<8x128xf32>
    %226 = tpu.concatenate %220, %214, %225 in 0 : vector<8x128xf32>, vector<8x128xf32>, vector<8x128xf32> -> vector<24x128xf32>
    %cst_56 = arith.constant dense<0.000000e+00> : vector<32x128xf32>
    %227 = tpu.matmul %15, %226, %cst_56 {dimension_numbers = #tpu.dot_dimension_numbers<[1], [0], [0], [1], [0, 0, 1, 1], [], []>} : vector<32x24xf32>, vector<24x128xf32>, vector<32x128xf32> -> vector<32x128xf32>
    %228 = arith.addf %215, %227 : vector<32x128xf32>
    %229 = arith.negf %228 : vector<32x128xf32>
    %230 = math.exp %229 : vector<32x128xf32>
    %cst_57 = arith.constant 1.000000e+00 : f32
    %231 = vector.broadcast %cst_57 : f32 to vector<32x128xf32>
    %232 = arith.addf %231, %230 : vector<32x128xf32>
    %233 = arith.divf %231, %232 : vector<32x128xf32>
    %234 = vector.extract_strided_slice %233 {offsets = [0, 0], sizes = [8, 128], strides = [1, 1]} : vector<32x128xf32> to vector<8x128xf32>
    %235 = vector.extract_strided_slice %233 {offsets = [8, 0], sizes = [8, 128], strides = [1, 1]} : vector<32x128xf32> to vector<8x128xf32>
    %236 = vector.extract_strided_slice %233 {offsets = [16, 0], sizes = [8, 128], strides = [1, 1]} : vector<32x128xf32> to vector<8x128xf32>
    %237 = vector.extract_strided_slice %233 {offsets = [24, 0], sizes = [8, 128], strides = [1, 1]} : vector<32x128xf32> to vector<8x128xf32>
    %238 = arith.mulf %235, %212 : vector<8x128xf32>
    %239 = arith.mulf %234, %237 : vector<8x128xf32>
    %240 = arith.addf %238, %239 : vector<8x128xf32>
    %241 = math.tanh %240 : vector<8x128xf32>
    %242 = arith.mulf %236, %241 : vector<8x128xf32>
    %243 = tpu.concatenate %46, %74, %102, %130, %158, %186, %214, %242 in 1 : vector<8x128xf32>, vector<8x128xf32>, vector<8x128xf32>, vector<8x128xf32>, vector<8x128xf32>, vector<8x128xf32>, vector<8x128xf32>, vector<8x128xf32> -> vector<8x1024xf32>
    %c0_58 = arith.constant 0 : index
    %c0_59 = arith.constant 0 : index
    %244 = vector.load %arg5[%c0_58, %c0_59] : memref<32x24xf32, #tpu.memory_space<vmem>>, vector<32x24xf32>
    %c0_60 = arith.constant 0 : index
    %c0_61 = arith.constant 0 : index
    %245 = vector.load %arg6[%c0_60, %c0_61] : memref<32x24xf32, #tpu.memory_space<vmem>>, vector<32x24xf32>
    %c0_62 = arith.constant 0 : index
    %c0_63 = arith.constant 0 : index
    %246 = vector.load %arg7[%c0_62, %c0_63] : memref<32x1xf32, #tpu.memory_space<vmem>>, vector<32x1xf32>
    %c1_i32_64 = arith.constant 1 : i32
    %247 = tpu.dynamic_rotate %243 by %c1_i32_64 dim 1 : vector<8x1024xf32>, i32 -> vector<8x1024xf32>
    %cst_65 = arith.constant 0.000000e+00 : f32
    %248 = vector.shape_cast %9 : vector<1x1024xi1> to vector<1x1024xi1>
    %249 = vector.broadcast %248 : vector<1x1024xi1> to vector<8x1024xi1>
    %250 = vector.broadcast %cst_65 : f32 to vector<8x1024xf32>
    %251 = arith.select %249, %247, %250 : vector<8x1024xi1>, vector<8x1024xf32>
    %c1023_i32_66 = arith.constant 1023 : i32
    %252 = tpu.dynamic_rotate %243 by %c1023_i32_66 dim 1 : vector<8x1024xf32>, i32 -> vector<8x1024xf32>
    %cst_67 = arith.constant 0.000000e+00 : f32
    %253 = vector.shape_cast %11 : vector<1x1024xi1> to vector<1x1024xi1>
    %254 = vector.broadcast %253 : vector<1x1024xi1> to vector<8x1024xi1>
    %255 = vector.broadcast %cst_67 : f32 to vector<8x1024xf32>
    %256 = arith.select %254, %252, %255 : vector<8x1024xi1>, vector<8x1024xf32>
    %257 = tpu.concatenate %251, %243, %256 in 0 : vector<8x1024xf32>, vector<8x1024xf32>, vector<8x1024xf32> -> vector<24x1024xf32>
    %cst_68 = arith.constant dense<0.000000e+00> : vector<32x1024xf32>
    %258 = tpu.matmul %244, %257, %cst_68 {dimension_numbers = #tpu.dot_dimension_numbers<[1], [0], [0], [1], [0, 0, 1, 1], [], []>} : vector<32x24xf32>, vector<24x1024xf32>, vector<32x1024xf32> -> vector<32x1024xf32>
    %259 = vector.broadcast %246 : vector<32x1xf32> to vector<32x1024xf32>
    %260 = arith.addf %258, %259 : vector<32x1024xf32>
    %cst_69 = arith.constant 0.000000e+00 : f32
    %261 = vector.broadcast %cst_69 : f32 to vector<8x128xf32>
    %262 = vector.extract_strided_slice %260 {offsets = [0, 0], sizes = [32, 128], strides = [1, 1]} : vector<32x1024xf32> to vector<32x128xf32>
    %263 = arith.negf %262 : vector<32x128xf32>
    %264 = math.exp %263 : vector<32x128xf32>
    %cst_70 = arith.constant 1.000000e+00 : f32
    %265 = vector.broadcast %cst_70 : f32 to vector<32x128xf32>
    %266 = arith.addf %265, %264 : vector<32x128xf32>
    %267 = arith.divf %265, %266 : vector<32x128xf32>
    %268 = vector.extract_strided_slice %267 {offsets = [0, 0], sizes = [8, 128], strides = [1, 1]} : vector<32x128xf32> to vector<8x128xf32>
    %269 = vector.extract_strided_slice %267 {offsets = [8, 0], sizes = [8, 128], strides = [1, 1]} : vector<32x128xf32> to vector<8x128xf32>
    %270 = vector.extract_strided_slice %267 {offsets = [16, 0], sizes = [8, 128], strides = [1, 1]} : vector<32x128xf32> to vector<8x128xf32>
    %271 = vector.extract_strided_slice %267 {offsets = [24, 0], sizes = [8, 128], strides = [1, 1]} : vector<32x128xf32> to vector<8x128xf32>
    %272 = arith.mulf %269, %261 : vector<8x128xf32>
    %273 = arith.mulf %268, %271 : vector<8x128xf32>
    %274 = arith.addf %272, %273 : vector<8x128xf32>
    %275 = math.tanh %274 : vector<8x128xf32>
    %276 = arith.mulf %270, %275 : vector<8x128xf32>
    %277 = vector.extract_strided_slice %260 {offsets = [0, 128], sizes = [32, 128], strides = [1, 1]} : vector<32x1024xf32> to vector<32x128xf32>
    %c1_i32_71 = arith.constant 1 : i32
    %278 = tpu.dynamic_rotate %276 by %c1_i32_71 dim 1 : vector<8x128xf32>, i32 -> vector<8x128xf32>
    %cst_72 = arith.constant 0.000000e+00 : f32
    %279 = vector.shape_cast %5 : vector<1x128xi1> to vector<1x128xi1>
    %280 = vector.broadcast %279 : vector<1x128xi1> to vector<8x128xi1>
    %281 = vector.broadcast %cst_72 : f32 to vector<8x128xf32>
    %282 = arith.select %280, %278, %281 : vector<8x128xi1>, vector<8x128xf32>
    %c127_i32_73 = arith.constant 127 : i32
    %283 = tpu.dynamic_rotate %276 by %c127_i32_73 dim 1 : vector<8x128xf32>, i32 -> vector<8x128xf32>
    %cst_74 = arith.constant 0.000000e+00 : f32
    %284 = vector.shape_cast %7 : vector<1x128xi1> to vector<1x128xi1>
    %285 = vector.broadcast %284 : vector<1x128xi1> to vector<8x128xi1>
    %286 = vector.broadcast %cst_74 : f32 to vector<8x128xf32>
    %287 = arith.select %285, %283, %286 : vector<8x128xi1>, vector<8x128xf32>
    %288 = tpu.concatenate %282, %276, %287 in 0 : vector<8x128xf32>, vector<8x128xf32>, vector<8x128xf32> -> vector<24x128xf32>
    %cst_75 = arith.constant dense<0.000000e+00> : vector<32x128xf32>
    %289 = tpu.matmul %245, %288, %cst_75 {dimension_numbers = #tpu.dot_dimension_numbers<[1], [0], [0], [1], [0, 0, 1, 1], [], []>} : vector<32x24xf32>, vector<24x128xf32>, vector<32x128xf32> -> vector<32x128xf32>
    %290 = arith.addf %277, %289 : vector<32x128xf32>
    %291 = arith.negf %290 : vector<32x128xf32>
    %292 = math.exp %291 : vector<32x128xf32>
    %cst_76 = arith.constant 1.000000e+00 : f32
    %293 = vector.broadcast %cst_76 : f32 to vector<32x128xf32>
    %294 = arith.addf %293, %292 : vector<32x128xf32>
    %295 = arith.divf %293, %294 : vector<32x128xf32>
    %296 = vector.extract_strided_slice %295 {offsets = [0, 0], sizes = [8, 128], strides = [1, 1]} : vector<32x128xf32> to vector<8x128xf32>
    %297 = vector.extract_strided_slice %295 {offsets = [8, 0], sizes = [8, 128], strides = [1, 1]} : vector<32x128xf32> to vector<8x128xf32>
    %298 = vector.extract_strided_slice %295 {offsets = [16, 0], sizes = [8, 128], strides = [1, 1]} : vector<32x128xf32> to vector<8x128xf32>
    %299 = vector.extract_strided_slice %295 {offsets = [24, 0], sizes = [8, 128], strides = [1, 1]} : vector<32x128xf32> to vector<8x128xf32>
    %300 = arith.mulf %297, %274 : vector<8x128xf32>
    %301 = arith.mulf %296, %299 : vector<8x128xf32>
    %302 = arith.addf %300, %301 : vector<8x128xf32>
    %303 = math.tanh %302 : vector<8x128xf32>
    %304 = arith.mulf %298, %303 : vector<8x128xf32>
    %305 = vector.extract_strided_slice %260 {offsets = [0, 256], sizes = [32, 128], strides = [1, 1]} : vector<32x1024xf32> to vector<32x128xf32>
    %c1_i32_77 = arith.constant 1 : i32
    %306 = tpu.dynamic_rotate %304 by %c1_i32_77 dim 1 : vector<8x128xf32>, i32 -> vector<8x128xf32>
    %cst_78 = arith.constant 0.000000e+00 : f32
    %307 = vector.shape_cast %5 : vector<1x128xi1> to vector<1x128xi1>
    %308 = vector.broadcast %307 : vector<1x128xi1> to vector<8x128xi1>
    %309 = vector.broadcast %cst_78 : f32 to vector<8x128xf32>
    %310 = arith.select %308, %306, %309 : vector<8x128xi1>, vector<8x128xf32>
    %c127_i32_79 = arith.constant 127 : i32
    %311 = tpu.dynamic_rotate %304 by %c127_i32_79 dim 1 : vector<8x128xf32>, i32 -> vector<8x128xf32>
    %cst_80 = arith.constant 0.000000e+00 : f32
    %312 = vector.shape_cast %7 : vector<1x128xi1> to vector<1x128xi1>
    %313 = vector.broadcast %312 : vector<1x128xi1> to vector<8x128xi1>
    %314 = vector.broadcast %cst_80 : f32 to vector<8x128xf32>
    %315 = arith.select %313, %311, %314 : vector<8x128xi1>, vector<8x128xf32>
    %316 = tpu.concatenate %310, %304, %315 in 0 : vector<8x128xf32>, vector<8x128xf32>, vector<8x128xf32> -> vector<24x128xf32>
    %cst_81 = arith.constant dense<0.000000e+00> : vector<32x128xf32>
    %317 = tpu.matmul %245, %316, %cst_81 {dimension_numbers = #tpu.dot_dimension_numbers<[1], [0], [0], [1], [0, 0, 1, 1], [], []>} : vector<32x24xf32>, vector<24x128xf32>, vector<32x128xf32> -> vector<32x128xf32>
    %318 = arith.addf %305, %317 : vector<32x128xf32>
    %319 = arith.negf %318 : vector<32x128xf32>
    %320 = math.exp %319 : vector<32x128xf32>
    %cst_82 = arith.constant 1.000000e+00 : f32
    %321 = vector.broadcast %cst_82 : f32 to vector<32x128xf32>
    %322 = arith.addf %321, %320 : vector<32x128xf32>
    %323 = arith.divf %321, %322 : vector<32x128xf32>
    %324 = vector.extract_strided_slice %323 {offsets = [0, 0], sizes = [8, 128], strides = [1, 1]} : vector<32x128xf32> to vector<8x128xf32>
    %325 = vector.extract_strided_slice %323 {offsets = [8, 0], sizes = [8, 128], strides = [1, 1]} : vector<32x128xf32> to vector<8x128xf32>
    %326 = vector.extract_strided_slice %323 {offsets = [16, 0], sizes = [8, 128], strides = [1, 1]} : vector<32x128xf32> to vector<8x128xf32>
    %327 = vector.extract_strided_slice %323 {offsets = [24, 0], sizes = [8, 128], strides = [1, 1]} : vector<32x128xf32> to vector<8x128xf32>
    %328 = arith.mulf %325, %302 : vector<8x128xf32>
    %329 = arith.mulf %324, %327 : vector<8x128xf32>
    %330 = arith.addf %328, %329 : vector<8x128xf32>
    %331 = math.tanh %330 : vector<8x128xf32>
    %332 = arith.mulf %326, %331 : vector<8x128xf32>
    %333 = vector.extract_strided_slice %260 {offsets = [0, 384], sizes = [32, 128], strides = [1, 1]} : vector<32x1024xf32> to vector<32x128xf32>
    %c1_i32_83 = arith.constant 1 : i32
    %334 = tpu.dynamic_rotate %332 by %c1_i32_83 dim 1 : vector<8x128xf32>, i32 -> vector<8x128xf32>
    %cst_84 = arith.constant 0.000000e+00 : f32
    %335 = vector.shape_cast %5 : vector<1x128xi1> to vector<1x128xi1>
    %336 = vector.broadcast %335 : vector<1x128xi1> to vector<8x128xi1>
    %337 = vector.broadcast %cst_84 : f32 to vector<8x128xf32>
    %338 = arith.select %336, %334, %337 : vector<8x128xi1>, vector<8x128xf32>
    %c127_i32_85 = arith.constant 127 : i32
    %339 = tpu.dynamic_rotate %332 by %c127_i32_85 dim 1 : vector<8x128xf32>, i32 -> vector<8x128xf32>
    %cst_86 = arith.constant 0.000000e+00 : f32
    %340 = vector.shape_cast %7 : vector<1x128xi1> to vector<1x128xi1>
    %341 = vector.broadcast %340 : vector<1x128xi1> to vector<8x128xi1>
    %342 = vector.broadcast %cst_86 : f32 to vector<8x128xf32>
    %343 = arith.select %341, %339, %342 : vector<8x128xi1>, vector<8x128xf32>
    %344 = tpu.concatenate %338, %332, %343 in 0 : vector<8x128xf32>, vector<8x128xf32>, vector<8x128xf32> -> vector<24x128xf32>
    %cst_87 = arith.constant dense<0.000000e+00> : vector<32x128xf32>
    %345 = tpu.matmul %245, %344, %cst_87 {dimension_numbers = #tpu.dot_dimension_numbers<[1], [0], [0], [1], [0, 0, 1, 1], [], []>} : vector<32x24xf32>, vector<24x128xf32>, vector<32x128xf32> -> vector<32x128xf32>
    %346 = arith.addf %333, %345 : vector<32x128xf32>
    %347 = arith.negf %346 : vector<32x128xf32>
    %348 = math.exp %347 : vector<32x128xf32>
    %cst_88 = arith.constant 1.000000e+00 : f32
    %349 = vector.broadcast %cst_88 : f32 to vector<32x128xf32>
    %350 = arith.addf %349, %348 : vector<32x128xf32>
    %351 = arith.divf %349, %350 : vector<32x128xf32>
    %352 = vector.extract_strided_slice %351 {offsets = [0, 0], sizes = [8, 128], strides = [1, 1]} : vector<32x128xf32> to vector<8x128xf32>
    %353 = vector.extract_strided_slice %351 {offsets = [8, 0], sizes = [8, 128], strides = [1, 1]} : vector<32x128xf32> to vector<8x128xf32>
    %354 = vector.extract_strided_slice %351 {offsets = [16, 0], sizes = [8, 128], strides = [1, 1]} : vector<32x128xf32> to vector<8x128xf32>
    %355 = vector.extract_strided_slice %351 {offsets = [24, 0], sizes = [8, 128], strides = [1, 1]} : vector<32x128xf32> to vector<8x128xf32>
    %356 = arith.mulf %353, %330 : vector<8x128xf32>
    %357 = arith.mulf %352, %355 : vector<8x128xf32>
    %358 = arith.addf %356, %357 : vector<8x128xf32>
    %359 = math.tanh %358 : vector<8x128xf32>
    %360 = arith.mulf %354, %359 : vector<8x128xf32>
    %361 = vector.extract_strided_slice %260 {offsets = [0, 512], sizes = [32, 128], strides = [1, 1]} : vector<32x1024xf32> to vector<32x128xf32>
    %c1_i32_89 = arith.constant 1 : i32
    %362 = tpu.dynamic_rotate %360 by %c1_i32_89 dim 1 : vector<8x128xf32>, i32 -> vector<8x128xf32>
    %cst_90 = arith.constant 0.000000e+00 : f32
    %363 = vector.shape_cast %5 : vector<1x128xi1> to vector<1x128xi1>
    %364 = vector.broadcast %363 : vector<1x128xi1> to vector<8x128xi1>
    %365 = vector.broadcast %cst_90 : f32 to vector<8x128xf32>
    %366 = arith.select %364, %362, %365 : vector<8x128xi1>, vector<8x128xf32>
    %c127_i32_91 = arith.constant 127 : i32
    %367 = tpu.dynamic_rotate %360 by %c127_i32_91 dim 1 : vector<8x128xf32>, i32 -> vector<8x128xf32>
    %cst_92 = arith.constant 0.000000e+00 : f32
    %368 = vector.shape_cast %7 : vector<1x128xi1> to vector<1x128xi1>
    %369 = vector.broadcast %368 : vector<1x128xi1> to vector<8x128xi1>
    %370 = vector.broadcast %cst_92 : f32 to vector<8x128xf32>
    %371 = arith.select %369, %367, %370 : vector<8x128xi1>, vector<8x128xf32>
    %372 = tpu.concatenate %366, %360, %371 in 0 : vector<8x128xf32>, vector<8x128xf32>, vector<8x128xf32> -> vector<24x128xf32>
    %cst_93 = arith.constant dense<0.000000e+00> : vector<32x128xf32>
    %373 = tpu.matmul %245, %372, %cst_93 {dimension_numbers = #tpu.dot_dimension_numbers<[1], [0], [0], [1], [0, 0, 1, 1], [], []>} : vector<32x24xf32>, vector<24x128xf32>, vector<32x128xf32> -> vector<32x128xf32>
    %374 = arith.addf %361, %373 : vector<32x128xf32>
    %375 = arith.negf %374 : vector<32x128xf32>
    %376 = math.exp %375 : vector<32x128xf32>
    %cst_94 = arith.constant 1.000000e+00 : f32
    %377 = vector.broadcast %cst_94 : f32 to vector<32x128xf32>
    %378 = arith.addf %377, %376 : vector<32x128xf32>
    %379 = arith.divf %377, %378 : vector<32x128xf32>
    %380 = vector.extract_strided_slice %379 {offsets = [0, 0], sizes = [8, 128], strides = [1, 1]} : vector<32x128xf32> to vector<8x128xf32>
    %381 = vector.extract_strided_slice %379 {offsets = [8, 0], sizes = [8, 128], strides = [1, 1]} : vector<32x128xf32> to vector<8x128xf32>
    %382 = vector.extract_strided_slice %379 {offsets = [16, 0], sizes = [8, 128], strides = [1, 1]} : vector<32x128xf32> to vector<8x128xf32>
    %383 = vector.extract_strided_slice %379 {offsets = [24, 0], sizes = [8, 128], strides = [1, 1]} : vector<32x128xf32> to vector<8x128xf32>
    %384 = arith.mulf %381, %358 : vector<8x128xf32>
    %385 = arith.mulf %380, %383 : vector<8x128xf32>
    %386 = arith.addf %384, %385 : vector<8x128xf32>
    %387 = math.tanh %386 : vector<8x128xf32>
    %388 = arith.mulf %382, %387 : vector<8x128xf32>
    %389 = vector.extract_strided_slice %260 {offsets = [0, 640], sizes = [32, 128], strides = [1, 1]} : vector<32x1024xf32> to vector<32x128xf32>
    %c1_i32_95 = arith.constant 1 : i32
    %390 = tpu.dynamic_rotate %388 by %c1_i32_95 dim 1 : vector<8x128xf32>, i32 -> vector<8x128xf32>
    %cst_96 = arith.constant 0.000000e+00 : f32
    %391 = vector.shape_cast %5 : vector<1x128xi1> to vector<1x128xi1>
    %392 = vector.broadcast %391 : vector<1x128xi1> to vector<8x128xi1>
    %393 = vector.broadcast %cst_96 : f32 to vector<8x128xf32>
    %394 = arith.select %392, %390, %393 : vector<8x128xi1>, vector<8x128xf32>
    %c127_i32_97 = arith.constant 127 : i32
    %395 = tpu.dynamic_rotate %388 by %c127_i32_97 dim 1 : vector<8x128xf32>, i32 -> vector<8x128xf32>
    %cst_98 = arith.constant 0.000000e+00 : f32
    %396 = vector.shape_cast %7 : vector<1x128xi1> to vector<1x128xi1>
    %397 = vector.broadcast %396 : vector<1x128xi1> to vector<8x128xi1>
    %398 = vector.broadcast %cst_98 : f32 to vector<8x128xf32>
    %399 = arith.select %397, %395, %398 : vector<8x128xi1>, vector<8x128xf32>
    %400 = tpu.concatenate %394, %388, %399 in 0 : vector<8x128xf32>, vector<8x128xf32>, vector<8x128xf32> -> vector<24x128xf32>
    %cst_99 = arith.constant dense<0.000000e+00> : vector<32x128xf32>
    %401 = tpu.matmul %245, %400, %cst_99 {dimension_numbers = #tpu.dot_dimension_numbers<[1], [0], [0], [1], [0, 0, 1, 1], [], []>} : vector<32x24xf32>, vector<24x128xf32>, vector<32x128xf32> -> vector<32x128xf32>
    %402 = arith.addf %389, %401 : vector<32x128xf32>
    %403 = arith.negf %402 : vector<32x128xf32>
    %404 = math.exp %403 : vector<32x128xf32>
    %cst_100 = arith.constant 1.000000e+00 : f32
    %405 = vector.broadcast %cst_100 : f32 to vector<32x128xf32>
    %406 = arith.addf %405, %404 : vector<32x128xf32>
    %407 = arith.divf %405, %406 : vector<32x128xf32>
    %408 = vector.extract_strided_slice %407 {offsets = [0, 0], sizes = [8, 128], strides = [1, 1]} : vector<32x128xf32> to vector<8x128xf32>
    %409 = vector.extract_strided_slice %407 {offsets = [8, 0], sizes = [8, 128], strides = [1, 1]} : vector<32x128xf32> to vector<8x128xf32>
    %410 = vector.extract_strided_slice %407 {offsets = [16, 0], sizes = [8, 128], strides = [1, 1]} : vector<32x128xf32> to vector<8x128xf32>
    %411 = vector.extract_strided_slice %407 {offsets = [24, 0], sizes = [8, 128], strides = [1, 1]} : vector<32x128xf32> to vector<8x128xf32>
    %412 = arith.mulf %409, %386 : vector<8x128xf32>
    %413 = arith.mulf %408, %411 : vector<8x128xf32>
    %414 = arith.addf %412, %413 : vector<8x128xf32>
    %415 = math.tanh %414 : vector<8x128xf32>
    %416 = arith.mulf %410, %415 : vector<8x128xf32>
    %417 = vector.extract_strided_slice %260 {offsets = [0, 768], sizes = [32, 128], strides = [1, 1]} : vector<32x1024xf32> to vector<32x128xf32>
    %c1_i32_101 = arith.constant 1 : i32
    %418 = tpu.dynamic_rotate %416 by %c1_i32_101 dim 1 : vector<8x128xf32>, i32 -> vector<8x128xf32>
    %cst_102 = arith.constant 0.000000e+00 : f32
    %419 = vector.shape_cast %5 : vector<1x128xi1> to vector<1x128xi1>
    %420 = vector.broadcast %419 : vector<1x128xi1> to vector<8x128xi1>
    %421 = vector.broadcast %cst_102 : f32 to vector<8x128xf32>
    %422 = arith.select %420, %418, %421 : vector<8x128xi1>, vector<8x128xf32>
    %c127_i32_103 = arith.constant 127 : i32
    %423 = tpu.dynamic_rotate %416 by %c127_i32_103 dim 1 : vector<8x128xf32>, i32 -> vector<8x128xf32>
    %cst_104 = arith.constant 0.000000e+00 : f32
    %424 = vector.shape_cast %7 : vector<1x128xi1> to vector<1x128xi1>
    %425 = vector.broadcast %424 : vector<1x128xi1> to vector<8x128xi1>
    %426 = vector.broadcast %cst_104 : f32 to vector<8x128xf32>
    %427 = arith.select %425, %423, %426 : vector<8x128xi1>, vector<8x128xf32>
    %428 = tpu.concatenate %422, %416, %427 in 0 : vector<8x128xf32>, vector<8x128xf32>, vector<8x128xf32> -> vector<24x128xf32>
    %cst_105 = arith.constant dense<0.000000e+00> : vector<32x128xf32>
    %429 = tpu.matmul %245, %428, %cst_105 {dimension_numbers = #tpu.dot_dimension_numbers<[1], [0], [0], [1], [0, 0, 1, 1], [], []>} : vector<32x24xf32>, vector<24x128xf32>, vector<32x128xf32> -> vector<32x128xf32>
    %430 = arith.addf %417, %429 : vector<32x128xf32>
    %431 = arith.negf %430 : vector<32x128xf32>
    %432 = math.exp %431 : vector<32x128xf32>
    %cst_106 = arith.constant 1.000000e+00 : f32
    %433 = vector.broadcast %cst_106 : f32 to vector<32x128xf32>
    %434 = arith.addf %433, %432 : vector<32x128xf32>
    %435 = arith.divf %433, %434 : vector<32x128xf32>
    %436 = vector.extract_strided_slice %435 {offsets = [0, 0], sizes = [8, 128], strides = [1, 1]} : vector<32x128xf32> to vector<8x128xf32>
    %437 = vector.extract_strided_slice %435 {offsets = [8, 0], sizes = [8, 128], strides = [1, 1]} : vector<32x128xf32> to vector<8x128xf32>
    %438 = vector.extract_strided_slice %435 {offsets = [16, 0], sizes = [8, 128], strides = [1, 1]} : vector<32x128xf32> to vector<8x128xf32>
    %439 = vector.extract_strided_slice %435 {offsets = [24, 0], sizes = [8, 128], strides = [1, 1]} : vector<32x128xf32> to vector<8x128xf32>
    %440 = arith.mulf %437, %414 : vector<8x128xf32>
    %441 = arith.mulf %436, %439 : vector<8x128xf32>
    %442 = arith.addf %440, %441 : vector<8x128xf32>
    %443 = math.tanh %442 : vector<8x128xf32>
    %444 = arith.mulf %438, %443 : vector<8x128xf32>
    %445 = vector.extract_strided_slice %260 {offsets = [0, 896], sizes = [32, 128], strides = [1, 1]} : vector<32x1024xf32> to vector<32x128xf32>
    %c1_i32_107 = arith.constant 1 : i32
    %446 = tpu.dynamic_rotate %444 by %c1_i32_107 dim 1 : vector<8x128xf32>, i32 -> vector<8x128xf32>
    %cst_108 = arith.constant 0.000000e+00 : f32
    %447 = vector.shape_cast %5 : vector<1x128xi1> to vector<1x128xi1>
    %448 = vector.broadcast %447 : vector<1x128xi1> to vector<8x128xi1>
    %449 = vector.broadcast %cst_108 : f32 to vector<8x128xf32>
    %450 = arith.select %448, %446, %449 : vector<8x128xi1>, vector<8x128xf32>
    %c127_i32_109 = arith.constant 127 : i32
    %451 = tpu.dynamic_rotate %444 by %c127_i32_109 dim 1 : vector<8x128xf32>, i32 -> vector<8x128xf32>
    %cst_110 = arith.constant 0.000000e+00 : f32
    %452 = vector.shape_cast %7 : vector<1x128xi1> to vector<1x128xi1>
    %453 = vector.broadcast %452 : vector<1x128xi1> to vector<8x128xi1>
    %454 = vector.broadcast %cst_110 : f32 to vector<8x128xf32>
    %455 = arith.select %453, %451, %454 : vector<8x128xi1>, vector<8x128xf32>
    %456 = tpu.concatenate %450, %444, %455 in 0 : vector<8x128xf32>, vector<8x128xf32>, vector<8x128xf32> -> vector<24x128xf32>
    %cst_111 = arith.constant dense<0.000000e+00> : vector<32x128xf32>
    %457 = tpu.matmul %245, %456, %cst_111 {dimension_numbers = #tpu.dot_dimension_numbers<[1], [0], [0], [1], [0, 0, 1, 1], [], []>} : vector<32x24xf32>, vector<24x128xf32>, vector<32x128xf32> -> vector<32x128xf32>
    %458 = arith.addf %445, %457 : vector<32x128xf32>
    %459 = arith.negf %458 : vector<32x128xf32>
    %460 = math.exp %459 : vector<32x128xf32>
    %cst_112 = arith.constant 1.000000e+00 : f32
    %461 = vector.broadcast %cst_112 : f32 to vector<32x128xf32>
    %462 = arith.addf %461, %460 : vector<32x128xf32>
    %463 = arith.divf %461, %462 : vector<32x128xf32>
    %464 = vector.extract_strided_slice %463 {offsets = [0, 0], sizes = [8, 128], strides = [1, 1]} : vector<32x128xf32> to vector<8x128xf32>
    %465 = vector.extract_strided_slice %463 {offsets = [8, 0], sizes = [8, 128], strides = [1, 1]} : vector<32x128xf32> to vector<8x128xf32>
    %466 = vector.extract_strided_slice %463 {offsets = [16, 0], sizes = [8, 128], strides = [1, 1]} : vector<32x128xf32> to vector<8x128xf32>
    %467 = vector.extract_strided_slice %463 {offsets = [24, 0], sizes = [8, 128], strides = [1, 1]} : vector<32x128xf32> to vector<8x128xf32>
    %468 = arith.mulf %465, %442 : vector<8x128xf32>
    %469 = arith.mulf %464, %467 : vector<8x128xf32>
    %470 = arith.addf %468, %469 : vector<8x128xf32>
    %471 = math.tanh %470 : vector<8x128xf32>
    %472 = arith.mulf %466, %471 : vector<8x128xf32>
    %473 = vector.extract_strided_slice %472 {offsets = [0, 0], sizes = [1, 128], strides = [1, 1]} : vector<8x128xf32> to vector<1x128xf32>
    %474 = vector.extract_strided_slice %472 {offsets = [1, 0], sizes = [1, 128], strides = [1, 1]} : vector<8x128xf32> to vector<1x128xf32>
    %475 = arith.maximumf %473, %474 : vector<1x128xf32>
    %476 = vector.extract_strided_slice %472 {offsets = [2, 0], sizes = [1, 128], strides = [1, 1]} : vector<8x128xf32> to vector<1x128xf32>
    %477 = arith.maximumf %475, %476 : vector<1x128xf32>
    %478 = vector.extract_strided_slice %472 {offsets = [0, 0], sizes = [1, 128], strides = [1, 1]} : vector<8x128xf32> to vector<1x128xf32>
    %479 = vector.extract_strided_slice %472 {offsets = [1, 0], sizes = [1, 128], strides = [1, 1]} : vector<8x128xf32> to vector<1x128xf32>
    %480 = arith.maximumf %478, %479 : vector<1x128xf32>
    %481 = vector.extract_strided_slice %472 {offsets = [2, 0], sizes = [1, 128], strides = [1, 1]} : vector<8x128xf32> to vector<1x128xf32>
    %482 = arith.maximumf %480, %481 : vector<1x128xf32>
    %483 = vector.extract_strided_slice %472 {offsets = [3, 0], sizes = [1, 128], strides = [1, 1]} : vector<8x128xf32> to vector<1x128xf32>
    %484 = arith.maximumf %482, %483 : vector<1x128xf32>
    %485 = vector.extract_strided_slice %472 {offsets = [4, 0], sizes = [1, 128], strides = [1, 1]} : vector<8x128xf32> to vector<1x128xf32>
    %486 = arith.maximumf %484, %485 : vector<1x128xf32>
    %487 = vector.extract_strided_slice %472 {offsets = [2, 0], sizes = [1, 128], strides = [1, 1]} : vector<8x128xf32> to vector<1x128xf32>
    %488 = vector.extract_strided_slice %472 {offsets = [3, 0], sizes = [1, 128], strides = [1, 1]} : vector<8x128xf32> to vector<1x128xf32>
    %489 = arith.maximumf %487, %488 : vector<1x128xf32>
    %490 = vector.extract_strided_slice %472 {offsets = [4, 0], sizes = [1, 128], strides = [1, 1]} : vector<8x128xf32> to vector<1x128xf32>
    %491 = arith.maximumf %489, %490 : vector<1x128xf32>
    %492 = vector.extract_strided_slice %472 {offsets = [5, 0], sizes = [1, 128], strides = [1, 1]} : vector<8x128xf32> to vector<1x128xf32>
    %493 = arith.maximumf %491, %492 : vector<1x128xf32>
    %494 = vector.extract_strided_slice %472 {offsets = [6, 0], sizes = [1, 128], strides = [1, 1]} : vector<8x128xf32> to vector<1x128xf32>
    %495 = arith.maximumf %493, %494 : vector<1x128xf32>
    %496 = vector.extract_strided_slice %472 {offsets = [4, 0], sizes = [1, 128], strides = [1, 1]} : vector<8x128xf32> to vector<1x128xf32>
    %497 = vector.extract_strided_slice %472 {offsets = [5, 0], sizes = [1, 128], strides = [1, 1]} : vector<8x128xf32> to vector<1x128xf32>
    %498 = arith.maximumf %496, %497 : vector<1x128xf32>
    %499 = vector.extract_strided_slice %472 {offsets = [6, 0], sizes = [1, 128], strides = [1, 1]} : vector<8x128xf32> to vector<1x128xf32>
    %500 = arith.maximumf %498, %499 : vector<1x128xf32>
    %501 = vector.extract_strided_slice %472 {offsets = [7, 0], sizes = [1, 128], strides = [1, 1]} : vector<8x128xf32> to vector<1x128xf32>
    %502 = arith.maximumf %500, %501 : vector<1x128xf32>
    %503 = tpu.concatenate %477, %486, %495, %502 in 0 : vector<1x128xf32>, vector<1x128xf32>, vector<1x128xf32>, vector<1x128xf32> -> vector<4x128xf32>
    %c2_i32 = arith.constant 2 : i32
    %504 = tpu.dynamic_rotate %503 by %c2_i32 dim 1 : vector<4x128xf32>, i32 -> vector<4x128xf32>
    %c2_i32_113 = arith.constant 2 : i32
    %505 = vector.broadcast %c2_i32_113 : i32 to vector<1x128xi32>
    %506 = arith.cmpi sge, %0, %505 : vector<1x128xi32>
    %cst_114 = arith.constant -1.000000e+30 : f32
    %507 = vector.shape_cast %506 : vector<1x128xi1> to vector<1x128xi1>
    %508 = vector.broadcast %507 : vector<1x128xi1> to vector<4x128xi1>
    %509 = vector.broadcast %cst_114 : f32 to vector<4x128xf32>
    %510 = arith.select %508, %504, %509 : vector<4x128xi1>, vector<4x128xf32>
    %511 = arith.maximumf %503, %510 : vector<4x128xf32>
    %c1_i32_115 = arith.constant 1 : i32
    %512 = tpu.dynamic_rotate %503 by %c1_i32_115 dim 1 : vector<4x128xf32>, i32 -> vector<4x128xf32>
    %c1_i32_116 = arith.constant 1 : i32
    %513 = vector.broadcast %c1_i32_116 : i32 to vector<1x128xi32>
    %514 = arith.cmpi sge, %0, %513 : vector<1x128xi32>
    %cst_117 = arith.constant -1.000000e+30 : f32
    %515 = vector.shape_cast %514 : vector<1x128xi1> to vector<1x128xi1>
    %516 = vector.broadcast %515 : vector<1x128xi1> to vector<4x128xi1>
    %517 = vector.broadcast %cst_117 : f32 to vector<4x128xf32>
    %518 = arith.select %516, %512, %517 : vector<4x128xi1>, vector<4x128xf32>
    %519 = arith.maximumf %511, %518 : vector<4x128xf32>
    %c127_i32_118 = arith.constant 127 : i32
    %520 = tpu.dynamic_rotate %503 by %c127_i32_118 dim 1 : vector<4x128xf32>, i32 -> vector<4x128xf32>
    %c127_i32_119 = arith.constant 127 : i32
    %521 = vector.broadcast %c127_i32_119 : i32 to vector<1x128xi32>
    %522 = arith.cmpi slt, %0, %521 : vector<1x128xi32>
    %cst_120 = arith.constant -1.000000e+30 : f32
    %523 = vector.shape_cast %522 : vector<1x128xi1> to vector<1x128xi1>
    %524 = vector.broadcast %523 : vector<1x128xi1> to vector<4x128xi1>
    %525 = vector.broadcast %cst_120 : f32 to vector<4x128xf32>
    %526 = arith.select %524, %520, %525 : vector<4x128xi1>, vector<4x128xf32>
    %527 = arith.maximumf %519, %526 : vector<4x128xf32>
    %c126_i32 = arith.constant 126 : i32
    %528 = tpu.dynamic_rotate %503 by %c126_i32 dim 1 : vector<4x128xf32>, i32 -> vector<4x128xf32>
    %c126_i32_121 = arith.constant 126 : i32
    %529 = vector.broadcast %c126_i32_121 : i32 to vector<1x128xi32>
    %530 = arith.cmpi slt, %0, %529 : vector<1x128xi32>
    %cst_122 = arith.constant -1.000000e+30 : f32
    %531 = vector.shape_cast %530 : vector<1x128xi1> to vector<1x128xi1>
    %532 = vector.broadcast %531 : vector<1x128xi1> to vector<4x128xi1>
    %533 = vector.broadcast %cst_122 : f32 to vector<4x128xf32>
    %534 = arith.select %532, %528, %533 : vector<4x128xi1>, vector<4x128xf32>
    %535 = arith.maximumf %527, %534 : vector<4x128xf32>
    %536 = tpu.iota {dimensions = array<i32: 0>} : vector<128x64xi32>
    %537 = tpu.iota {dimensions = array<i32: 1>} : vector<128x64xi32>
    %c2_i32_123 = arith.constant 2 : i32
    %538 = vector.broadcast %c2_i32_123 : i32 to vector<128x64xi32>
    %539 = arith.muli %538, %537 : vector<128x64xi32>
    %540 = arith.cmpi eq, %536, %539 : vector<128x64xi32>
    %cst_124 = arith.constant 1.000000e+00 : f32
    %cst_125 = arith.constant 0.000000e+00 : f32
    %541 = vector.broadcast %cst_124 : f32 to vector<128x64xf32>
    %542 = vector.broadcast %cst_125 : f32 to vector<128x64xf32>
    %543 = arith.select %540, %541, %542 : vector<128x64xi1>, vector<128x64xf32>
    %cst_126 = arith.constant dense<0.000000e+00> : vector<4x64xf32>
    %544 = tpu.matmul %535, %543, %cst_126 {dimension_numbers = #tpu.dot_dimension_numbers<[1], [0], [0], [1], [0, 0, 1, 1], [], []>} : vector<4x128xf32>, vector<128x64xf32>, vector<4x64xf32> -> vector<4x64xf32>
    %c0_127 = arith.constant 0 : index
    %c0_128 = arith.constant 0 : index
    %545 = vector.load %arg9[%c0_127, %c0_128] : memref<1x128xf32, #tpu.memory_space<vmem>>, vector<1x128xf32>
    %546 = vector.extract_strided_slice %544 {offsets = [0, 0], sizes = [1, 64], strides = [1, 1]} : vector<4x64xf32> to vector<1x64xf32>
    %c0_129 = arith.constant 0 : index
    %c0_130 = arith.constant 0 : index
    %c0_131 = arith.constant 0 : index
    %547 = vector.load %arg8[%c0_129, %c0_130, %c0_131] : memref<4x64x128xf32, #tpu.memory_space<vmem>>, vector<1x64x128xf32>
    %548 = vector.shape_cast %547 : vector<1x64x128xf32> to vector<64x128xf32>
    %cst_132 = arith.constant dense<0.000000e+00> : vector<1x128xf32>
    %549 = tpu.matmul %546, %548, %cst_132 {dimension_numbers = #tpu.dot_dimension_numbers<[1], [0], [0], [1], [0, 0, 1, 1], [], []>} : vector<1x64xf32>, vector<64x128xf32>, vector<1x128xf32> -> vector<1x128xf32>
    %550 = arith.addf %545, %549 : vector<1x128xf32>
    %551 = vector.extract_strided_slice %544 {offsets = [1, 0], sizes = [1, 64], strides = [1, 1]} : vector<4x64xf32> to vector<1x64xf32>
    %c1 = arith.constant 1 : index
    %c0_133 = arith.constant 0 : index
    %c0_134 = arith.constant 0 : index
    %552 = vector.load %arg8[%c1, %c0_133, %c0_134] : memref<4x64x128xf32, #tpu.memory_space<vmem>>, vector<1x64x128xf32>
    %553 = vector.shape_cast %552 : vector<1x64x128xf32> to vector<64x128xf32>
    %cst_135 = arith.constant dense<0.000000e+00> : vector<1x128xf32>
    %554 = tpu.matmul %551, %553, %cst_135 {dimension_numbers = #tpu.dot_dimension_numbers<[1], [0], [0], [1], [0, 0, 1, 1], [], []>} : vector<1x64xf32>, vector<64x128xf32>, vector<1x128xf32> -> vector<1x128xf32>
    %555 = arith.addf %550, %554 : vector<1x128xf32>
    %556 = vector.extract_strided_slice %544 {offsets = [2, 0], sizes = [1, 64], strides = [1, 1]} : vector<4x64xf32> to vector<1x64xf32>
    %c2 = arith.constant 2 : index
    %c0_136 = arith.constant 0 : index
    %c0_137 = arith.constant 0 : index
    %557 = vector.load %arg8[%c2, %c0_136, %c0_137] : memref<4x64x128xf32, #tpu.memory_space<vmem>>, vector<1x64x128xf32>
    %558 = vector.shape_cast %557 : vector<1x64x128xf32> to vector<64x128xf32>
    %cst_138 = arith.constant dense<0.000000e+00> : vector<1x128xf32>
    %559 = tpu.matmul %556, %558, %cst_138 {dimension_numbers = #tpu.dot_dimension_numbers<[1], [0], [0], [1], [0, 0, 1, 1], [], []>} : vector<1x64xf32>, vector<64x128xf32>, vector<1x128xf32> -> vector<1x128xf32>
    %560 = arith.addf %555, %559 : vector<1x128xf32>
    %561 = vector.extract_strided_slice %544 {offsets = [3, 0], sizes = [1, 64], strides = [1, 1]} : vector<4x64xf32> to vector<1x64xf32>
    %c3 = arith.constant 3 : index
    %c0_139 = arith.constant 0 : index
    %c0_140 = arith.constant 0 : index
    %562 = vector.load %arg8[%c3, %c0_139, %c0_140] : memref<4x64x128xf32, #tpu.memory_space<vmem>>, vector<1x64x128xf32>
    %563 = vector.shape_cast %562 : vector<1x64x128xf32> to vector<64x128xf32>
    %cst_141 = arith.constant dense<0.000000e+00> : vector<1x128xf32>
    %564 = tpu.matmul %561, %563, %cst_141 {dimension_numbers = #tpu.dot_dimension_numbers<[1], [0], [0], [1], [0, 0, 1, 1], [], []>} : vector<1x64xf32>, vector<64x128xf32>, vector<1x128xf32> -> vector<1x128xf32>
    %565 = arith.addf %560, %564 : vector<1x128xf32>
    %c0_142 = arith.constant 0 : index
    %c0_143 = arith.constant 0 : index
    %c0_144 = arith.constant 0 : index
    %566 = vector.load %arg10[%c0_142, %c0_143, %c0_144] : memref<1x1x128xf32, #tpu.memory_space<vmem>>, vector<1x1x128xf32>
    %567 = vector.shape_cast %566 : vector<1x1x128xf32> to vector<1x128xf32>
    %568 = vector.shape_cast %565 : vector<1x128xf32> to vector<1x1x128xf32>
    tpu.vector_store %arg10[%c0_142, %c0_143, %c0_144], %568 {strides = array<i32>} : memref<1x1x128xf32, #tpu.memory_space<vmem>>, vector<1x1x128xf32>,
    return
  }
  func.func @transform_0(%arg0: i32) -> (i32, i32, i32) {
    %c0_i32 = arith.constant 0 : i32
    %c0_i32_0 = arith.constant 0 : i32
    %c0_i32_1 = arith.constant 0 : i32
    return %arg0, %c0_i32, %c0_i32_0 : i32, i32, i32
  }
  func.func @transform_1(%arg0: i32) -> (i32, i32) {
    %c0_i32 = arith.constant 0 : i32
    %c0_i32_0 = arith.constant 0 : i32
    %c0_i32_1 = arith.constant 0 : i32
    return %c0_i32, %c0_i32_0 : i32, i32
  }
  func.func @transform_2(%arg0: i32) -> (i32, i32) {
    %c0_i32 = arith.constant 0 : i32
    %c0_i32_0 = arith.constant 0 : i32
    %c0_i32_1 = arith.constant 0 : i32
    return %c0_i32, %c0_i32_0 : i32, i32
  }
  func.func @transform_3(%arg0: i32) -> (i32, i32) {
    %c0_i32 = arith.constant 0 : i32
    %c0_i32_0 = arith.constant 0 : i32
    %c0_i32_1 = arith.constant 0 : i32
    return %c0_i32, %c0_i32_0 : i32, i32
  }
  func.func @transform_4(%arg0: i32) -> (i32, i32) {
    %c0_i32 = arith.constant 0 : i32
    %c0_i32_0 = arith.constant 0 : i32
    %c0_i32_1 = arith.constant 0 : i32
    return %c0_i32, %c0_i32_0 : i32, i32
  }
  func.func @transform_5(%arg0: i32) -> (i32, i32) {
    %c0_i32 = arith.constant 0 : i32
    %c0_i32_0 = arith.constant 0 : i32
    %c0_i32_1 = arith.constant 0 : i32
    return %c0_i32, %c0_i32_0 : i32, i32
  }
  func.func @transform_6(%arg0: i32) -> (i32, i32) {
    %c0_i32 = arith.constant 0 : i32
    %c0_i32_0 = arith.constant 0 : i32
    %c0_i32_1 = arith.constant 0 : i32
    return %c0_i32, %c0_i32_0 : i32, i32
  }
  func.func @transform_7(%arg0: i32) -> (i32, i32, i32) {
    %c0_i32 = arith.constant 0 : i32
    %c0_i32_0 = arith.constant 0 : i32
    %c0_i32_1 = arith.constant 0 : i32
    %c0_i32_2 = arith.constant 0 : i32
    return %c0_i32, %c0_i32_0, %c0_i32_1 : i32, i32, i32
  }
  func.func @transform_8(%arg0: i32) -> (i32, i32) {
    %c0_i32 = arith.constant 0 : i32
    %c0_i32_0 = arith.constant 0 : i32
    %c0_i32_1 = arith.constant 0 : i32
    return %c0_i32, %c0_i32_0 : i32, i32
  }
  func.func @transform_9(%arg0: i32) -> (i32, i32, i32) {
    %c0_i32 = arith.constant 0 : i32
    %c0_i32_0 = arith.constant 0 : i32
    %c0_i32_1 = arith.constant 0 : i32
    return %arg0, %c0_i32, %c0_i32_0 : i32, i32, i32
  }
}

</mosaic_0001>

<bundles_post_ra>
// kernel: tpu_custom_call.1
= control target key start
LH: loop header
LB: loop body
LE: loop exit
PB: predicated region body
PF: predicated region fallthrough
CT: control target
= control target key end

     0   :  { %14 = vsyncpa [#allocation3], 0  ;;  %s6636_s0 = inlined_call_operand.hbm [shape: f32[2,8,1024], index: 0, kind: input, shape index: {}]   ;;  %s6637_s1 = inlined_call_operand.vmem [shape: f32[32,24], index: 1, kind: input, shape index: {}]   ;;  %s6638_s2 = inlined_call_operand.vmem [shape: f32[32,24], index: 2, kind: input, shape index: {}]   ;;  %s6639_s3 = inlined_call_operand.vmem [shape: f32[32,1], index: 3, kind: input, shape index: {}]   ;;  %s6640_s4 = inlined_call_operand.vmem [shape: f32[32,24], index: 4, kind: input, shape index: {}]   ;;  %s6641_s5 = inlined_call_operand.vmem [shape: f32[32,24], index: 5, kind: input, shape index: {}]   ;;  %s6642_s6 = inlined_call_operand.vmem [shape: f32[32,1], index: 6, kind: input, shape index: {}]   ;;  %s6643_s7 = inlined_call_operand.hbm [shape: f32[4,64,128], index: 7, kind: input, shape index: {}]   ;;  %s6644_s8 = inlined_call_operand.vmem [shape: f32[1,128], index: 8, kind: input, shape index: {}]   ;;  %s6645_s9 = inlined_call_operand.hbm [shape: f32[2,1,128], index: 9, kind: output, shape index: {}]  }
   0x1   :  { %16 = vsyncpa [#allocation3 + $0x1], 0 }
   0x2   :  { %17 = vsyncpa [#allocation6], 0 }
   0x3   :  { %18 = vsyncpa [#allocation4], 0 }
   0x4   :  { %20 = vsyncpa [#allocation4 + $0x1], 0  ;;  %s5208_s30 = smov 0   ;;  %s5210_s10 = smov 0  }
   0x5   :  { %s5212_s11 = smov 0   ;;  %s5214_s12 = smov 0  }
   0x6 LB: > { %s5229_s13 = sadd.s32 4294967295, %s5141_s12   ;;  %s3752_s14 = sadd.s32 4294967294, %s5141_s12   ;;  %s5141_s12 = sphi %s5214_s12, %s6838_s12   ;;  %s5137_s11 = sphi %s5212_s11, %s6841_s11   ;;  %s5133_s10 = sphi %s5210_s10, %s6840_s10   ;;  %s5129_s30 = sphi %s5208_s30, %s6839_s30  }
   0x7   : > { %p46_p0 = scmp.ne.s32.totalorder %s5133_s10, %s5129_s30  ;;  %p6646_p1 = scmp.eq.s32.totalorder %s5229_s13, 0 }
   0x8   : > { %p244_p3 = scmp.eq.s32.totalorder %s3752_s14, 1  ;;  %p3753_p5 = scmp.ge.s32.totalorder %s5141_s12, 1 }
   0x9   : > { %p5238_p4 = por %p6646_p1, %p46_p0  ;;  %p251_p7 = scmp.lt.s32.totalorder %s5141_s12, 3 }
   0xa   : > { %p5243_p6 = por %p244_p3, %p46_p0  ;;  %s5143_s18 = smov [#allocation5]  }
   0xb   : > { %s6670_s15 = scalar_select %p5238_p4, 1, 0 }
   0xc   : > { %s6671_s16 = scalar_select %p5243_p6, 1, 0 }
   0xd   : > { %p5248_p8 = pnand %p3753_p5, %p251_p7  ;;  %s281_s19 = sshll.u32 %s5143_s18, 4  ;;  %s5252_s19 = int_to_ptr.vmem [resolvable:$true] %s281_s19 }
   0xe   : > { %6672 = sst [smem:[#allocation11_spill]] %s6671_s16  ;;  %s5264_s21 = sadd.s32 1, %s5141_s12  }
   0xf   : > { %s6673_s17 = scalar_select %p5248_p8, 1, 0 }
  0x10   : > { %p4647_p9 = pneg %p5248_p8  ;;  %6675 = sst [smem:[#allocation12_spill]] %s5264_s21 }
  0x11   : > { %s33_s22 = sadd.s32 1, %s5137_s11  ;;  %s30_s23 = ssub.s32 %s5141_s12, %s5264_s21 }
  0x12   : > { %p5259_p11 = pnand %p4647_p9, %p6646_p1  ;;  %s5013_s26 = scalar_lea.hbm %s6643_s7, 4096 }
  0x13   : > { %p5014_p12 = scmp.ne.s32.totalorder %s6643_s7, %s5013_s26  ;;  %p5020_p5 = scmp.lt.u32.totalorder %s5013_s26, %s6643_s7 }
  0x14   : > { %p5015_p13 = pneg %p5259_p11 }
  0x16   : > { %p5016_p0 = pnand %p5015_p13, %p5014_p12 }
  0x18   : > { %p5017_p3 = pneg %p5016_p0 }
  0x1a   : > { %p5022_p7 = pnand %p5020_p5, %p5017_p3 }
  0x1c   : > { %5025 = shalt.err (!%p5022_p7)
}
  0x1d   : > { %s5026_s18 = scalar_lea.vmem %s5252_s19, 4096  ;;  %p5034_p2 = scmp.lt.s32.totalorder %s5252_s19, %s5252_s19 }
  0x1e   : > { %p5027_p9 = scmp.ne.s32.totalorder %s5252_s19, %s5026_s18  ;;  %p5035_p6 = scmp.lt.s32.totalorder %s5026_s18, %s5026_s18 }
  0x20   : > { %p5029_p10 = pnand %p5027_p9, %p5015_p13  ;;  %p5036_p4 = por %p5035_p6, %p5034_p2 }
  0x22   : > { %p5030_p1 = pneg %p5029_p10 }
  0x24   : > { %p5037_p8 = pnand %p5036_p4, %p5030_p1 }
  0x26   : > { %5040 = shalt.err (!%p5037_p8)
}
  0x27   : > { %s5144_s24 = smov 128   ;;  %s5145_s25 = smov 8  }
  0x28   : > { %4650 = dma.hbm_to_vmem [thread:$0]  (!%p5259_p11), %s6643_s7, 4096, %s5252_s19, [#allocation6], %s5144_s24, %s5144_s24, %s5145_s25  }
  0x29   : > { %p31_p2 = scmp.eq.s32.totalorder %s30_s23, 0  ;;  %p40_p1 = scmp.ne.s32.totalorder %s5137_s11, %s5133_s10 }
  0x2a   : > { %p41_p4 = scmp.eq.s32.totalorder %s5141_s12, 0  ;;  %p4660_p6 = scmp.lt.s32.totalorder %s5141_s12, 2 }
  0x2b   : > { %s5295_s28 = scalar_select %p31_p2, %s5137_s11, %s33_s22  }
  0x2c   : > { %p42_p8 = por %p41_p4, %p40_p1  ;;  %p6676_p10 = scmp.eq.s32.totalorder %s5229_s13, 1 }
  0x2d   : > { %s298_s14 = sand.u32 1, %s5137_s11   ;;  %s3997_s18 = sshll.u32 %s5141_s12, 10 }
  0x2e   : > { %p5299_p12 = por %p6676_p10, %p40_p1  ;;  %s3756_s21 = sshll.u32 %s298_s14, 6 }
  0x2f   : > { %s5308_s26 = scalar_lea.hbm %s6636_s0, %s3997_s18  ;;  %s302_s19 = scalar_lea.vmem [#allocation2], %s3756_s21 }
  0x30   : > { %s310_s22 = sshll.u32 %s302_s19, 4  ;;  %p5310_p11 = pnand %p4660_p6, %p42_p8  ;;  %s5314_s22 = int_to_ptr.vmem [resolvable:$true] %s310_s22 }
  0x31   : > { %s299_s24 = scalar_lea.sflag [#allocation3], %s298_s14  ;;  %s5041_s25 = scalar_lea.hbm %s5308_s26, 1024 }
  0x32   : > { %p5042_p13 = scmp.ne.s32.totalorder %s5308_s26, %s5041_s25  ;;  %p5043_p0 = pneg %p5310_p11 }
  0x33   : > { %s5046_s27 = scalar_lea.hbm %s6636_s0, 2048  ;;  %p5047_p7 = scmp.lt.u32.totalorder %s5308_s26, %s6636_s0 }
  0x34   : > { %p5044_p3 = pnand %p5043_p0, %p5042_p13  ;;  %p5048_p9 = scmp.lt.u32.totalorder %s5046_s27, %s5041_s25 }
  0x35   : > { %p5050_p1 = scmp.lt.u32.totalorder %s5041_s25, %s5308_s26 }
  0x36   : > { %p5045_p5 = pneg %p5044_p3  ;;  %p5049_p2 = por %p5048_p9, %p5047_p7 }
  0x38   : > { %p5051_p4 = por %p5050_p1, %p5049_p2 }
  0x3a   : > { %p5052_p6 = pnand %p5051_p4, %p5045_p5 }
  0x3c   : > { %5055 = shalt.err (!%p5052_p6)
}
  0x3d   : > { %s5056_s14 = scalar_lea.vmem %s5314_s22, 1024  ;;  %s5146_s19 = smov [#allocation2]  }
  0x3e   : > { %p5057_p8 = scmp.ne.s32.totalorder %s5314_s22, %s5056_s14  ;;  %s5061_s16 = sshll.u32 %s5146_s19, 4  ;;  %s5062_s16 = int_to_ptr.vmem [resolvable:$false] %s5061_s16 }
  0x3f   : > { %s5063_s21 = scalar_lea.vmem %s5062_s16, 2048  ;;  %p5064_p3 = scmp.lt.s32.totalorder %s5314_s22, %s5062_s16 }
  0x40   : > { %p5059_p10 = pnand %p5057_p8, %p5043_p0  ;;  %p5065_p7 = scmp.lt.s32.totalorder %s5063_s21, %s5056_s14 }
  0x42   : > { %p5060_p13 = pneg %p5059_p10  ;;  %p5066_p9 = por %p5065_p7, %p5064_p3 }
  0x44   : > { %p5067_p2 = pnand %p5066_p9, %p5060_p13 }
  0x46   : > { %5070 = shalt.err (!%p5067_p2)
}
  0x47   : > { %4654 = dma.hbm_to_vmem [thread:$0]  (!%p5310_p11), %s5308_s26, 1024, %s5314_s22, %s299_s24  }
  0x48   : > { %p6679_p5 = scmp.ne.s32.totalorder %s6673_s17, 0 }
  0x4a   : > { %319 = sbr.rel (%p6679_p5) target bundleno = 6882 (0x1ae2), region = 56 }
  0x51   : > { %s5344_s25 = sand.u32 1, %s5133_s10   ;;  %p6680_p0 = scmp.ne.s32.totalorder %s6670_s15, 0 }
  0x52   : > { %s3760_s27 = sshll.u32 %s5344_s25, 6  ;;  %s322_s18 = scalar_lea.sflag [#allocation3], %s5344_s25 }
  0x53   : > { %s5348_s20 = scalar_lea.vmem [#allocation2], %s3760_s27 }
  0x54   : > { %5116 = dma.done.wait (%p6680_p0), %s322_s18, 1024  }
  0x55   : > { %5118 = vsyncadd (%p6680_p0), %s322_s18, 4294966272  ;;  %p6681_p11 = scmp.eq.s32.totalorder %s5229_s13, 0 }
  0x57   : > { %5120 = dma.done.wait (%p6681_p11), [#allocation6], 4096   ;;  %p6682_p1 = pmov %p6681_p11 }
  0x58   : > { %v5147_v0 = vmov 0   ;;  %v399_v1 = vld [vmem:[%s5348_s20 + $0x8] sm:$0xff]  ;;  %v398_v2 = vld [vmem:[%s5348_s20] sm:$0xff]  ;;  %s5148_s17 = smov 127   ;;  %v6661_v4 = vmov 0.0   ;;  %v5363_v5 = vld [vmem:[%s5348_s20 + $0x10] sm:$0xff]  ;;  %v6660_v17 = vlaneseq }
  0x59   : > { %5122 = vsyncadd (%p6682_p1), [#allocation6], 4294963200  ;;  %4713 = vset.pattern.permute.xlu1 %v5147_v0  ;;  %4714 = vset.pattern.permute.xlu0 %v5147_v0  ;;  %v4708_v3 = vpack.i.bf16 %v399_v1, %v398_v2  ;;  %s5150_s15 = smov 1   ;;  %v5368_v6 = vld [vmem:[%s5348_s20 + $0x38] sm:$0xff]  ;;  %v414_v7 = vld [vmem:[%s6639_s3] sm:$0xff]  ;;  %vm5151_vm3 = vmmov 1  }
  0x5a   : > { %469 = vrot.lane.b32.xlu1 %v399_v1, %s5148_s17  ;;  %612 = vmatprep.mubr.f32.mxu0 %v6661_v4  ;;  %v417_v8 = vld [vmem:[%s6639_s3 + $0x18] sm:$0xff]  ;;  %v415_v9 = vld [vmem:[%s6639_s3 + $0x8] sm:$0xff]  ;;  %v416_v11 = vld [vmem:[%s6639_s3 + $0x10] sm:$0xff]  ;;  %v5414_v18 = vand.u32 127, %v6660_v17  ;;  %vm6653_vm8 = vcmask 195584   ;;  %s5155_s14 = smov 2  }
  0x5b   : > { %879 = vmatprep.mubr.f32.mxu1 %v6661_v4  ;;  %4709 = vrot.lane.b32.xlu0 %v4708_v3, %s5150_s15  ;;  %v5385_v10 = vld [vmem:[%s5348_s20 + $0x18] sm:$0xff]  ;;  %v5393_v13 = vld [vmem:[%s5348_s20 + $0x28] sm:$0xff]  ;;  %v5397_v14 = vld [vmem:[%s5348_s20 + $0x20] sm:$0xff]  ;;  %s5156_s19 = smov 126   ;;  %s3994_s16 = sshll.u32 %s5229_s13, 4 }
  0x5c   : > { %v4715_v12 = vpack.i.bf16 %v5385_v10, %v5363_v5  ;;  %v4720_v15 = vpack.i.bf16 %v5393_v13, %v5397_v14  ;;  %v5407_v16 = vld [vmem:[%s5348_s20 + $0x30] sm:$0xff]  ;;  %v365_v19 = vadd.s32 128, %v5414_v18  ;;  %vm6656_vm0 = vcmp.lt.s32.totalorder %v5414_v18, 1  ;;  %v5459_v36 = vld [vmem:[%s6637_s1] sm:$0xff]  ;;  %v5472_v38 = vld [vmem:[%s6637_s1 + $0x8] sm:$0xff]  ;;  %s362_s21 = scalar_lea.vmem [#allocation7], %s5344_s25  ;;  %s6592_s26 = scalar_lea.hbm %s6645_s9, %s3994_s16 }
  0x5d   : > { %vm6652_vm2 = vcmp.ge.s32.totalorder %v5414_v18, 1  ;;  %vm6659_vm5 = vcmp.lt.s32.totalorder %v5414_v18, 127  ;;  %v5480_v39 = vld [vmem:[%s6637_s1 + $0x10] sm:$0xff]  ;;  %v367_v41 = vadd.s32 384, %v5414_v18  ;;  %v5491_v42 = vld [vmem:[%s6637_s1 + $0x18] sm:$0xff]  ;;  %v366_v43 = vadd.s32 256, %v5414_v18 }
  0x5e   : > { %471 = vrot.lane.b32.xlu1 %v5363_v5, %s5148_s17  ;;  %v373_v20 = vand.u32 127, %v365_v19  ;;  %vm5437_vm6 = vmpackc.low %vm5151_vm3, %vm6652_vm2  ;;  %v369_v49 = vadd.s32 640, %v5414_v18  ;;  %v368_v50 = vadd.s32 512, %v5414_v18  ;;  %v6057_v62 = vld [vmem:[%s6640_s4] sm:$0xff]  ;;  %v6481_v31 = vmul.u32 2, %v5414_v18  ;;  %s3676_s27 = sshll.u32 %s362_s21, 4  ;;  %s6594_s27 = int_to_ptr.vmem [resolvable:$true] %s3676_s27 }
  0x5f   : > { %432 = vrot.lane.b32.xlu0 %v5368_v6, %s5150_s15  ;;  %v375_v46 = vand.u32 127, %v367_v41  ;;  %v374_v47 = vand.u32 127, %v366_v43  ;;  %s3664_s22 = scalar_lea.sflag [#allocation4], %s5344_s25  ;;  %s5071_s23 = scalar_lea.vmem %s6594_s27, 16 }
  0x60   : > { %vm383_vm1 = vcmp.ge.s32.totalorder %v373_v20, 1  ;;  %vm5443_vm7 = vcmp.lt.s32.totalorder %v373_v20, 127  ;;  %v377_v55 = vand.u32 127, %v369_v49  ;;  %v376_v59 = vand.u32 127, %v368_v50  ;;  %p5072_p4 = scmp.ne.s32.totalorder %s6594_s27, %s5071_s23  ;;  %s5157_s13 = smov [#allocation7]  }
  0x61   : > { %vm5422_vm4 = vmpackc.low %vm5151_vm3, %vm383_vm1  ;;  %vm385_vm9 = vcmp.ge.s32.totalorder %v375_v46, 1  ;;  %vm384_vm10 = vcmp.ge.s32.totalorder %v374_v47, 1  ;;  %vm5523_vm13 = vcmp.lt.s32.totalorder %v375_v46, 127  ;;  %vm5537_vm1 = vcmp.lt.s32.totalorder %v374_v47, 127  ;;  %s5075_s24 = sshll.u32 %s5157_s13, 4  ;;  %s5076_s24 = int_to_ptr.vmem [resolvable:$false] %s5075_s24 }
  0x62   : > { %517 = vperm.xlu1 %4713, %v414_v7   ;;  %vm5510_vm11 = vmpackc.low %vm5151_vm3, %vm385_vm9  ;;  %vm387_vm14 = vcmp.ge.s32.totalorder %v377_v55, 1  ;;  %vm386_vm15 = vcmp.ge.s32.totalorder %v376_v59, 1  ;;  %v6700_v20 = vmov 0  ;;  %v6073_v7 = vld [vmem:[%s6640_s4 + $0x10] sm:$0xff]  ;;  %p5073_p6 = pnand %p5072_p4, %p5299_p12  ;;  %p5078_p10 = scmp.lt.s32.totalorder %s6594_s27, %s5076_s24 }
  0x63   : > { %467 = vrot.lane.b32.xlu0 %v398_v2, %s5148_s17  ;;  %vm5517_vm12 = vmpackc.low %vm5151_vm3, %vm384_vm10 }
  0x64   : > { %vm5548_vm9 = vmpackc.low %vm5151_vm3, %vm387_vm14  ;;  %vm5569_vm14 = vcmp.lt.s32.totalorder %v377_v55, 127  ;;  %p5074_p8 = pneg %p5073_p6 }
  0x65   : > { %vm5558_vm10 = vmpackc.low %vm5151_vm3, %vm386_vm15  ;;  %vm5584_vm15 = vcmp.lt.s32.totalorder %v376_v59, 127 }
  0x66   : > { %532 = vperm.xlu1 %4713, %v417_v8   ;;  %v6701_v20 = vsel %vm5558_vm10, 4294967295, %v6700_v20 }
  0x67   : > { %522 = vperm.xlu0 %4714, %v415_v9   ;;  %6702 = vst [vmem:[#allocation14_spill] sm:$0xff] %v6701_v20 }
  0x6a   : > { %527 = vperm.xlu1 %4713, %v416_v11   ;;  %v6697_v11 = vmov 0 }
  0x6b   : > { %4716 = vrot.lane.b32.xlu0 %v4715_v12, %s5150_s15  ;;  %v6698_v11 = vsel %vm5548_vm9, 4294967295, %v6697_v11 }
  0x6c   : > { %6699 = vst [vmem:[#allocation13_spill] sm:$0xff] %v6698_v11 }
  0x6e   : > { %473 = vrot.lane.b32.xlu1 %v5385_v10, %s5148_s17 }
  0x6f   : > { %475 = vrot.lane.b32.xlu0 %v5397_v14, %s5148_s17 }
  0x72   : > { %4721 = vrot.lane.b32.xlu1 %v4720_v15, %s5150_s15 }
  0x73   : > { %477 = vrot.lane.b32.xlu0 %v5393_v13, %s5148_s17 }
  0x76   : > { %479 = vrot.lane.b32.xlu1 %v5407_v16, %s5148_s17 }
  0xcc   : > { %v470_v21 = vpop.permute.xlu1 %469 }
  0xcd   : > { %v4710_v22 = vpop.permute.xlu0 %4709 }
  0xce   : > { %v4712_v23 = vunpack.i.h.bf16 %v4710_v22  ;;  %v4711_v24 = vunpack.i.l.bf16 %v4710_v22 }
  0xd0   : > { %v441_v25 = vsel %vm6656_vm0, %v4711_v24, %v4712_v23  ;;  %v5432_v30 = vpop.permute.xlu1 %471 }
  0xd1   : > { %v5426_v27 = vpop.permute.xlu0 %432  ;;  %v4428_v28 = vpack.c.bf16 %v399_v1, %v441_v25  ;;  %v488_v34 = vsel %vm6659_vm5, %v470_v21, %v5432_v30  ;;  %v6065_v1 = vld [vmem:[%s6640_s4 + $0x8] sm:$0xff] }
  0xd2   : > { %v442_v29 = vsel %vm6656_vm0, %v5426_v27, %v4711_v24 }
  0xd3   : > { %v4431_v32 = vpack.c.bf16 %v398_v2, %v442_v29  ;;  %4430 = vmatprep.subr.msk.bf16.mxu0 %vm5422_vm4, %v4428_v28 }
  0xd5   : > { %v5450_v35 = vpop.permute.xlu0 %467  ;;  %4433 = vmatpush1.bf16.msk.msra.mxu0 %vm5437_vm6, %v4431_v32 }
  0xd6   : > { %3764 = vmatprep.subr.msk.mxu0 %vm5443_vm7, %v488_v34  ;;  %v489_v37 = vsel %vm6659_vm5, %v5450_v35, %v470_v21 }
  0xd9   : > { %3765 = vmatpush1.msk.msra.mxu0 %vm6659_vm5, %v489_v37 }
  0xda   : > { %3766 = vmatmul.mubr.msk.f32.vlgmr.msra.gmra.mrb[0].mxu0 %vm6653_vm8, %v5459_v36 }
  0xdb   : > { %618 = vmatprep.mubr.f32.mxu0 %v6661_v4 }
  0xde   : > { %3767 = vmatmul.mubr.msk.f32.gmra.mrb[2].mxu0 %vm6653_vm8, %v5472_v38 }
  0xdf   : > { %624 = vmatprep.mubr.f32.mxu0 %v6661_v4 }
  0xe1   : > { %v5482_v40 = vpop.permute.xlu1 %517 }
  0xe2   : > { %3768 = vmatmul.mubr.msk.f32.gmra.mrb[4].mxu0 %vm6653_vm8, %v5480_v39 }
  0xe3   : > { %630 = vmatprep.mubr.f32.mxu0 %v6661_v4 }
  0xe5   : > { %v5494_v44 = vpop.permute.xlu1 %532 }
  0xe6   : > { %v5496_v45 = vpop.permute.xlu0 %522  ;;  %3769 = vmatmul.mubr.msk.f32.gmra.mrb[6].mxu0 %vm6653_vm8, %v5491_v42 }
  0xe7   : > { %701 = vmatprep.mubr.f32.mxu0 %v6661_v4 }
  0xe9   : > { %v5501_v48 = vpop.permute.xlu1 %527 }
  0xea   : > { %v4717_v51 = vpop.permute.xlu0 %4716 }
  0xeb   : > { %v4719_v52 = vunpack.i.h.bf16 %v4717_v51  ;;  %v4718_v53 = vunpack.i.l.bf16 %v4717_v51 }
  0xed   : > { %v474_v54 = vpop.permute.xlu1 %473  ;;  %v439_v56 = vsel %vm6656_vm0, %v4718_v53, %v4719_v52  ;;  %v440_v57 = vsel %vm6656_vm0, %v4712_v23, %v4718_v53  ;;  %v6703_v23 = vmov 0 }
  0xee   : > { %v4434_v60 = vpack.c.bf16 %v5385_v10, %v439_v56  ;;  %v4437_v61 = vpack.c.bf16 %v5363_v5, %v440_v57  ;;  %v476_v63 = vpop.permute.xlu0 %475  ;;  %v487_v12 = vsel %vm6659_vm5, %v5432_v30, %v474_v54  ;;  %v6704_v23 = vsel %vm5569_vm14, 4294967295, %v6703_v23 }
  0xef   : > { %v486_v0 = vsel %vm6659_vm5, %v474_v54, %v476_v63  ;;  %6705 = vst [vmem:[#allocation15_spill] sm:$0xff] %v6704_v23 }
  0xf0   : > { %4436 = vmatprep.subr.msk.bf16.mxu0 %vm5510_vm11, %v4434_v60 }
  0xf1   : > { %v5529_v2 = vpop.permute.xlu1 %4721  ;;  %4439 = vmatpush1.bf16.msk.msra.mxu0 %vm5517_vm12, %v4437_v61 }
  0xf2   : > { %v4724_v3 = vunpack.i.h.bf16 %v5529_v2  ;;  %v4723_v5 = vunpack.i.l.bf16 %v5529_v2  ;;  %3772 = vmatprep.subr.msk.mxu0 %vm5523_vm13, %v486_v0  ;;  %v478_v8 = vpop.permute.xlu0 %477  ;;  %v5711_v2 = vld [vmem:[%s6638_s2 + $0x8] sm:$0xff] }
  0xf4   : > { %v437_v9 = vsel %vm6656_vm0, %v4723_v5, %v4724_v3  ;;  %v438_v10 = vsel %vm6656_vm0, %v4719_v52, %v4723_v5 }
  0xf5   : > { %v4440_v15 = vpack.c.bf16 %v5393_v13, %v437_v9  ;;  %v4443_v19 = vpack.c.bf16 %v5397_v14, %v438_v10  ;;  %v5562_v21 = vpop.permute.xlu1 %479  ;;  %3773 = vmatpush1.msk.msra.mxu0 %vm5537_vm1, %v487_v12  ;;  %v485_v13 = vsel %vm6659_vm5, %v476_v63, %v478_v8  ;;  %v6706_v14 = vmov 0 }
  0xf6   : > { %v484_v22 = vsel %vm6659_vm5, %v478_v8, %v5562_v21  ;;  %3774 = vmatmul.mubr.msk.f32.vlgmr.msra.gmra.mrb[8].mxu0 %vm6653_vm8, %v5459_v36  ;;  %v6707_v14 = vsel %vm5584_vm15, 4294967295, %v6706_v14 }
  0xf7   : > { %4442 = vmatprep.subr.msk.bf16.mxu0 %vm5548_vm9, %v4440_v15  ;;  %707 = vmatprep.mubr.f32.mxu0 %v6661_v4  ;;  %6708 = vst [vmem:[#allocation16_spill] sm:$0xff] %v6707_v14 }
  0xf8   : > { %4445 = vmatpush1.bf16.msk.msra.mxu0 %vm5558_vm10, %v4443_v19 }
  0xf9   : > { %3780 = vmatprep.subr.msk.mxu0 %vm5569_vm14, %v484_v22 }
  0xfa   : > { %3775 = vmatmul.mubr.msk.f32.gmra.mrb[10].mxu0 %vm6653_vm8, %v5472_v38 }
  0xfb   : > { %713 = vmatprep.mubr.f32.mxu0 %v6661_v4 }
  0xfc   : > { %3781 = vmatpush1.msk.msra.mxu0 %vm5584_vm15, %v485_v13 }
  0xfe   : > { %3776 = vmatmul.mubr.msk.f32.gmra.mrb[12].mxu0 %vm6653_vm8, %v5480_v39 }
  0xff   : > { %719 = vmatprep.mubr.f32.mxu0 %v6661_v4 }
 0x102   : > { %3777 = vmatmul.mubr.msk.f32.gmra.mrb[14].mxu0 %vm6653_vm8, %v5491_v42 }
 0x103   : > { %790 = vmatprep.mubr.f32.mxu0 %v6661_v4 }
 0x106   : > { %3782 = vmatmul.mubr.msk.f32.vlgmr.msra.gmra.mrb[16].mxu0 %vm6653_vm8, %v5459_v36 }
 0x107   : > { %796 = vmatprep.mubr.f32.mxu0 %v6661_v4 }
 0x10a   : > { %3783 = vmatmul.mubr.msk.f32.gmra.mrb[18].mxu0 %vm6653_vm8, %v5472_v38 }
 0x10b   : > { %802 = vmatprep.mubr.f32.mxu0 %v6661_v4 }
 0x10e   : > { %3784 = vmatmul.mubr.msk.f32.gmra.mrb[20].mxu0 %vm6653_vm8, %v5480_v39 }
 0x10f   : > { %808 = vmatprep.mubr.f32.mxu0 %v6661_v4 }
 0x112   : > { %3785 = vmatmul.mubr.msk.f32.gmra.mrb[22].mxu0 %vm6653_vm8, %v5491_v42 }
 0x1ad   : > { %v614_v24 = vpop.f32.mrb[0].mxu0 }
 0x1ae   : > { %v5610_v25 = vpop.f32.mrb[1].mxu0  ;;  %v615_v28 = vadd.f32 %v614_v24, %v5482_v40 }
 0x1b0   : > { %v3794_v37 = vmul.f32 -1.442695, %v615_v28 }
 0x1b1   : > { %v620_v29 = vpop.f32.mrb[2].mxu0 }
 0x1b2   : > { %v621_v30 = vadd.f32 %v620_v29, %v5496_v45  ;;  %v5614_v32 = vpop.f32.mrb[3].mxu0 }
 0x1b4   : > { %v3795_v34 = vmul.f32 -1.442695, %v621_v30 }
 0x1b5   : > { %v626_v41 = vpop.f32.mrb[4].mxu0 }
 0x1b6   : > { %v5616_v43 = vpop.f32.mrb[5].mxu0  ;;  %4725 = vpow2.f32 %v3795_v34  ;;  %v627_v51 = vadd.f32 %v626_v41, %v5501_v48 }
 0x1b7   : > { %4727 = vpow2.f32 %v3794_v37 }
 0x1b8   : > { %v3796_v54 = vmul.f32 -1.442695, %v627_v51 }
 0x1b9   : > { %v632_v46 = vpop.f32.mrb[6].mxu0 }
 0x1ba   : > { %v633_v47 = vadd.f32 %v632_v46, %v5494_v44  ;;  %v5619_v49 = vpop.f32.mrb[7].mxu0  ;;  %v5652_v46 = vld [vmem:[%s6638_s2] sm:$0xff] }
 0x1bb   : > { %4155 = vmatprep.mubr.msk.f32.mxu0 %vm6653_vm8, %v5652_v46 }
 0x1bc   : > { %v3797_v50 = vmul.f32 -1.442695, %v633_v47 }
 0x1be   : > { %4729 = vpow2.f32 %v3797_v50 }
 0x1bf   : > { %4731 = vpow2.f32 %v3796_v54 }
 0x1c0   : > { %v4726_v52 = vpop.eup %4725 }
 0x1c1   : > { %v4728_v53 = vpop.eup %4727  ;;  %v917_v55 = vadd.f32 1.0, %v4726_v52 }
 0x1c2   : > { %v916_v56 = vadd.f32 1.0, %v4728_v53 }
 0x1c3   : > { %4733 = vrcp.f32 %v917_v55 }
 0x1c4   : > { %4735 = vrcp.f32 %v916_v56  ;;  %v371_v56 = vadd.s32 896, %v5414_v18 }
 0x1c8   : > { %v4730_v57 = vpop.eup %4729 }
 0x1c9   : > { %v919_v59 = vadd.f32 1.0, %v4730_v57  ;;  %v5622_v60 = vpop.f32.mrb[8].mxu0  ;;  %v4732_v8 = vpop.eup %4731  ;;  %v370_v57 = vadd.s32 768, %v5414_v18 }
 0x1ca   : > { %v5624_v61 = vpop.f32.mrb[9].mxu0  ;;  %v918_v19 = vadd.f32 1.0, %v4732_v8 }
 0x1cb   : > { %4737 = vrcp.f32 %v919_v59  ;;  %v379_v59 = vand.u32 127, %v371_v56  ;;  %v378_v8 = vand.u32 127, %v370_v57 }
 0x1cc   : > { %4739 = vrcp.f32 %v918_v19 }
 0x1cd   : > { %v5626_v63 = vpop.f32.mrb[10].mxu0  ;;  %v4734_v10 = vpop.eup %4733  ;;  %vm389_vm2 = vcmp.ge.s32.totalorder %v379_v59, 1  ;;  %vm388_vm8 = vcmp.ge.s32.totalorder %v378_v8, 1 }
 0x1ce   : > { %v5628_v0 = vpop.f32.mrb[11].mxu0  ;;  %v4736_v12 = vpop.eup %4735  ;;  %v928_v13 = vmul.f32 0.0, %v4734_v10  ;;  %vm5697_vm15 = vmpackc.low %vm5151_vm3, %vm389_vm2  ;;  %vm6716_vm2 = vcmask 195584  }
 0x1cf   : > { %vm5704_vm14 = vmpackc.low %vm5151_vm3, %vm388_vm8  ;;  %vm5738_vm8 = vcmp.lt.s32.totalorder %v378_v8, 127 }
 0x1d0   : > { %vm6717_vm3 = vmmov %vm6716_vm2 }
 0x1d1   : > { %v5630_v5 = vpop.f32.mrb[12].mxu0 }
 0x1d2   : > { %v5632_v9 = vpop.f32.mrb[13].mxu0 }
 0x1d5   : > { %v4738_v15 = vpop.eup %4737  ;;  %v5634_v22 = vpop.f32.mrb[14].mxu0 }
 0x1d6   : > { %v929_v24 = vmul.f32 %v4738_v15, %v4736_v12  ;;  %v5636_v28 = vpop.f32.mrb[15].mxu0  ;;  %v4740_v51 = vpop.eup %4739 }
 0x1d8   : > { %v5638_v29 = vadd.f32 %v929_v24, %v928_v13 }
 0x1d9   : > { %v5640_v30 = vpop.f32.mrb[16].mxu0 }
 0x1da   : > { %v5642_v34 = vpop.f32.mrb[17].mxu0  ;;  %4741 = vtanh.f32 %v5638_v29 }
 0x1dd   : > { %v5645_v37 = vpop.f32.mrb[18].mxu0 }
 0x1de   : > { %v5647_v41 = vpop.f32.mrb[19].mxu0 }
 0x1e1   : > { %v5654_v47 = vpop.f32.mrb[20].mxu0 }
 0x1e2   : > { %v5658_v50 = vpop.f32.mrb[21].mxu0 }
 0x1e4   : > { %v4742_v52 = vpop.eup %4741 }
 0x1e5   : > { %v5660_v53 = vpop.f32.mrb[22].mxu0  ;;  %v5662_v54 = vmul.f32 %v4742_v52, %v4740_v51 }
 0x1e6   : > { %v5664_v55 = vpop.f32.mrb[23].mxu0 }
 0x1e7   : > { %938 = vrot.lane.b32.xlu1 %v5662_v54, %s5148_s17  ;;  %933 = vrot.lane.b32.xlu0 %v5662_v54, %s5150_s15 }
 0x1eb   : > { %481 = vrot.lane.b32.xlu1 %v5368_v6, %s5148_s17  ;;  %430 = vrot.lane.b32.xlu0 %v5407_v16, %s5150_s15 }
 0x259   : > { %v5676_v10 = vpop.permute.xlu1 %938  ;;  %v5678_v12 = vpop.permute.xlu0 %933 }
 0x25a   : > { %v4452_v15 = vpack.c.bf16 %v5662_v54, %v5678_v12 }
 0x25c   : > { %4454 = vmatprep.subr.msk.bf16.mxu0 %vm5437_vm6, %v4452_v15 }
 0x25d   : > { %4457 = vmatpush3.bf16.msk.msra.mxu0 %vm5437_vm6, %v4452_v15  ;;  %v431_v19 = vpop.permute.xlu0 %430  ;;  %v482_v52 = vpop.permute.xlu1 %481 }
 0x25e   : > { %v435_v13 = vsel %vm6656_vm0, %v431_v19, %v5426_v27  ;;  %v436_v24 = vsel %vm6656_vm0, %v4724_v3, %v431_v19  ;;  %4153 = vmatprep.subr.msk.mxu0 %vm6659_vm5, %v5676_v10  ;;  %vm5713_vm0 = vcmp.lt.s32.totalorder %v379_v59, 127  ;;  %v6713_v3 = vmov 0  ;;  %v6770_v27 = vld [vmem:[#allocation14_spill] sm:$0xff] }
 0x25f   : > { %v4449_v56 = vpack.c.bf16 %v5407_v16, %v436_v24  ;;  %v4446_v57 = vpack.c.bf16 %v5368_v6, %v435_v13  ;;  %v6714_v3 = vsel %vm5713_vm0, 4294967295, %v6713_v3  ;;  %v5720_v16 = vld [vmem:[%s6638_s2 + $0x10] sm:$0xff]  ;;  %v490_v6 = vsel %vm6659_vm5, %v482_v52, %v5450_v35  ;;  %v5745_v35 = vld [vmem:[%s6638_s2 + $0x18] sm:$0xff] }
 0x260   : > { %6715 = vst [vmem:[#allocation17_spill] sm:$0xff] %v6714_v3  ;;  %v6718_v59 = vmov 0  ;;  %v483_v15 = vsel %vm6659_vm5, %v5562_v21, %v482_v52  ;;  %v617_v21 = vadd.f32 %v5610_v25, %v5482_v40 }
 0x261   : > { %4448 = vmatprep.subr.msk.bf16.mxu1 %vm5697_vm15, %v4446_v57  ;;  %4154 = vmatpush3.msk.msra.mxu0 %vm6659_vm5, %v5676_v10  ;;  %v6719_v59 = vsel %vm5738_vm8, 4294967295, %v6718_v59 }
 0x262   : > { %4451 = vmatpush1.bf16.msk.msra.mxu1 %vm5704_vm14, %v4449_v56  ;;  %4156 = vmatmul.mubr.msk.f32.vlgmr.msra.gmra.mrb[24].mxu0 %vm6716_vm2, %v5711_v2  ;;  %6720 = vst [vmem:[#allocation18_spill] sm:$0xff] %v6719_v59 }
 0x263   : > { %3788 = vmatprep.subr.msk.mxu1 %vm5713_vm0, %v490_v6  ;;  %4158 = vmatprep.mubr.msk.f32.mxu0 %vm6717_vm3, %v5720_v16  ;;  %vm6721_vm3 = vmmov %vm6716_vm2 }
 0x264   : > { %vm6722_vm0 = vmmov %vm6716_vm2 }
 0x265   : > { %vm6723_vm10 = vmmov %vm6722_vm0 }
 0x266   : > { %3789 = vmatpush1.msk.msra.mxu1 %vm5738_vm8, %v483_v15  ;;  %4159 = vmatmul.mubr.msk.f32.gmra.mrb[26].mxu0 %vm6716_vm2, %v5745_v35  ;;  %vm6724_vm5 = vmmov %vm6722_vm0 }
 0x267   : > { %3790 = vmatmul.mubr.msk.f32.vlgmr.msra.gmra.mrb[0].mxu1 %vm6721_vm3, %v5459_v36  ;;  %4179 = vmatprep.mubr.msk.f32.mxu0 %vm6722_vm0, %v5652_v46  ;;  %vm6725_vm2 = vmmov %vm6722_vm0  ;;  %v623_v36 = vadd.f32 %v5614_v32, %v5496_v45 }
 0x268   : > { %885 = vmatprep.mubr.f32.mxu1 %v6661_v4  ;;  %vm6726_vm3 = vmmov %vm6722_vm0  ;;  %vm6727_vm0 = vcmp.lt.s32.totalorder %v5414_v18, 127 }
 0x269   : > { %vm6731_vm8 = vmmov %vm6725_vm2 }
 0x26b   : > { %3791 = vmatmul.mubr.msk.f32.gmra.mrb[2].mxu1 %vm6723_vm10, %v5472_v38  ;;  %vm6729_vm10 = vmmov %vm6725_vm2 }
 0x26c   : > { %891 = vmatprep.mubr.f32.mxu1 %v6661_v4 }
 0x26f   : > { %3792 = vmatmul.mubr.msk.f32.gmra.mrb[4].mxu1 %vm6724_vm5, %v5480_v39  ;;  %v635_v39 = vadd.f32 %v5619_v49, %v5494_v44  ;;  %vm6728_vm5 = vmmov %vm6727_vm0 }
 0x270   : > { %897 = vmatprep.mubr.f32.mxu1 %v6661_v4 }
 0x273   : > { %3793 = vmatmul.mubr.msk.f32.gmra.mrb[6].mxu1 %vm6725_vm2, %v5491_v42  ;;  %v629_v42 = vadd.f32 %v5616_v43, %v5501_v48 }
 0x274   : > { %4167 = vmatprep.mubr.msk.f32.mxu1 %vm6726_vm3, %v5652_v46  ;;  %vm6730_vm3 = vmmov %vm6725_vm2 }
 0x335   : > { %v4157_v38 = vpop.f32.mrb[24].mxu0 }
 0x336   : > { %v1041_v8 = vadd.f32 %v4157_v38, %v623_v36  ;;  %v1021_v19 = vpop.f32.mrb[25].mxu0 }
 0x337   : > { %v1040_v13 = vadd.f32 %v1021_v19, %v617_v21 }
 0x338   : > { %v3805_v24 = vmul.f32 -1.442695, %v1041_v8 }
 0x339   : > { %v3804_v52 = vmul.f32 -1.442695, %v1040_v13  ;;  %v4160_v56 = vpop.f32.mrb[26].mxu0 }
 0x33a   : > { %4743 = vpow2.f32 %v3805_v24  ;;  %v1043_v57 = vadd.f32 %v4160_v56, %v635_v39  ;;  %v5777_v6 = vpop.f32.mrb[0].mxu1  ;;  %v1031_v32 = vpop.f32.mrb[27].mxu0 }
 0x33b   : > { %4745 = vpow2.f32 %v3804_v52  ;;  %v1042_v25 = vadd.f32 %v1031_v32, %v629_v42  ;;  %v5779_v15 = vpop.f32.mrb[1].mxu1 }
 0x33c   : > { %v3807_v36 = vmul.f32 -1.442695, %v1043_v57 }
 0x33d   : > { %v3806_v19 = vmul.f32 -1.442695, %v1042_v25 }
 0x33e   : > { %4747 = vpow2.f32 %v3807_v36  ;;  %v5781_v21 = vpop.f32.mrb[2].mxu1 }
 0x33f   : > { %v5783_v49 = vpop.f32.mrb[3].mxu1  ;;  %4749 = vpow2.f32 %v3806_v19 }
 0x342   : > { %v5785_v38 = vpop.f32.mrb[4].mxu1 }
 0x343   : > { %v5787_v43 = vpop.f32.mrb[5].mxu1 }
 0x344   : > { %v4744_v8 = vpop.eup %4743 }
 0x345   : > { %v4746_v13 = vpop.eup %4745  ;;  %v1057_v39 = vadd.f32 1.0, %v4744_v8 }
 0x346   : > { %v1056_v24 = vadd.f32 1.0, %v4746_v13  ;;  %v5789_v56 = vpop.f32.mrb[6].mxu1 }
 0x347   : > { %v5791_v42 = vpop.f32.mrb[7].mxu1  ;;  %4751 = vrcp.f32 %v1057_v39  ;;  %v900_v26 = vadd.f32 %v5789_v56, %v5494_v44 }
 0x348   : > { %v4748_v52 = vpop.eup %4747  ;;  %4753 = vrcp.f32 %v1056_v24 }
 0x349   : > { %v1059_v57 = vadd.f32 1.0, %v4748_v52  ;;  %v4750_v32 = vpop.eup %4749  ;;  %v722_v52 = vadd.f32 %v5634_v22, %v5494_v44 }
 0x34a   : > { %v1058_v59 = vadd.f32 1.0, %v4750_v32  ;;  %v716_v32 = vadd.f32 %v5630_v5, %v5501_v48 }
 0x34b   : > { %4755 = vrcp.f32 %v1059_v57 }
 0x34c   : > { %4757 = vrcp.f32 %v1058_v59 }
 0x351   : > { %v4752_v36 = vpop.eup %4751 }
 0x352   : > { %v4754_v17 = vpop.eup %4753  ;;  %v1068_v25 = vmul.f32 %v4752_v36, %v5638_v29 }
 0x355   : > { %v4756_v4 = vpop.eup %4755 }
 0x356   : > { %v1069_v3 = vmul.f32 %v4756_v4, %v4754_v17  ;;  %v4758_v13 = vpop.eup %4757  ;;  %v710_v17 = vadd.f32 %v5626_v63, %v5496_v45 }
 0x358   : > { %v1070_v8 = vadd.f32 %v1069_v3, %v1068_v25 }
 0x35a   : > { %4759 = vtanh.f32 %v1070_v8 }
 0x364   : > { %v4760_v14 = vpop.eup %4759 }
 0x365   : > { %v5794_v23 = vmul.f32 %v4760_v14, %v4758_v13  ;;  %v704_v14 = vadd.f32 %v5622_v60, %v5482_v40 }
 0x367   : > { %1076 = vrot.lane.b32.xlu1 %v5794_v23, %s5148_s17  ;;  %1073 = vrot.lane.b32.xlu0 %v5794_v23, %s5150_s15 }
 0x3d9   : > { %v5800_v19 = vpop.permute.xlu0 %1073  ;;  %v5806_v4 = vpop.permute.xlu1 %1076 }
 0x3da   : > { %v4458_v39 = vpack.c.bf16 %v5794_v23, %v5800_v19 }
 0x3dc   : > { %4460 = vmatprep.subr.msk.bf16.mxu1 %vm5437_vm6, %v4458_v39 }
 0x3dd   : > { %4463 = vmatpush3.bf16.msk.msra.mxu1 %vm5437_vm6, %v4458_v39 }
 0x3de   : > { %4165 = vmatprep.subr.msk.mxu1 %vm6727_vm0, %v5806_v4 }
 0x3e1   : > { %4166 = vmatpush3.msk.msra.mxu1 %vm6728_vm5, %v5806_v4  ;;  %vm6733_vm5 = vmmov %vm6725_vm2 }
 0x3e2   : > { %4168 = vmatmul.mubr.msk.f32.vlgmr.msra.gmra.mrb[8].mxu1 %vm6729_vm10, %v5711_v2  ;;  %vm6734_vm10 = vmmov %vm6725_vm2 }
 0x3e3   : > { %4170 = vmatprep.mubr.msk.f32.mxu1 %vm6725_vm2, %v5720_v16 }
 0x3e6   : > { %4171 = vmatmul.mubr.msk.f32.gmra.mrb[10].mxu1 %vm6730_vm3, %v5745_v35  ;;  %vm6735_vm3 = vmmov %vm6725_vm2 }
 0x3e7   : > { %4191 = vmatprep.mubr.msk.f32.mxu1 %vm6731_vm8, %v5652_v46  ;;  %vm6732_vm8 = vmmov %vm6727_vm0 }
 0x4b5   : > { %v4169_v29 = vpop.f32.mrb[8].mxu1 }
 0x4b6   : > { %v1165_v3 = vadd.f32 %v4169_v29, %v710_v17  ;;  %v1145_v59 = vpop.f32.mrb[9].mxu1 }
 0x4b7   : > { %v1164_v24 = vadd.f32 %v1145_v59, %v704_v14 }
 0x4b8   : > { %v3815_v57 = vmul.f32 -1.442695, %v1165_v3 }
 0x4b9   : > { %v3814_v36 = vmul.f32 -1.442695, %v1164_v24  ;;  %v4172_v25 = vpop.f32.mrb[10].mxu1 }
 0x4ba   : > { %4761 = vpow2.f32 %v3815_v57  ;;  %v1167_v13 = vadd.f32 %v4172_v25, %v722_v52  ;;  %v1155_v39 = vpop.f32.mrb[11].mxu1 }
 0x4bb   : > { %4763 = vpow2.f32 %v3814_v36  ;;  %v1166_v63 = vadd.f32 %v1155_v39, %v716_v32 }
 0x4bc   : > { %v3817_v20 = vmul.f32 -1.442695, %v1167_v13 }
 0x4bd   : > { %v3816_v17 = vmul.f32 -1.442695, %v1166_v63 }
 0x4be   : > { %4765 = vpow2.f32 %v3817_v20 }
 0x4bf   : > { %4767 = vpow2.f32 %v3816_v17  ;;  %v706_v17 = vadd.f32 %v5624_v61, %v5482_v40 }
 0x4c4   : > { %v4762_v60 = vpop.eup %4761 }
 0x4c5   : > { %v4764_v29 = vpop.eup %4763  ;;  %v1181_v14 = vadd.f32 1.0, %v4762_v60  ;;  %v712_v60 = vadd.f32 %v5628_v0, %v5496_v45 }
 0x4c6   : > { %v1180_v59 = vadd.f32 1.0, %v4764_v29 }
 0x4c7   : > { %4769 = vrcp.f32 %v1181_v14 }
 0x4c8   : > { %v4766_v11 = vpop.eup %4765  ;;  %4771 = vrcp.f32 %v1180_v59 }
 0x4c9   : > { %v1183_v22 = vadd.f32 1.0, %v4766_v11  ;;  %v4768_v5 = vpop.eup %4767 }
 0x4ca   : > { %v1182_v57 = vadd.f32 1.0, %v4768_v5  ;;  %v724_v5 = vadd.f32 %v5636_v28, %v5494_v44 }
 0x4cb   : > { %4773 = vrcp.f32 %v1183_v22 }
 0x4cc   : > { %4775 = vrcp.f32 %v1182_v57 }
 0x4d1   : > { %v4770_v3 = vpop.eup %4769 }
 0x4d2   : > { %v4772_v24 = vpop.eup %4771  ;;  %v1192_v36 = vmul.f32 %v4770_v3, %v1070_v8 }
 0x4d5   : > { %v4774_v52 = vpop.eup %4773 }
 0x4d6   : > { %v1193_v32 = vmul.f32 %v4774_v52, %v4772_v24  ;;  %v4776_v20 = vpop.eup %4775  ;;  %v718_v24 = vadd.f32 %v5632_v9, %v5501_v48 }
 0x4d8   : > { %v1194_v25 = vadd.f32 %v1193_v32, %v1192_v36 }
 0x4da   : > { %4777 = vtanh.f32 %v1194_v25 }
 0x4e4   : > { %v4778_v13 = vpop.eup %4777 }
 0x4e5   : > { %v5832_v39 = vmul.f32 %v4778_v13, %v4776_v20 }
 0x4e7   : > { %1200 = vrot.lane.b32.xlu1 %v5832_v39, %s5148_s17  ;;  %1197 = vrot.lane.b32.xlu0 %v5832_v39, %s5150_s15 }
 0x559   : > { %v5838_v11 = vpop.permute.xlu0 %1197  ;;  %v5844_v8 = vpop.permute.xlu1 %1200 }
 0x55a   : > { %v4464_v63 = vpack.c.bf16 %v5832_v39, %v5838_v11 }
 0x55c   : > { %4466 = vmatprep.subr.msk.bf16.mxu0 %vm5437_vm6, %v4464_v63 }
 0x55d   : > { %4469 = vmatpush3.bf16.msk.msra.mxu0 %vm5437_vm6, %v4464_v63 }
 0x55e   : > { %4177 = vmatprep.subr.msk.mxu0 %vm6732_vm8, %v5844_v8  ;;  %vm6736_vm8 = vmmov %vm6727_vm0 }
 0x561   : > { %4178 = vmatpush3.msk.msra.mxu0 %vm6727_vm0, %v5844_v8 }
 0x562   : > { %4180 = vmatmul.mubr.msk.f32.vlgmr.msra.gmra.mrb[28].mxu0 %vm6733_vm5, %v5711_v2  ;;  %vm6737_vm5 = vmmov %vm6725_vm2 }
 0x563   : > { %4182 = vmatprep.mubr.msk.f32.mxu0 %vm6734_vm10, %v5720_v16  ;;  %vm6738_vm10 = vmmov %vm6725_vm2 }
 0x566   : > { %4183 = vmatmul.mubr.msk.f32.gmra.mrb[30].mxu0 %vm6725_vm2, %v5745_v35 }
 0x567   : > { %4203 = vmatprep.mubr.msk.f32.mxu0 %vm6735_vm3, %v5652_v46  ;;  %vm6739_vm3 = vmmov %vm6725_vm2 }
 0x635   : > { %v4181_v29 = vpop.f32.mrb[28].mxu0 }
 0x636   : > { %v1289_v14 = vadd.f32 %v4181_v29, %v712_v60  ;;  %v1269_v59 = vpop.f32.mrb[29].mxu0 }
 0x637   : > { %v1288_v22 = vadd.f32 %v1269_v59, %v706_v17 }
 0x638   : > { %v3825_v3 = vmul.f32 -1.442695, %v1289_v14 }
 0x639   : > { %v3824_v52 = vmul.f32 -1.442695, %v1288_v22  ;;  %v4184_v57 = vpop.f32.mrb[30].mxu0 }
 0x63a   : > { %4779 = vpow2.f32 %v3825_v3  ;;  %v1291_v36 = vadd.f32 %v4184_v57, %v724_v5  ;;  %v1279_v32 = vpop.f32.mrb[31].mxu0 }
 0x63b   : > { %4781 = vpow2.f32 %v3824_v52  ;;  %v1290_v0 = vadd.f32 %v1279_v32, %v718_v24 }
 0x63c   : > { %v3827_v20 = vmul.f32 -1.442695, %v1291_v36 }
 0x63d   : > { %v3826_v13 = vmul.f32 -1.442695, %v1290_v0 }
 0x63e   : > { %4783 = vpow2.f32 %v3827_v20 }
 0x63f   : > { %4785 = vpow2.f32 %v3826_v13  ;;  %v793_v13 = vadd.f32 %v5640_v30, %v5482_v40 }
 0x644   : > { %v4780_v61 = vpop.eup %4779 }
 0x645   : > { %v4782_v63 = vpop.eup %4781  ;;  %v1305_v60 = vadd.f32 1.0, %v4780_v61  ;;  %v799_v61 = vadd.f32 %v5645_v37, %v5496_v45 }
 0x646   : > { %v1304_v17 = vadd.f32 1.0, %v4782_v63 }
 0x647   : > { %4787 = vrcp.f32 %v1305_v60 }
 0x648   : > { %v4784_v29 = vpop.eup %4783  ;;  %4789 = vrcp.f32 %v1304_v17 }
 0x649   : > { %v1307_v28 = vadd.f32 1.0, %v4784_v29  ;;  %v4786_v9 = vpop.eup %4785 }
 0x64a   : > { %v1306_v5 = vadd.f32 1.0, %v4786_v9 }
 0x64b   : > { %4791 = vrcp.f32 %v1307_v28  ;;  %v811_v28 = vadd.f32 %v5660_v53, %v5494_v44 }
 0x64c   : > { %4793 = vrcp.f32 %v1306_v5 }
 0x651   : > { %v4788_v14 = vpop.eup %4787 }
 0x652   : > { %v4790_v59 = vpop.eup %4789  ;;  %v1316_v3 = vmul.f32 %v4788_v14, %v1194_v25  ;;  %v805_v14 = vadd.f32 %v5654_v47, %v5501_v48 }
 0x655   : > { %v4792_v22 = vpop.eup %4791 }
 0x656   : > { %v1317_v24 = vmul.f32 %v4792_v22, %v4790_v59  ;;  %v4794_v57 = vpop.eup %4793 }
 0x658   : > { %v1318_v52 = vadd.f32 %v1317_v24, %v1316_v3 }
 0x65a   : > { %4795 = vtanh.f32 %v1318_v52 }
 0x664   : > { %v4796_v36 = vpop.eup %4795 }
 0x665   : > { %v5870_v32 = vmul.f32 %v4796_v36, %v4794_v57 }
 0x667   : > { %1324 = vrot.lane.b32.xlu1 %v5870_v32, %s5148_s17  ;;  %1321 = vrot.lane.b32.xlu0 %v5870_v32, %s5150_s15 }
 0x6d9   : > { %v5876_v0 = vpop.permute.xlu0 %1321  ;;  %v5882_v25 = vpop.permute.xlu1 %1324 }
 0x6da   : > { %v4470_v20 = vpack.c.bf16 %v5870_v32, %v5876_v0 }
 0x6dc   : > { %4472 = vmatprep.subr.msk.bf16.mxu1 %vm5437_vm6, %v4470_v20 }
 0x6dd   : > { %4475 = vmatpush3.bf16.msk.msra.mxu1 %vm5437_vm6, %v4470_v20 }
 0x6de   : > { %4189 = vmatprep.subr.msk.mxu1 %vm6736_vm8, %v5882_v25  ;;  %vm6740_vm8 = vmmov %vm6727_vm0 }
 0x6e1   : > { %4190 = vmatpush3.msk.msra.mxu1 %vm6727_vm0, %v5882_v25 }
 0x6e2   : > { %4192 = vmatmul.mubr.msk.f32.vlgmr.msra.gmra.mrb[12].mxu1 %vm6737_vm5, %v5711_v2  ;;  %vm6741_vm5 = vmmov %vm6725_vm2 }
 0x6e3   : > { %4194 = vmatprep.mubr.msk.f32.mxu1 %vm6738_vm10, %v5720_v16  ;;  %vm6742_vm10 = vmmov %vm6725_vm2 }
 0x6e6   : > { %4195 = vmatmul.mubr.msk.f32.gmra.mrb[14].mxu1 %vm6725_vm2, %v5745_v35 }
 0x6e7   : > { %4215 = vmatprep.mubr.msk.f32.mxu1 %vm6739_vm3, %v5652_v46  ;;  %vm6743_vm3 = vmmov %vm6725_vm2 }
 0x7b5   : > { %v4193_v63 = vpop.f32.mrb[12].mxu1 }
 0x7b6   : > { %v1413_v60 = vadd.f32 %v4193_v63, %v799_v61  ;;  %v1393_v17 = vpop.f32.mrb[13].mxu1 }
 0x7b7   : > { %v1412_v29 = vadd.f32 %v1393_v17, %v793_v13 }
 0x7b8   : > { %v3835_v9 = vmul.f32 -1.442695, %v1413_v60 }
 0x7b9   : > { %v3834_v59 = vmul.f32 -1.442695, %v1412_v29  ;;  %v4196_v22 = vpop.f32.mrb[14].mxu1 }
 0x7ba   : > { %4797 = vpow2.f32 %v3835_v9  ;;  %v1415_v5 = vadd.f32 %v4196_v22, %v811_v28  ;;  %v1403_v3 = vpop.f32.mrb[15].mxu1 }
 0x7bb   : > { %4799 = vpow2.f32 %v3834_v59  ;;  %v1414_v37 = vadd.f32 %v1403_v3, %v805_v14 }
 0x7bc   : > { %v3837_v24 = vmul.f32 -1.442695, %v1415_v5 }
 0x7bd   : > { %v3836_v57 = vmul.f32 -1.442695, %v1414_v37 }
 0x7be   : > { %4801 = vpow2.f32 %v3837_v24  ;;  %v801_v24 = vadd.f32 %v5647_v41, %v5496_v45 }
 0x7bf   : > { %4803 = vpow2.f32 %v3836_v57 }
 0x7c4   : > { %v4798_v30 = vpop.eup %4797 }
 0x7c5   : > { %v4800_v36 = vpop.eup %4799  ;;  %v1429_v20 = vadd.f32 1.0, %v4798_v30  ;;  %v795_v30 = vadd.f32 %v5642_v34, %v5482_v40 }
 0x7c6   : > { %v1428_v61 = vadd.f32 1.0, %v4800_v36 }
 0x7c7   : > { %4805 = vrcp.f32 %v1429_v20 }
 0x7c8   : > { %v4802_v13 = vpop.eup %4801  ;;  %4807 = vrcp.f32 %v1428_v61 }
 0x7c9   : > { %v1431_v53 = vadd.f32 1.0, %v4802_v13  ;;  %v4804_v47 = vpop.eup %4803  ;;  %v813_v13 = vadd.f32 %v5664_v55, %v5494_v44 }
 0x7ca   : > { %v1430_v29 = vadd.f32 1.0, %v4804_v47  ;;  %v807_v47 = vadd.f32 %v5658_v50, %v5501_v48 }
 0x7cb   : > { %4809 = vrcp.f32 %v1431_v53 }
 0x7cc   : > { %4811 = vrcp.f32 %v1430_v29 }
 0x7d1   : > { %v4806_v63 = vpop.eup %4805 }
 0x7d2   : > { %v4808_v60 = vpop.eup %4807  ;;  %v1440_v28 = vmul.f32 %v4806_v63, %v1318_v52 }
 0x7d5   : > { %v4810_v17 = vpop.eup %4809 }
 0x7d6   : > { %v1441_v9 = vmul.f32 %v4810_v17, %v4808_v60  ;;  %v4812_v59 = vpop.eup %4811 }
 0x7d8   : > { %v1442_v14 = vadd.f32 %v1441_v9, %v1440_v28 }
 0x7da   : > { %4813 = vtanh.f32 %v1442_v14 }
 0x7e4   : > { %v4814_v22 = vpop.eup %4813 }
 0x7e5   : > { %v5908_v5 = vmul.f32 %v4814_v22, %v4812_v59 }
 0x7e7   : > { %1448 = vrot.lane.b32.xlu1 %v5908_v5, %s5148_s17  ;;  %1445 = vrot.lane.b32.xlu0 %v5908_v5, %s5150_s15 }
 0x859   : > { %v5914_v3 = vpop.permute.xlu0 %1445  ;;  %v5920_v52 = vpop.permute.xlu1 %1448 }
 0x85a   : > { %v4476_v37 = vpack.c.bf16 %v5908_v5, %v5914_v3 }
 0x85c   : > { %4478 = vmatprep.subr.msk.bf16.mxu0 %vm5437_vm6, %v4476_v37 }
 0x85d   : > { %4481 = vmatpush3.bf16.msk.msra.mxu0 %vm5437_vm6, %v4476_v37 }
 0x85e   : > { %4201 = vmatprep.subr.msk.mxu0 %vm6740_vm8, %v5920_v52  ;;  %vm6744_vm8 = vcmp.lt.s32.totalorder %v5414_v18, 1 }
 0x861   : > { %4202 = vmatpush3.msk.msra.mxu0 %vm6727_vm0, %v5920_v52 }
 0x862   : > { %4204 = vmatmul.mubr.msk.f32.vlgmr.msra.gmra.mrb[32].mxu0 %vm6741_vm5, %v5711_v2  ;;  %vm6745_vm5 = vmmov %vm6727_vm0 }
 0x863   : > { %4206 = vmatprep.mubr.msk.f32.mxu0 %vm6742_vm10, %v5720_v16  ;;  %vm6746_vm10 = vmmov %vm6725_vm2 }
 0x866   : > { %4207 = vmatmul.mubr.msk.f32.gmra.mrb[34].mxu0 %vm6725_vm2, %v5745_v35 }
 0x867   : > { %4227 = vmatprep.mubr.msk.f32.mxu0 %vm6743_vm3, %v5652_v46  ;;  %vm6747_vm3 = vmmov %vm6725_vm2 }
 0x935   : > { %v4205_v57 = vpop.f32.mrb[32].mxu0 }
 0x936   : > { %v1537_v36 = vadd.f32 %v4205_v57, %v801_v24  ;;  %v1517_v20 = vpop.f32.mrb[33].mxu0 }
 0x937   : > { %v1536_v61 = vadd.f32 %v1517_v20, %v795_v30 }
 0x938   : > { %v3845_v53 = vmul.f32 -1.442695, %v1537_v36 }
 0x939   : > { %v3844_v63 = vmul.f32 -1.442695, %v1536_v61  ;;  %v4208_v60 = vpop.f32.mrb[34].mxu0 }
 0x93a   : > { %4815 = vpow2.f32 %v3845_v53  ;;  %v1539_v46 = vadd.f32 %v4208_v60, %v813_v13  ;;  %v1527_v17 = vpop.f32.mrb[35].mxu0 }
 0x93b   : > { %4817 = vpow2.f32 %v3844_v63  ;;  %v1538_v41 = vadd.f32 %v1527_v17, %v807_v47 }
 0x93c   : > { %v3847_v29 = vmul.f32 -1.442695, %v1539_v46 }
 0x93d   : > { %v3846_v28 = vmul.f32 -1.442695, %v1538_v41 }
 0x93e   : > { %4819 = vpow2.f32 %v3847_v29  ;;  %v6748_v29 = vmov 0.0  }
 0x93f   : > { %4821 = vpow2.f32 %v3846_v28 }
 0x944   : > { %v4816_v34 = vpop.eup %4815 }
 0x945   : > { %v4818_v9 = vpop.eup %4817  ;;  %v1553_v59 = vadd.f32 1.0, %v4816_v34  ;;  %v882_v34 = vadd.f32 %v5777_v6, %v5482_v40 }
 0x946   : > { %v1552_v22 = vadd.f32 1.0, %v4818_v9 }
 0x947   : > { %4823 = vrcp.f32 %v1553_v59 }
 0x948   : > { %v4820_v37 = vpop.eup %4819  ;;  %4825 = vrcp.f32 %v1552_v22 }
 0x949   : > { %v1555_v55 = vadd.f32 1.0, %v4820_v37  ;;  %v4822_v50 = vpop.eup %4821 }
 0x94a   : > { %v1554_v36 = vadd.f32 1.0, %v4822_v50 }
 0x94b   : > { %4827 = vrcp.f32 %v1555_v55  ;;  %v894_v55 = vadd.f32 %v5785_v38, %v5501_v48 }
 0x94c   : > { %4829 = vrcp.f32 %v1554_v36 }
 0x951   : > { %v4824_v24 = vpop.eup %4823 }
 0x952   : > { %v4826_v30 = vpop.eup %4825  ;;  %v1564_v20 = vmul.f32 %v4824_v24, %v1442_v14  ;;  %v1837_v14 = vsel %vm6744_vm8, %v5678_v12, %v5800_v19 }
 0x953   : > { %v4494_v41 = vpack.c.bf16 %v5794_v23, %v1837_v14  ;;  %v888_v23 = vadd.f32 %v5781_v21, %v5496_v45 }
 0x955   : > { %v4828_v57 = vpop.eup %4827 }
 0x956   : > { %v1565_v61 = vmul.f32 %v4828_v57, %v4826_v30  ;;  %v4830_v53 = vpop.eup %4829 }
 0x958   : > { %v1566_v13 = vadd.f32 %v1565_v61, %v1564_v20 }
 0x95a   : > { %4831 = vtanh.f32 %v1566_v13 }
 0x964   : > { %v4832_v47 = vpop.eup %4831 }
 0x965   : > { %v5946_v63 = vmul.f32 %v4832_v47, %v4830_v53 }
 0x967   : > { %1572 = vrot.lane.b32.xlu1 %v5946_v63, %s5148_s17  ;;  %1569 = vrot.lane.b32.xlu0 %v5946_v63, %s5150_s15 }
 0x9d9   : > { %v5952_v60 = vpop.permute.xlu0 %1569  ;;  %v5962_v17 = vpop.permute.xlu1 %1572 }
 0x9da   : > { %v4482_v46 = vpack.c.bf16 %v5946_v63, %v5952_v60 }
 0x9dc   : > { %4484 = vmatprep.subr.msk.bf16.mxu1 %vm5437_vm6, %v4482_v46 }
 0x9dd   : > { %4487 = vmatpush3.bf16.msk.msra.mxu1 %vm5437_vm6, %v4482_v46 }
 0x9de   : > { %4213 = vmatprep.subr.msk.mxu1 %vm6727_vm0, %v5962_v17 }
 0x9e1   : > { %4214 = vmatpush3.msk.msra.mxu1 %vm6745_vm5, %v5962_v17  ;;  %vm6751_vm5 = vmmov %vm6727_vm0 }
 0x9e2   : > { %4216 = vmatmul.mubr.msk.f32.vlgmr.msra.gmra.mrb[16].mxu1 %vm6746_vm10, %v5711_v2  ;;  %4496 = vmatprep.subr.msk.bf16.mxu1 %vm5422_vm4, %v4494_v41  ;;  %vm6749_vm4 = vmmov %vm6744_vm8 }
 0x9e3   : > { %4218 = vmatprep.mubr.msk.f32.mxu1 %vm6725_vm2, %v5720_v16  ;;  %vm6750_vm8 = vmmov %vm6749_vm4 }
 0x9e4   : > { %vm6752_vm10 = vmmov %vm6725_vm2 }
 0x9e5   : > { %vm6753_vm2 = vmmov %vm6727_vm0 }
 0x9e6   : > { %4219 = vmatmul.mubr.msk.f32.gmra.mrb[18].mxu1 %vm6747_vm3, %v5745_v35 }
 0x9e7   : > { %1961 = vmatprep.mubr.f32.mxu1 %v6748_v29 }
 0xab5   : > { %v4217_v28 = vpop.f32.mrb[16].mxu1 }
 0xab6   : > { %v1661_v9 = vadd.f32 %v4217_v28, %v888_v23  ;;  %v1641_v59 = vpop.f32.mrb[17].mxu1 }
 0xab7   : > { %v1660_v22 = vadd.f32 %v1641_v59, %v882_v34 }
 0xab8   : > { %v3855_v37 = vmul.f32 -1.442695, %v1661_v9 }
 0xab9   : > { %v3854_v50 = vmul.f32 -1.442695, %v1660_v22  ;;  %v4220_v24 = vpop.f32.mrb[18].mxu1 }
 0xaba   : > { %4833 = vpow2.f32 %v3855_v37  ;;  %v1663_v30 = vadd.f32 %v4220_v24, %v900_v26  ;;  %v1651_v57 = vpop.f32.mrb[19].mxu1 }
 0xabb   : > { %4835 = vpow2.f32 %v3854_v50  ;;  %v1662_v21 = vadd.f32 %v1651_v57, %v894_v55  ;;  %v1828_v55 = vld [vmem:[%s6642_s6 + $0x18] sm:$0xff] }
 0xabc   : > { %v3857_v36 = vmul.f32 -1.442695, %v1663_v30  ;;  %v1835_v30 = vsel %vm6749_vm4, %v5838_v11, %v5876_v0  ;;  %vm6754_vm4 = vmmov %vm6747_vm3 }
 0xabd   : > { %v3856_v20 = vmul.f32 -1.442695, %v1662_v21  ;;  %v1836_v21 = vsel %vm6750_vm8, %v5800_v19, %v5838_v11  ;;  %v1852_v19 = vsel %vm6753_vm2, %v5882_v25, %v5920_v52 }
 0xabe   : > { %4837 = vpow2.f32 %v3857_v36  ;;  %v4500_v36 = vpack.c.bf16 %v5870_v32, %v1835_v30 }
 0xabf   : > { %4839 = vpow2.f32 %v3856_v20  ;;  %v902_v20 = vadd.f32 %v5791_v42, %v5494_v44 }
 0xac4   : > { %v4834_v6 = vpop.eup %4833 }
 0xac5   : > { %v4836_v61 = vpop.eup %4835  ;;  %v1677_v53 = vadd.f32 1.0, %v4834_v6  ;;  %v4503_v6 = vpack.c.bf16 %v5832_v39, %v1836_v21 }
 0xac6   : > { %v1676_v47 = vadd.f32 1.0, %v4836_v61 }
 0xac7   : > { %4841 = vrcp.f32 %v1677_v53  ;;  %v896_v53 = vadd.f32 %v5787_v43, %v5501_v48 }
 0xac8   : > { %v4838_v46 = vpop.eup %4837  ;;  %4843 = vrcp.f32 %v1676_v47 }
 0xac9   : > { %v1679_v56 = vadd.f32 1.0, %v4838_v46  ;;  %v4840_v38 = vpop.eup %4839 }
 0xaca   : > { %v1678_v34 = vadd.f32 1.0, %v4840_v38 }
 0xacb   : > { %4845 = vrcp.f32 %v1679_v56 }
 0xacc   : > { %4847 = vrcp.f32 %v1678_v34 }
 0xad1   : > { %v4842_v14 = vpop.eup %4841 }
 0xad2   : > { %v4844_v41 = vpop.eup %4843  ;;  %v1688_v28 = vmul.f32 %v4842_v14, %v1566_v13  ;;  %v1825_v13 = vld [vmem:[%s6642_s6] sm:$0xff] }
 0xad5   : > { %v4846_v23 = vpop.eup %4845 }
 0xad6   : > { %v1689_v9 = vmul.f32 %v4846_v23, %v4844_v41  ;;  %v4848_v22 = vpop.eup %4847 }
 0xad8   : > { %v5990_v59 = vadd.f32 %v1689_v9, %v1688_v28 }
 0xada   : > { %4849 = vtanh.f32 %v5990_v59 }
 0xae4   : > { %v4850_v26 = vpop.eup %4849 }
 0xae5   : > { %v5993_v37 = vmul.f32 %v4850_v26, %v4848_v22 }
 0xae7   : > { %1696 = vrot.lane.b32.xlu1 %v5993_v37, %s5148_s17  ;;  %1693 = vrot.lane.b32.xlu0 %v5993_v37, %s5150_s15 }
 0xaeb   : > { %1867 = vperm.xlu1 %4713, %v1825_v13  }
 0xaef   : > { %1882 = vperm.xlu1 %4713, %v1828_v55  }
 0xb59   : > { %v6005_v50 = vpop.permute.xlu0 %1693  ;;  %v6015_v57 = vpop.permute.xlu1 %1696 }
 0xb5a   : > { %v4488_v24 = vpack.c.bf16 %v5993_v37, %v6005_v50 }
 0xb5c   : > { %4490 = vmatprep.subr.msk.bf16.mxu0 %vm5437_vm6, %v4488_v24 }
 0xb5d   : > { %4493 = vmatpush3.bf16.msk.msra.mxu0 %vm5437_vm6, %v4488_v24 }
 0xb5e   : > { %4225 = vmatprep.subr.msk.mxu0 %vm6727_vm0, %v6015_v57 }
 0xb61   : > { %4226 = vmatpush3.msk.msra.mxu0 %vm6751_vm5, %v6015_v57 }
 0xb62   : > { %4228 = vmatmul.mubr.msk.f32.vlgmr.msra.gmra.mrb[36].mxu0 %vm6752_vm10, %v5711_v2  ;;  %4502 = vmatprep.subr.msk.bf16.mxu0 %vm5510_vm11, %v4500_v36  ;;  %vm6755_vm11 = vmmov %vm6727_vm0  ;;  %v6081_v2 = vld [vmem:[%s6640_s4 + $0x18] sm:$0xff]  ;;  %vm6760_vm0 = vcmp.lt.s32.totalorder %v5414_v18, 1 }
 0xb63   : > { %4505 = vmatpush1.bf16.msk.msra.mxu0 %vm5517_vm12, %v4503_v6  ;;  %4230 = vmatprep.mubr.msk.f32.mxu0 %vm6747_vm3, %v5720_v16  ;;  %v1853_v58 = vsel %vm6755_vm11, %v5844_v8, %v5882_v25  ;;  %vm6756_vm12 = vmmov %vm6747_vm3  ;;  %v890_v16 = vadd.f32 %v5783_v49, %v5496_v45 }
 0xb64   : > { %3878 = vmatprep.subr.msk.mxu0 %vm5523_vm13, %v1852_v19  ;;  %vm6757_vm13 = vmmov %vm6747_vm3 }
 0xb65   : > { %vm6761_vm5 = vmmov %vm6760_vm0 }
 0xb66   : > { %4231 = vmatmul.mubr.msk.f32.gmra.mrb[38].mxu0 %vm6754_vm4, %v5745_v35  ;;  %v884_v35 = vadd.f32 %v5779_v15, %v5482_v40  ;;  %vm6762_vm10 = vmmov %vm6760_vm0 }
 0xb67   : > { %3879 = vmatpush1.msk.msra.mxu0 %vm5537_vm1, %v1853_v58  ;;  %2050 = vmatprep.mubr.f32.mxu0 %v6748_v29  ;;  %vm6758_vm1 = vmmov %vm6747_vm3 }
 0xb68   : > { %vm6759_vm8 = vmmov %vm6758_vm1 }
 0xb69   : > { %vm6763_vm2 = vmmov %vm6760_vm0 }
 0xb6a   : > { %3880 = vmatmul.mubr.msk.f32.vlgmr.msra.gmra.mrb[40].mxu0 %vm6756_vm12, %v6057_v62  ;;  %vm6764_vm3 = vmmov %vm6755_vm11 }
 0xb6b   : > { %2056 = vmatprep.mubr.f32.mxu0 %v6748_v29  ;;  %vm6765_vm4 = vmmov %vm6760_vm0 }
 0xb6c   : > { %vm6767_vm11 = vmmov %vm6764_vm3 }
 0xb6d   : > { %vm6768_vm12 = vmmov %vm6758_vm1 }
 0xb6e   : > { %3881 = vmatmul.mubr.msk.f32.gmra.mrb[42].mxu0 %vm6757_vm13, %v6065_v1 }
 0xb6f   : > { %2062 = vmatprep.mubr.f32.mxu0 %v6748_v29 }
 0xb72   : > { %3882 = vmatmul.mubr.msk.f32.gmra.mrb[44].mxu0 %vm6758_vm1, %v6073_v7 }
 0xb73   : > { %2068 = vmatprep.mubr.f32.mxu0 %v6748_v29 }
 0xb76   : > { %3883 = vmatmul.mubr.msk.f32.gmra.mrb[46].mxu0 %vm6759_vm8, %v6081_v2 }
 0xb77   : > { %2228 = vmatprep.mubr.f32.mxu0 %v6748_v29 }
 0xc35   : > { %v4229_v39 = vpop.f32.mrb[36].mxu0 }
 0xc36   : > { %v1785_v11 = vadd.f32 %v4229_v39, %v890_v16  ;;  %v1765_v32 = vpop.f32.mrb[37].mxu0 }
 0xc37   : > { %v1784_v25 = vadd.f32 %v1765_v32, %v884_v35  ;;  %v1832_v32 = vsel %vm6760_vm0, %v5952_v60, %v6005_v50  ;;  %vm6778_vm0 = vmmov %vm6758_vm1 }
 0xc38   : > { %v3865_v61 = vmul.f32 -1.442695, %v1785_v11  ;;  %v1826_v11 = vld [vmem:[%s6642_s6 + $0x8] sm:$0xff] }
 0xc39   : > { %v3864_v47 = vmul.f32 -1.442695, %v1784_v25  ;;  %v4232_v46 = vpop.f32.mrb[38].mxu0 }
 0xc3a   : > { %4851 = vpow2.f32 %v3865_v61  ;;  %v1787_v56 = vadd.f32 %v4232_v46, %v902_v20  ;;  %v1775_v38 = vpop.f32.mrb[39].mxu0  ;;  %v4515_v46 = vpack.c.bf16 %v5993_v37, %v1832_v32 }
 0xc3b   : > { %4853 = vpow2.f32 %v3864_v47  ;;  %v1786_v45 = vadd.f32 %v1775_v38, %v896_v53 }
 0xc3c   : > { %v3867_v49 = vmul.f32 -1.442695, %v1787_v56  ;;  %v1833_v56 = vsel %vm6763_vm2, %v5914_v3, %v5952_v60  ;;  %vm6781_vm2 = vmmov %vm6778_vm0 }
 0xc3d   : > { %v6094_v40 = vpop.f32.mrb[40].mxu0  ;;  %v3866_v41 = vmul.f32 -1.442695, %v1786_v45  ;;  %v4506_v60 = vpack.c.bf16 %v5946_v63, %v1833_v56 }
 0xc3e   : > { %4855 = vpow2.f32 %v3867_v49  ;;  %v6096_v15 = vpop.f32.mrb[41].mxu0 }
 0xc3f   : > { %4857 = vpow2.f32 %v3866_v41 }
 0xc41   : > { %v6098_v14 = vpop.f32.mrb[42].mxu0 }
 0xc42   : > { %v6100_v44 = vpop.f32.mrb[43].mxu0 }
 0xc44   : > { %v4852_v42 = vpop.eup %4851 }
 0xc45   : > { %v4854_v48 = vpop.eup %4853  ;;  %v1801_v43 = vadd.f32 1.0, %v4852_v42  ;;  %v6102_v23 = vpop.f32.mrb[44].mxu0 }
 0xc46   : > { %v1800_v34 = vadd.f32 1.0, %v4854_v48  ;;  %v6104_v28 = vpop.f32.mrb[45].mxu0 }
 0xc47   : > { %4859 = vrcp.f32 %v1801_v43 }
 0xc48   : > { %v4856_v9 = vpop.eup %4855  ;;  %4861 = vrcp.f32 %v1800_v34 }
 0xc49   : > { %v1803_v22 = vadd.f32 1.0, %v4856_v9  ;;  %v6106_v26 = vpop.f32.mrb[46].mxu0  ;;  %v4858_v55 = vpop.eup %4857 }
 0xc4a   : > { %v6108_v13 = vpop.f32.mrb[47].mxu0  ;;  %v1802_v36 = vadd.f32 1.0, %v4858_v55 }
 0xc4b   : > { %4863 = vrcp.f32 %v1803_v22 }
 0xc4c   : > { %4865 = vrcp.f32 %v1802_v36 }
 0xc51   : > { %v4860_v24 = vpop.eup %4859 }
 0xc52   : > { %v4862_v30 = vpop.eup %4861  ;;  %v1812_v6 = vmul.f32 %v4860_v24, %v5990_v59  ;;  %v1827_v59 = vld [vmem:[%s6642_s6 + $0x10] sm:$0xff] }
 0xc55   : > { %v4864_v21 = vpop.eup %4863 }
 0xc56   : > { %v1813_v19 = vmul.f32 %v4864_v21, %v4862_v30  ;;  %v4866_v16 = vpop.eup %4865 }
 0xc58   : > { %v1814_v58 = vadd.f32 %v1813_v19, %v1812_v6 }
 0xc5a   : > { %4867 = vtanh.f32 %v1814_v58 }
 0xc64   : > { %v4868_v35 = vpop.eup %4867 }
 0xc65   : > { %v6111_v39 = vmul.f32 %v4868_v35, %v4866_v16 }
 0xc67   : > { %1829 = vrot.lane.b32.xlu0 %v6111_v39, %s5150_s15 }
 0xc6b   : > { %1872 = vperm.xlu0 %4714, %v1826_v11  }
 0xc6f   : > { %1877 = vperm.xlu0 %4714, %v1827_v59  }
 0xcd9   : > { %v1830_v25 = vpop.permute.xlu0 %1829 }
 0xcda   : > { %v1831_v20 = vsel %vm6761_vm5, %v6005_v50, %v1830_v25  ;;  %v1838_v61 = vsel %vm6762_vm10, %v1830_v25, %v5678_v12  ;;  %v1834_v12 = vsel %vm6765_vm4, %v5876_v0, %v5914_v3  ;;  %v6776_v3 = vld [vmem:[#allocation16_spill] sm:$0xff]  ;;  %vm6779_vm5 = vmmov %vm6778_vm0 }
 0xcdb   : > { %v4497_v53 = vpack.c.bf16 %v5662_v54, %v1838_v61  ;;  %v4512_v47 = vpack.c.bf16 %v6111_v39, %v1831_v20  ;;  %v1854_v54 = vsel %vm6764_vm3, %v5806_v4, %v5844_v8  ;;  %v4509_v8 = vpack.c.bf16 %v5908_v5, %v1834_v12  ;;  %vm6780_vm10 = vmmov %vm6778_vm0 }
 0xcdc   : > { %vm6777_vm8 = vnez %v6776_v3  ;;  %vm6783_vm4 = vmmov %vm6778_vm0 }
 0xcdd   : > { %4499 = vmatpush1.bf16.msk.msra.mxu1 %vm5437_vm6, %v4497_v53  ;;  %4514 = vmatprep.subr.msk.bf16.mxu0 %vm5697_vm15, %v4512_v47  ;;  %vm6766_vm15 = vmmov %vm6764_vm3 }
 0xcde   : > { %3870 = vmatprep.subr.msk.mxu1 %vm5443_vm7, %v1854_v54  ;;  %4517 = vmatpush1.bf16.msk.msra.mxu0 %vm5704_vm14, %v4515_v46  ;;  %v1855_v51 = vsel %vm6766_vm15, %v5676_v10, %v5806_v4  ;;  %vm6771_vm7 = vnez %v6770_v27  ;;  %vm6772_vm14 = vmmov %vm6764_vm3  ;;  %v6773_v4 = vld [vmem:[#allocation15_spill] sm:$0xff] }
 0xcdf   : > { %v1850_v0 = vsel %vm6772_vm14, %v5962_v17, %v6015_v57  ;;  %vm6774_vm13 = vnez %v6773_v4  ;;  %vm6784_vm15 = vmmov %vm6778_vm0 }
 0xce1   : > { %3871 = vmatpush1.msk.msra.mxu1 %vm6767_vm11, %v1855_v51 }
 0xce2   : > { %3872 = vmatmul.mubr.msk.f32.vlgmr.msra.gmra.mrb[20].mxu1 %vm6768_vm12, %v6057_v62  ;;  %4508 = vmatprep.subr.msk.bf16.mxu1 %vm5548_vm9, %v4506_v60  ;;  %vm6775_vm9 = vmmov %vm6764_vm3 }
 0xce3   : > { %4511 = vmatpush1.bf16.msk.msra.mxu1 %vm6771_vm7, %v4509_v8  ;;  %1967 = vmatprep.mubr.f32.mxu1 %v6748_v29  ;;  %v1851_v5 = vsel %vm6775_vm9, %v5920_v52, %v5962_v17  ;;  %vm6782_vm3 = vmmov %vm6778_vm0  ;;  %v6203_v17 = vpop.permute.xlu1 %1867 }
 0xce4   : > { %3886 = vmatprep.subr.msk.mxu1 %vm6774_vm13, %v1850_v0  ;;  %v6243_v0 = vld [vmem:[%s6641_s5] sm:$0xff]  ;;  %vm6785_vm11 = vmmov %vm6775_vm9 }
 0xce5   : > { %vm6786_vm12 = vmmov %vm6775_vm9 }
 0xce6   : > { %3873 = vmatmul.mubr.msk.f32.gmra.mrb[22].mxu1 %vm6758_vm1, %v6065_v1  ;;  %vm6787_vm7 = vmmov %vm6775_vm9 }
 0xce7   : > { %3887 = vmatpush1.msk.msra.mxu1 %vm6777_vm8, %v1851_v5  ;;  %1973 = vmatprep.mubr.f32.mxu1 %v6748_v29  ;;  %v6213_v34 = vpop.permute.xlu1 %1882  ;;  %vm6792_vm1 = vmmov %vm6778_vm0 }
 0xce8   : > { %vm6793_vm9 = vmmov %vm6787_vm7 }
 0xce9   : > { %vm6794_vm8 = vmmov %vm6778_vm0 }
 0xcea   : > { %3874 = vmatmul.mubr.msk.f32.gmra.mrb[24].mxu1 %vm6778_vm0, %v6073_v7  ;;  %v6205_v37 = vpop.permute.xlu0 %1872 }
 0xceb   : > { %1979 = vmatprep.mubr.f32.mxu1 %v6748_v29 }
 0xcee   : > { %3875 = vmatmul.mubr.msk.f32.gmra.mrb[26].mxu1 %vm6779_vm5, %v6081_v2  ;;  %v6222_v36 = vpop.permute.xlu0 %1877  ;;  %vm6795_vm5 = vmmov %vm6778_vm0 }
 0xcef   : > { %2139 = vmatprep.mubr.f32.mxu1 %v6748_v29 }
 0xcf2   : > { %3888 = vmatmul.mubr.msk.f32.vlgmr.msra.gmra.mrb[28].mxu1 %vm6780_vm10, %v6057_v62  ;;  %vm6796_vm10 = vmmov %vm6778_vm0 }
 0xcf3   : > { %2145 = vmatprep.mubr.f32.mxu1 %v6748_v29 }
 0xcf6   : > { %3889 = vmatmul.mubr.msk.f32.gmra.mrb[30].mxu1 %vm6781_vm2, %v6065_v1  ;;  %vm6797_vm2 = vmmov %vm6778_vm0 }
 0xcf7   : > { %2151 = vmatprep.mubr.f32.mxu1 %v6748_v29 }
 0xcfa   : > { %3890 = vmatmul.mubr.msk.f32.gmra.mrb[32].mxu1 %vm6782_vm3, %v6073_v7  ;;  %vm6798_vm3 = vmmov %vm6778_vm0 }
 0xcfb   : > { %2157 = vmatprep.mubr.f32.mxu1 %v6748_v29 }
 0xcfe   : > { %3891 = vmatmul.mubr.msk.f32.gmra.mrb[34].mxu1 %vm6783_vm4, %v6081_v2  ;;  %vm6799_vm4 = vmmov %vm6778_vm0 }
 0xcff   : > { %4239 = vmatprep.mubr.msk.f32.mxu1 %vm6784_vm15, %v6243_v0  ;;  %vm6800_vm15 = vmmov %vm6778_vm0 }
 0xdb5   : > { %v1963_v52 = vpop.f32.mrb[20].mxu1 }
 0xdb6   : > { %v6201_v63 = vpop.f32.mrb[21].mxu1  ;;  %v1964_v50 = vadd.f32 %v1963_v52, %v6203_v17 }
 0xdb8   : > { %v3900_v41 = vmul.f32 -1.442695, %v1964_v50 }
 0xdb9   : > { %v1969_v38 = vpop.f32.mrb[22].mxu1 }
 0xdba   : > { %v1970_v45 = vadd.f32 %v1969_v38, %v6205_v37  ;;  %v6209_v49 = vpop.f32.mrb[23].mxu1 }
 0xdbc   : > { %v3901_v42 = vmul.f32 -1.442695, %v1970_v45 }
 0xdbd   : > { %v1975_v48 = vpop.f32.mrb[24].mxu1 }
 0xdbe   : > { %v6211_v43 = vpop.f32.mrb[25].mxu1  ;;  %4869 = vpow2.f32 %v3901_v42  ;;  %v1976_v6 = vadd.f32 %v1975_v48, %v6222_v36  ;;  %v6268_v48 = vld [vmem:[%s6641_s5 + $0x8] sm:$0xff] }
 0xdbf   : > { %4871 = vpow2.f32 %v3900_v41 }
 0xdc0   : > { %v3902_v11 = vmul.f32 -1.442695, %v1976_v6 }
 0xdc1   : > { %v1981_v9 = vpop.f32.mrb[26].mxu1 }
 0xdc2   : > { %v1982_v22 = vadd.f32 %v1981_v9, %v6213_v34  ;;  %v6216_v55 = vpop.f32.mrb[27].mxu1  ;;  %v6790_v9 = vld [vmem:[#allocation18_spill] sm:$0xff] }
 0xdc3   : > { %vm6791_vm13 = vnez %v6790_v9 }
 0xdc4   : > { %v3903_v24 = vmul.f32 -1.442695, %v1982_v22  ;;  %v1966_v22 = vadd.f32 %v6201_v63, %v6203_v17 }
 0xdc5   : > { %v6218_v30 = vpop.f32.mrb[28].mxu1 }
 0xdc6   : > { %4873 = vpow2.f32 %v3903_v24  ;;  %v6220_v21 = vpop.f32.mrb[29].mxu1 }
 0xdc7   : > { %4875 = vpow2.f32 %v3902_v11 }
 0xdc8   : > { %v4870_v58 = vpop.eup %4869 }
 0xdc9   : > { %v6225_v19 = vpop.f32.mrb[30].mxu1  ;;  %v4872_v35 = vpop.eup %4871  ;;  %v2266_v59 = vadd.f32 1.0, %v4870_v58 }
 0xdca   : > { %v6227_v16 = vpop.f32.mrb[31].mxu1  ;;  %v2265_v25 = vadd.f32 1.0, %v4872_v35 }
 0xdcb   : > { %4877 = vrcp.f32 %v2266_v59 }
 0xdcc   : > { %4879 = vrcp.f32 %v2265_v25 }
 0xdcd   : > { %v6229_v32 = vpop.f32.mrb[32].mxu1 }
 0xdce   : > { %v6231_v20 = vpop.f32.mrb[33].mxu1 }
 0xdd0   : > { %v4874_v61 = vpop.eup %4873 }
 0xdd1   : > { %v2268_v53 = vadd.f32 1.0, %v4874_v61  ;;  %v6233_v47 = vpop.f32.mrb[34].mxu1  ;;  %v4876_v56 = vpop.eup %4875 }
 0xdd2   : > { %v6235_v46 = vpop.f32.mrb[35].mxu1  ;;  %v2267_v51 = vadd.f32 1.0, %v4876_v56 }
 0xdd3   : > { %4881 = vrcp.f32 %v2268_v53 }
 0xdd4   : > { %4883 = vrcp.f32 %v2267_v51 }
 0xdd5   : > { %v4878_v54 = vpop.eup %4877 }
 0xdd6   : > { %v4880_v12 = vpop.eup %4879  ;;  %v2277_v8 = vmul.f32 0.0, %v4878_v54 }
 0xddd   : > { %v4882_v60 = vpop.eup %4881 }
 0xdde   : > { %v2278_v33 = vmul.f32 %v4882_v60, %v4880_v12  ;;  %v4884_v4 = vpop.eup %4883 }
 0xde0   : > { %v6237_v27 = vadd.f32 %v2278_v33, %v2277_v8 }
 0xde2   : > { %4885 = vtanh.f32 %v6237_v27 }
 0xdec   : > { %v4886_v5 = vpop.eup %4885 }
 0xded   : > { %v2281_v3 = vmul.f32 %v4886_v5, %v4884_v4 }
 0xdef   : > { %2285 = vrot.lane.b32.xlu0 %v2281_v3, %s5148_s17  ;;  %2282 = vrot.lane.b32.xlu1 %v2281_v3, %s5150_s15 }
 0xdf3   : > { %1847 = vrot.lane.b32.xlu1 %v6111_v39, %s5148_s17  ;;  %v6788_v39 = vld [vmem:[#allocation17_spill] sm:$0xff] }
 0xdf4   : > { %vm6789_vm14 = vnez %v6788_v39 }
 0xe61   : > { %v2283_v52 = vpop.permute.xlu1 %2282  ;;  %v2286_v38 = vpop.permute.xlu0 %2285 }
 0xe62   : > { %v4518_v50 = vpack.c.bf16 %v2281_v3, %v2283_v52 }
 0xe64   : > { %4520 = vmatprep.subr.msk.bf16.mxu1 %vm5437_vm6, %v4518_v50 }
 0xe65   : > { %4523 = vmatpush3.bf16.msk.msra.mxu1 %vm5437_vm6, %v4518_v50  ;;  %v1848_v45 = vpop.permute.xlu1 %1847 }
 0xe66   : > { %v1849_v42 = vsel %vm6785_vm11, %v6015_v57, %v1848_v45  ;;  %v1856_v41 = vsel %vm6786_vm12, %v1848_v45, %v5676_v10  ;;  %4237 = vmatprep.subr.msk.mxu1 %vm6787_vm7, %v2286_v38  ;;  %v6275_v57 = vld [vmem:[%s6641_s5 + $0x10] sm:$0xff]  ;;  %v6289_v10 = vld [vmem:[%s6641_s5 + $0x18] sm:$0xff]  ;;  %vm6801_vm11 = vmmov %vm6787_vm7 }
 0xe67   : > { %3894 = vmatprep.subr.msk.mxu0 %vm6789_vm14, %v1856_v41  ;;  %vm6802_vm12 = vmmov %vm6787_vm7 }
 0xe68   : > { %3895 = vmatpush1.msk.msra.mxu0 %vm6791_vm13, %v1849_v42  ;;  %vm6803_vm7 = vmmov %vm6778_vm0 }
 0xe69   : > { %3896 = vmatmul.mubr.msk.f32.vlgmr.msra.gmra.mrb[48].mxu0 %vm6792_vm1, %v6057_v62  ;;  %4238 = vmatpush3.msk.msra.mxu1 %vm6793_vm9, %v2286_v38  ;;  %v1972_v62 = vadd.f32 %v6209_v49, %v6205_v37  ;;  %v1978_v49 = vadd.f32 %v6211_v43, %v6222_v36  ;;  %vm6804_vm14 = vmmov %vm6778_vm0 }
 0xe6a   : > { %4240 = vmatmul.mubr.msk.f32.vlgmr.msra.gmra.mrb[36].mxu1 %vm6794_vm8, %v6268_v48  ;;  %2234 = vmatprep.mubr.f32.mxu0 %v6748_v29  ;;  %vm6805_vm13 = vmmov %vm6778_vm0 }
 0xe6b   : > { %4242 = vmatprep.mubr.msk.f32.mxu1 %vm6778_vm0, %v6275_v57  ;;  %vm6806_vm1 = vmmov %vm6778_vm0 }
 0xe6c   : > { %vm6807_vm8 = vmmov %vm6793_vm9 }
 0xe6d   : > { %3897 = vmatmul.mubr.msk.f32.gmra.mrb[50].mxu0 %vm6795_vm5, %v6065_v1  ;;  %vm6808_vm5 = vmmov %vm6778_vm0 }
 0xe6e   : > { %4243 = vmatmul.mubr.msk.f32.gmra.mrb[38].mxu1 %vm6796_vm10, %v6289_v10  ;;  %2240 = vmatprep.mubr.f32.mxu0 %v6748_v29  ;;  %vm6809_vm10 = vmmov %vm6778_vm0 }
 0xe6f   : > { %4263 = vmatprep.mubr.msk.f32.mxu1 %vm6797_vm2, %v6243_v0  ;;  %vm6810_vm2 = vmmov %vm6778_vm0 }
 0xe71   : > { %3898 = vmatmul.mubr.msk.f32.gmra.mrb[52].mxu0 %vm6798_vm3, %v6073_v7  ;;  %vm6811_vm3 = vmmov %vm6807_vm8 }
 0xe72   : > { %2246 = vmatprep.mubr.f32.mxu0 %v6748_v29 }
 0xe75   : > { %3899 = vmatmul.mubr.msk.f32.gmra.mrb[54].mxu0 %vm6799_vm4, %v6081_v2  ;;  %v1984_v2 = vadd.f32 %v6216_v55, %v6213_v34  ;;  %vm6812_vm4 = vmmov %vm6811_vm3 }
 0xe76   : > { %4251 = vmatprep.mubr.msk.f32.mxu0 %vm6800_vm15, %v6243_v0  ;;  %vm6813_vm15 = vmmov %vm6778_vm0 }
 0xf3c   : > { %v6307_v1 = vpop.f32.mrb[48].mxu0 }
 0xf3d   : > { %v6311_v24 = vpop.f32.mrb[49].mxu0  ;;  %v4241_v6 = vpop.f32.mrb[36].mxu1 }
 0xf3e   : > { %v2386_v7 = vadd.f32 %v4241_v6, %v1972_v62  ;;  %v2366_v58 = vpop.f32.mrb[37].mxu1 }
 0xf3f   : > { %v2385_v35 = vadd.f32 %v2366_v58, %v1966_v22 }
 0xf40   : > { %v3911_v11 = vmul.f32 -1.442695, %v2386_v7  ;;  %v6315_v59 = vpop.f32.mrb[50].mxu0 }
 0xf41   : > { %v3910_v25 = vmul.f32 -1.442695, %v2385_v35  ;;  %v6319_v61 = vpop.f32.mrb[51].mxu0  ;;  %v4244_v53 = vpop.f32.mrb[38].mxu1 }
 0xf42   : > { %4887 = vpow2.f32 %v3911_v11  ;;  %v2388_v63 = vadd.f32 %v4244_v53, %v1984_v2  ;;  %v2376_v56 = vpop.f32.mrb[39].mxu1 }
 0xf43   : > { %4889 = vpow2.f32 %v3910_v25  ;;  %v2387_v54 = vadd.f32 %v2376_v56, %v1978_v49  ;;  %v2053_v49 = vadd.f32 %v6094_v40, %v6203_v17 }
 0xf44   : > { %v3913_v12 = vmul.f32 -1.442695, %v2388_v63  ;;  %v6321_v60 = vpop.f32.mrb[52].mxu0 }
 0xf45   : > { %v6323_v51 = vpop.f32.mrb[53].mxu0  ;;  %v3912_v33 = vmul.f32 -1.442695, %v2387_v54  ;;  %v2071_v54 = vadd.f32 %v6106_v26, %v6213_v34 }
 0xf46   : > { %4891 = vpow2.f32 %v3913_v12 }
 0xf47   : > { %4893 = vpow2.f32 %v3912_v33 }
 0xf48   : > { %v6325_v55 = vpop.f32.mrb[54].mxu0 }
 0xf49   : > { %v6327_v8 = vpop.f32.mrb[55].mxu0 }
 0xf4c   : > { %v4888_v43 = vpop.eup %4887 }
 0xf4d   : > { %v4890_v4 = vpop.eup %4889  ;;  %v2402_v5 = vadd.f32 1.0, %v4888_v43 }
 0xf4e   : > { %v2401_v3 = vadd.f32 1.0, %v4890_v4  ;;  %v2065_v4 = vadd.f32 %v6102_v23, %v6222_v36 }
 0xf4f   : > { %4895 = vrcp.f32 %v2402_v5 }
 0xf50   : > { %v4892_v52 = vpop.eup %4891  ;;  %4897 = vrcp.f32 %v2401_v3 }
 0xf51   : > { %v2404_v50 = vadd.f32 1.0, %v4892_v52  ;;  %v4894_v38 = vpop.eup %4893 }
 0xf52   : > { %v2403_v39 = vadd.f32 1.0, %v4894_v38 }
 0xf53   : > { %4899 = vrcp.f32 %v2404_v50 }
 0xf54   : > { %4901 = vrcp.f32 %v2403_v39 }
 0xf59   : > { %v4896_v45 = vpop.eup %4895 }
 0xf5a   : > { %v4898_v42 = vpop.eup %4897  ;;  %v2413_v9 = vmul.f32 %v4896_v45, %v6237_v27  ;;  %v2059_v27 = vadd.f32 %v6098_v14, %v6205_v37 }
 0xf5d   : > { %v4900_v41 = vpop.eup %4899 }
 0xf5e   : > { %v2414_v62 = vmul.f32 %v4900_v41, %v4898_v42  ;;  %v4902_v6 = vpop.eup %4901 }
 0xf60   : > { %v2415_v22 = vadd.f32 %v2414_v62, %v2413_v9 }
 0xf62   : > { %4903 = vtanh.f32 %v2415_v22 }
 0xf6c   : > { %v4904_v7 = vpop.eup %4903 }
 0xf6d   : > { %v2417_v58 = vmul.f32 %v4904_v7, %v4902_v6 }
 0xf6f   : > { %2421 = vrot.lane.b32.xlu1 %v2417_v58, %s5148_s17  ;;  %2418 = vrot.lane.b32.xlu0 %v2417_v58, %s5150_s15 }
 0xfe1   : > { %v2419_v35 = vpop.permute.xlu0 %2418  ;;  %v2422_v11 = vpop.permute.xlu1 %2421 }
 0xfe2   : > { %v4524_v2 = vpack.c.bf16 %v2417_v58, %v2419_v35 }
 0xfe4   : > { %4526 = vmatprep.subr.msk.bf16.mxu0 %vm5437_vm6, %v4524_v2 }
 0xfe5   : > { %4529 = vmatpush3.bf16.msk.msra.mxu0 %vm5437_vm6, %v4524_v2 }
 0xfe6   : > { %4249 = vmatprep.subr.msk.mxu0 %vm6801_vm11, %v2422_v11  ;;  %vm6814_vm11 = vmmov %vm6778_vm0 }
 0xfe9   : > { %4250 = vmatpush3.msk.msra.mxu0 %vm6802_vm12, %v2422_v11  ;;  %vm6815_vm12 = vmmov %vm6778_vm0 }
 0xfea   : > { %4252 = vmatmul.mubr.msk.f32.vlgmr.msra.gmra.mrb[56].mxu0 %vm6803_vm7, %v6268_v48  ;;  %vm6816_vm7 = vmmov %vm6778_vm0 }
 0xfeb   : > { %4254 = vmatprep.mubr.msk.f32.mxu0 %vm6804_vm14, %v6275_v57  ;;  %vm6817_vm14 = vmmov %vm6811_vm3 }
 0xfee   : > { %4255 = vmatmul.mubr.msk.f32.gmra.mrb[58].mxu0 %vm6805_vm13, %v6289_v10  ;;  %vm6818_vm13 = vmmov %vm6811_vm3 }
 0xfef   : > { %4275 = vmatprep.mubr.msk.f32.mxu0 %vm6806_vm1, %v6243_v0  ;;  %vm6819_vm1 = vmmov %vm6778_vm0 }
0x10bd   : > { %v4253_v25 = vpop.f32.mrb[56].mxu0 }
0x10be   : > { %v2510_v53 = vadd.f32 %v4253_v25, %v2059_v27  ;;  %v2490_v63 = vpop.f32.mrb[57].mxu0 }
0x10bf   : > { %v2509_v56 = vadd.f32 %v2490_v63, %v2053_v49  ;;  %v2055_v63 = vadd.f32 %v6096_v15, %v6203_v17 }
0x10c0   : > { %v3921_v12 = vmul.f32 -1.442695, %v2510_v53 }
0x10c1   : > { %v3920_v43 = vmul.f32 -1.442695, %v2509_v56  ;;  %v4256_v33 = vpop.f32.mrb[58].mxu0 }
0x10c2   : > { %4905 = vpow2.f32 %v3921_v12  ;;  %v2512_v5 = vadd.f32 %v4256_v33, %v2071_v54  ;;  %v2500_v3 = vpop.f32.mrb[59].mxu0  ;;  %v2073_v33 = vadd.f32 %v6108_v13, %v6213_v34 }
0x10c3   : > { %4907 = vpow2.f32 %v3920_v43  ;;  %v2511_v14 = vadd.f32 %v2500_v3, %v2065_v4 }
0x10c4   : > { %v3923_v52 = vmul.f32 -1.442695, %v2512_v5 }
0x10c5   : > { %v3922_v50 = vmul.f32 -1.442695, %v2511_v14  ;;  %v2067_v14 = vadd.f32 %v6104_v28, %v6222_v36 }
0x10c6   : > { %4909 = vpow2.f32 %v3923_v52 }
0x10c7   : > { %4911 = vpow2.f32 %v3922_v50 }
0x10cc   : > { %v4906_v40 = vpop.eup %4905 }
0x10cd   : > { %v4908_v38 = vpop.eup %4907  ;;  %v2526_v45 = vadd.f32 1.0, %v4906_v40 }
0x10ce   : > { %v2525_v42 = vadd.f32 1.0, %v4908_v38 }
0x10cf   : > { %4913 = vrcp.f32 %v2526_v45 }
0x10d0   : > { %v4910_v41 = vpop.eup %4909  ;;  %4915 = vrcp.f32 %v2525_v42 }
0x10d1   : > { %v2528_v26 = vadd.f32 1.0, %v4910_v41  ;;  %v4912_v39 = vpop.eup %4911 }
0x10d2   : > { %v2527_v6 = vadd.f32 1.0, %v4912_v39 }
0x10d3   : > { %4917 = vrcp.f32 %v2528_v26 }
0x10d4   : > { %4919 = vrcp.f32 %v2527_v6 }
0x10d9   : > { %v4914_v23 = vpop.eup %4913 }
0x10da   : > { %v4916_v9 = vpop.eup %4915  ;;  %v2537_v7 = vmul.f32 %v4914_v23, %v2415_v22  ;;  %v2061_v22 = vadd.f32 %v6100_v44, %v6205_v37 }
0x10dd   : > { %v4918_v62 = vpop.eup %4917 }
0x10de   : > { %v2538_v58 = vmul.f32 %v4918_v62, %v4916_v9  ;;  %v4920_v2 = vpop.eup %4919 }
0x10e0   : > { %v2539_v35 = vadd.f32 %v2538_v58, %v2537_v7 }
0x10e2   : > { %4921 = vtanh.f32 %v2539_v35 }
0x10ec   : > { %v4922_v11 = vpop.eup %4921 }
0x10ed   : > { %v2541_v27 = vmul.f32 %v4922_v11, %v4920_v2 }
0x10ef   : > { %2545 = vrot.lane.b32.xlu1 %v2541_v27, %s5148_s17  ;;  %2542 = vrot.lane.b32.xlu0 %v2541_v27, %s5150_s15 }
0x1161   : > { %v2543_v49 = vpop.permute.xlu0 %2542  ;;  %v2546_v53 = vpop.permute.xlu1 %2545 }
0x1162   : > { %v4530_v25 = vpack.c.bf16 %v2541_v27, %v2543_v49 }
0x1164   : > { %4532 = vmatprep.subr.msk.bf16.mxu1 %vm5437_vm6, %v4530_v25 }
0x1165   : > { %4535 = vmatpush3.bf16.msk.msra.mxu1 %vm5437_vm6, %v4530_v25 }
0x1166   : > { %4261 = vmatprep.subr.msk.mxu1 %vm6793_vm9, %v2546_v53  ;;  %vm6820_vm9 = vmmov %vm6778_vm0 }
0x1169   : > { %4262 = vmatpush3.msk.msra.mxu1 %vm6807_vm8, %v2546_v53  ;;  %vm6821_vm8 = vmmov %vm6778_vm0 }
0x116a   : > { %4264 = vmatmul.mubr.msk.f32.vlgmr.msra.gmra.mrb[40].mxu1 %vm6778_vm0, %v6268_v48 }
0x116b   : > { %4266 = vmatprep.mubr.msk.f32.mxu1 %vm6808_vm5, %v6275_v57  ;;  %vm6822_vm5 = vmmov %vm6811_vm3 }
0x116e   : > { %4267 = vmatmul.mubr.msk.f32.gmra.mrb[42].mxu1 %vm6809_vm10, %v6289_v10  ;;  %vm6823_vm10 = vmmov %vm6811_vm3 }
0x116f   : > { %4287 = vmatprep.mubr.msk.f32.mxu1 %vm6810_vm2, %v6243_v0  ;;  %vm6824_vm2 = vmmov %vm6778_vm0 }
0x123d   : > { %v4265_v56 = vpop.f32.mrb[40].mxu1 }
0x123e   : > { %v2634_v54 = vadd.f32 %v4265_v56, %v2061_v22  ;;  %v2614_v12 = vpop.f32.mrb[41].mxu1  ;;  %v2142_v22 = vadd.f32 %v6218_v30, %v6203_v17 }
0x123f   : > { %v2633_v43 = vadd.f32 %v2614_v12, %v2055_v63 }
0x1240   : > { %v3931_v4 = vmul.f32 -1.442695, %v2634_v54 }
0x1241   : > { %v3930_v5 = vmul.f32 -1.442695, %v2633_v43  ;;  %v4268_v3 = vpop.f32.mrb[42].mxu1  ;;  %v2160_v43 = vadd.f32 %v6233_v47, %v6213_v34 }
0x1242   : > { %4923 = vpow2.f32 %v3931_v4  ;;  %v2636_v52 = vadd.f32 %v4268_v3, %v2073_v33  ;;  %v2624_v40 = vpop.f32.mrb[43].mxu1  ;;  %v2154_v4 = vadd.f32 %v6229_v32, %v6222_v36 }
0x1243   : > { %4925 = vpow2.f32 %v3930_v5  ;;  %v2635_v44 = vadd.f32 %v2624_v40, %v2067_v14 }
0x1244   : > { %v3933_v50 = vmul.f32 -1.442695, %v2636_v52 }
0x1245   : > { %v3932_v38 = vmul.f32 -1.442695, %v2635_v44 }
0x1246   : > { %4927 = vpow2.f32 %v3933_v50 }
0x1247   : > { %4929 = vpow2.f32 %v3932_v38 }
0x124c   : > { %v4924_v15 = vpop.eup %4923 }
0x124d   : > { %v4926_v45 = vpop.eup %4925  ;;  %v2650_v42 = vadd.f32 1.0, %v4924_v15 }
0x124e   : > { %v2649_v41 = vadd.f32 1.0, %v4926_v45 }
0x124f   : > { %4931 = vrcp.f32 %v2650_v42 }
0x1250   : > { %v4928_v26 = vpop.eup %4927  ;;  %4933 = vrcp.f32 %v2649_v41 }
0x1251   : > { %v2652_v13 = vadd.f32 1.0, %v4928_v26  ;;  %v4930_v39 = vpop.eup %4929 }
0x1252   : > { %v2651_v62 = vadd.f32 1.0, %v4930_v39 }
0x1253   : > { %4935 = vrcp.f32 %v2652_v13 }
0x1254   : > { %4937 = vrcp.f32 %v2651_v62 }
0x1259   : > { %v4932_v28 = vpop.eup %4931 }
0x125a   : > { %v4934_v23 = vpop.eup %4933  ;;  %v2661_v6 = vmul.f32 %v4932_v28, %v2539_v35  ;;  %v2148_v35 = vadd.f32 %v6225_v19, %v6205_v37 }
0x125d   : > { %v4936_v9 = vpop.eup %4935 }
0x125e   : > { %v2662_v7 = vmul.f32 %v4936_v9, %v4934_v23  ;;  %v4938_v2 = vpop.eup %4937 }
0x1260   : > { %v2663_v58 = vadd.f32 %v2662_v7, %v2661_v6 }
0x1262   : > { %4939 = vtanh.f32 %v2663_v58 }
0x126c   : > { %v4940_v11 = vpop.eup %4939 }
0x126d   : > { %v2665_v27 = vmul.f32 %v4940_v11, %v4938_v2 }
0x126f   : > { %2669 = vrot.lane.b32.xlu1 %v2665_v27, %s5148_s17  ;;  %2666 = vrot.lane.b32.xlu0 %v2665_v27, %s5150_s15 }
0x12e1   : > { %v2667_v49 = vpop.permute.xlu0 %2666  ;;  %v2670_v53 = vpop.permute.xlu1 %2669 }
0x12e2   : > { %v4536_v25 = vpack.c.bf16 %v2665_v27, %v2667_v49  ;;  %v2144_v27 = vadd.f32 %v6220_v21, %v6203_v17 }
0x12e4   : > { %4538 = vmatprep.subr.msk.bf16.mxu0 %vm5437_vm6, %v4536_v25 }
0x12e5   : > { %4541 = vmatpush3.bf16.msk.msra.mxu0 %vm5437_vm6, %v4536_v25 }
0x12e6   : > { %4273 = vmatprep.subr.msk.mxu0 %vm6811_vm3, %v2670_v53  ;;  %vm6825_vm3 = vmmov %vm6778_vm0 }
0x12e9   : > { %4274 = vmatpush3.msk.msra.mxu0 %vm6812_vm4, %v2670_v53  ;;  %vm6826_vm4 = vmmov %vm6778_vm0 }
0x12ea   : > { %4276 = vmatmul.mubr.msk.f32.vlgmr.msra.gmra.mrb[60].mxu0 %vm6813_vm15, %v6268_v48  ;;  %vm6827_vm15 = vmmov %vm6822_vm5 }
0x12eb   : > { %4278 = vmatprep.mubr.msk.f32.mxu0 %vm6814_vm11, %v6275_v57  ;;  %vm6828_vm11 = vmmov %vm6822_vm5 }
0x12ee   : > { %4279 = vmatmul.mubr.msk.f32.gmra.mrb[62].mxu0 %vm6815_vm12, %v6289_v10  ;;  %vm6829_vm12 = vmmov %vm6778_vm0 }
0x12ef   : > { %4299 = vmatprep.mubr.msk.f32.mxu0 %vm6816_vm7, %v6243_v0  ;;  %vm6830_vm7 = vmmov %vm6778_vm0 }
0x13bd   : > { %v4277_v63 = vpop.f32.mrb[60].mxu0 }
0x13be   : > { %v2758_v56 = vadd.f32 %v4277_v63, %v2148_v35  ;;  %v2738_v54 = vpop.f32.mrb[61].mxu0 }
0x13bf   : > { %v2757_v12 = vadd.f32 %v2738_v54, %v2142_v22  ;;  %v2162_v22 = vadd.f32 %v6235_v46, %v6213_v34 }
0x13c0   : > { %v3941_v33 = vmul.f32 -1.442695, %v2758_v56  ;;  %v2156_v56 = vadd.f32 %v6231_v20, %v6222_v36 }
0x13c1   : > { %v3940_v5 = vmul.f32 -1.442695, %v2757_v12  ;;  %v4280_v3 = vpop.f32.mrb[62].mxu0 }
0x13c2   : > { %4941 = vpow2.f32 %v3941_v33  ;;  %v2760_v14 = vadd.f32 %v4280_v3, %v2160_v43  ;;  %v2748_v52 = vpop.f32.mrb[63].mxu0 }
0x13c3   : > { %4943 = vpow2.f32 %v3940_v5  ;;  %v2759_v19 = vadd.f32 %v2748_v52, %v2154_v4 }
0x13c4   : > { %v3943_v40 = vmul.f32 -1.442695, %v2760_v14 }
0x13c5   : > { %v3942_v44 = vmul.f32 -1.442695, %v2759_v19 }
0x13c6   : > { %4945 = vpow2.f32 %v3943_v40 }
0x13c7   : > { %4947 = vpow2.f32 %v3942_v44 }
0x13cc   : > { %v4942_v30 = vpop.eup %4941 }
0x13cd   : > { %v4944_v50 = vpop.eup %4943  ;;  %v2774_v15 = vadd.f32 1.0, %v4942_v30 }
0x13ce   : > { %v2773_v38 = vadd.f32 1.0, %v4944_v50 }
0x13cf   : > { %4949 = vrcp.f32 %v2774_v15 }
0x13d0   : > { %v4946_v45 = vpop.eup %4945  ;;  %4951 = vrcp.f32 %v2773_v38 }
0x13d1   : > { %v2776_v47 = vadd.f32 1.0, %v4946_v45  ;;  %v4948_v32 = vpop.eup %4947 }
0x13d2   : > { %v2775_v13 = vadd.f32 1.0, %v4948_v32 }
0x13d3   : > { %4953 = vrcp.f32 %v2776_v47 }
0x13d4   : > { %4955 = vrcp.f32 %v2775_v13  ;;  %v2237_v13 = vadd.f32 %v6315_v59, %v6205_v37 }
0x13d9   : > { %v4950_v42 = vpop.eup %4949 }
0x13da   : > { %v4952_v41 = vpop.eup %4951  ;;  %v2785_v39 = vmul.f32 %v4950_v42, %v2663_v58  ;;  %v2150_v58 = vadd.f32 %v6227_v16, %v6205_v37 }
0x13dd   : > { %v4954_v26 = vpop.eup %4953 }
0x13de   : > { %v2786_v28 = vmul.f32 %v4954_v26, %v4952_v41  ;;  %v4956_v9 = vpop.eup %4955 }
0x13e0   : > { %v2787_v23 = vadd.f32 %v2786_v28, %v2785_v39  ;;  %v2231_v39 = vadd.f32 %v6307_v1, %v6203_v17 }
0x13e2   : > { %4957 = vtanh.f32 %v2787_v23 }
0x13ec   : > { %v4958_v62 = vpop.eup %4957 }
0x13ed   : > { %v2789_v6 = vmul.f32 %v4958_v62, %v4956_v9 }
0x13ef   : > { %2793 = vrot.lane.b32.xlu1 %v2789_v6, %s5148_s17  ;;  %2790 = vrot.lane.b32.xlu0 %v2789_v6, %s5150_s15 }
0x1461   : > { %v2791_v7 = vpop.permute.xlu0 %2790  ;;  %v2794_v11 = vpop.permute.xlu1 %2793 }
0x1462   : > { %v4542_v2 = vpack.c.bf16 %v2789_v6, %v2791_v7  ;;  %v2249_v6 = vadd.f32 %v6325_v55, %v6213_v34 }
0x1464   : > { %4544 = vmatprep.subr.msk.bf16.mxu1 %vm5437_vm6, %v4542_v2 }
0x1465   : > { %4547 = vmatpush3.bf16.msk.msra.mxu1 %vm5437_vm6, %v4542_v2  ;;  %v2243_v2 = vadd.f32 %v6321_v60, %v6222_v36 }
0x1466   : > { %4285 = vmatprep.subr.msk.mxu1 %vm6817_vm14, %v2794_v11  ;;  %vm6831_vm14 = vmmov %vm6778_vm0 }
0x1469   : > { %4286 = vmatpush3.msk.msra.mxu1 %vm6818_vm13, %v2794_v11 }
0x146a   : > { %4288 = vmatmul.mubr.msk.f32.vlgmr.msra.gmra.mrb[44].mxu1 %vm6819_vm1, %v6268_v48 }
0x146b   : > { %4290 = vmatprep.mubr.msk.f32.mxu1 %vm6820_vm9, %v6275_v57 }
0x146e   : > { %4291 = vmatmul.mubr.msk.f32.gmra.mrb[46].mxu1 %vm6821_vm8, %v6289_v10 }
0x146f   : > { %4311 = vmatprep.mubr.msk.f32.mxu1 %vm6778_vm0, %v6243_v0 }
0x153d   : > { %v4289_v49 = vpop.f32.mrb[44].mxu1 }
0x153e   : > { %v2882_v25 = vadd.f32 %v4289_v49, %v2150_v58  ;;  %v2862_v53 = vpop.f32.mrb[45].mxu1 }
0x153f   : > { %v2881_v35 = vadd.f32 %v2862_v53, %v2144_v27 }
0x1540   : > { %v3951_v63 = vmul.f32 -1.442695, %v2882_v25 }
0x1541   : > { %v3950_v54 = vmul.f32 -1.442695, %v2881_v35  ;;  %v4292_v12 = vpop.f32.mrb[46].mxu1 }
0x1542   : > { %4959 = vpow2.f32 %v3951_v63  ;;  %v2884_v0 = vadd.f32 %v4292_v12, %v2162_v22  ;;  %v2872_v43 = vpop.f32.mrb[47].mxu1 }
0x1543   : > { %4961 = vpow2.f32 %v3950_v54  ;;  %v2883_v16 = vadd.f32 %v2872_v43, %v2156_v56 }
0x1544   : > { %v3953_v33 = vmul.f32 -1.442695, %v2884_v0 }
0x1545   : > { %v3952_v4 = vmul.f32 -1.442695, %v2883_v16 }
0x1546   : > { %4963 = vpow2.f32 %v3953_v33 }
0x1547   : > { %4965 = vpow2.f32 %v3952_v4 }
0x154c   : > { %v4960_v21 = vpop.eup %4959 }
0x154d   : > { %v4962_v5 = vpop.eup %4961  ;;  %v2898_v3 = vadd.f32 1.0, %v4960_v21 }
0x154e   : > { %v2897_v14 = vadd.f32 1.0, %v4962_v5 }
0x154f   : > { %4967 = vrcp.f32 %v2898_v3 }
0x1550   : > { %v4964_v52 = vpop.eup %4963  ;;  %4969 = vrcp.f32 %v2897_v14 }
0x1551   : > { %v2900_v46 = vadd.f32 1.0, %v4964_v52  ;;  %v4966_v20 = vpop.eup %4965 }
0x1552   : > { %v2899_v44 = vadd.f32 1.0, %v4966_v20  ;;  %v6832_v20 = vlaneseq }
0x1553   : > { %4971 = vrcp.f32 %v2900_v46 }
0x1554   : > { %4973 = vrcp.f32 %v2899_v44 }
0x1559   : > { %v4968_v19 = vpop.eup %4967 }
0x155a   : > { %v4970_v40 = vpop.eup %4969  ;;  %v2909_v50 = vmul.f32 %v4968_v19, %v2787_v23  ;;  %v6478_v19 = vshrl.u32 %v6832_v20, 7  ;;  %v3330_v20 = vld [vmem:[#allocation5] sm:$0xff] }
0x155c   : > { %v3215_v44 = vadd.s32 40, %v6478_v19 }
0x155d   : > { %v4972_v30 = vpop.eup %4971 }
0x155e   : > { %v2910_v15 = vmul.f32 %v4972_v30, %v4970_v40  ;;  %v4974_v45 = vpop.eup %4973  ;;  %v5152_v40 = vmov 0.0|0.0   ;;  %v3211_v30 = vadd.s32 8, %v6478_v19 }
0x1560   : > { %v2911_v38 = vadd.f32 %v2910_v15, %v2909_v50  ;;  %vm3228_vm13 = vcmp.eq.s32.totalorder %v3211_v30, %v6481_v31  ;;  %v5153_v50 = vmov 1.0|1.0   ;;  %v3216_v15 = vadd.s32 48, %v6478_v19  ;;  %v3332_v30 = vld [vmem:[#allocation5 + $0x10] sm:$0xff] }
0x1562   : > { %4975 = vtanh.f32 %v2911_v38 }
0x156c   : > { %v4976_v47 = vpop.eup %4975 }
0x156d   : > { %v2913_v32 = vmul.f32 %v4976_v47, %v4974_v45  ;;  %v3218_v45 = vadd.s32 64, %v6478_v19  ;;  %v3219_v47 = vadd.s32 72, %v6478_v19 }
0x156f   : > { %2917 = vrot.lane.b32.xlu1 %v2913_v32, %s5148_s17  ;;  %2914 = vrot.lane.b32.xlu0 %v2913_v32, %s5150_s15 }
0x15e1   : > { %v2915_v42 = vpop.permute.xlu0 %2914  ;;  %v2918_v26 = vpop.permute.xlu1 %2917 }
0x15e2   : > { %v4548_v41 = vpack.c.bf16 %v2913_v32, %v2915_v42  ;;  %v3220_v32 = vadd.s32 80, %v6478_v19  ;;  %v3221_v42 = vadd.s32 88, %v6478_v19 }
0x15e4   : > { %4550 = vmatprep.subr.msk.bf16.mxu0 %vm5437_vm6, %v4548_v41 }
0x15e5   : > { %4553 = vmatpush3.bf16.msk.msra.mxu0 %vm5437_vm6, %v4548_v41  ;;  %v2239_v41 = vadd.f32 %v6319_v61, %v6205_v37 }
0x15e6   : > { %4297 = vmatprep.subr.msk.mxu0 %vm6822_vm5, %v2918_v26 }
0x15e9   : > { %4298 = vmatpush3.msk.msra.mxu0 %vm6823_vm10, %v2918_v26  ;;  %vm3232_vm10 = vcmp.eq.s32.totalorder %v3215_v44, %v6481_v31  ;;  %v2233_v26 = vadd.f32 %v6311_v24, %v6203_v17 }
0x15ea   : > { %4300 = vmatmul.mubr.msk.f32.vlgmr.msra.gmra.mrb[64].mxu0 %vm6824_vm2, %v6268_v48  ;;  %4560 = vmatprep.subr.bf16.mxu0 %v5152_v40 }
0x15eb   : > { %4302 = vmatprep.mubr.msk.f32.mxu0 %vm6825_vm3, %v6275_v57  ;;  %vm3233_vm3 = vcmp.eq.s32.totalorder %v3216_v15, %v6481_v31 }
0x15ee   : > { %4303 = vmatmul.mubr.msk.f32.gmra.mrb[66].mxu0 %vm6826_vm4, %v6289_v10 }
0x16bd   : > { %v4301_v28 = vpop.f32.mrb[64].mxu0 }
0x16be   : > { %v3006_v23 = vadd.f32 %v4301_v28, %v2237_v13  ;;  %v2986_v9 = vpop.f32.mrb[65].mxu0 }
0x16bf   : > { %v3005_v62 = vadd.f32 %v2986_v9, %v2231_v39  ;;  %v2251_v9 = vadd.f32 %v6327_v8, %v6213_v34 }
0x16c0   : > { %v3961_v7 = vmul.f32 -1.442695, %v3006_v23 }
0x16c1   : > { %v3960_v11 = vmul.f32 -1.442695, %v3005_v62  ;;  %v4304_v58 = vpop.f32.mrb[66].mxu0 }
0x16c2   : > { %4977 = vpow2.f32 %v3961_v7  ;;  %v3008_v27 = vadd.f32 %v4304_v58, %v2249_v6  ;;  %v2996_v49 = vpop.f32.mrb[67].mxu0  ;;  %v2245_v6 = vadd.f32 %v6323_v51, %v6222_v36 }
0x16c3   : > { %4979 = vpow2.f32 %v3960_v11  ;;  %v3007_v59 = vadd.f32 %v2996_v49, %v2243_v2 }
0x16c4   : > { %v3963_v25 = vmul.f32 -1.442695, %v3008_v27 }
0x16c5   : > { %v3962_v53 = vmul.f32 -1.442695, %v3007_v59 }
0x16c6   : > { %4981 = vpow2.f32 %v3963_v25 }
0x16c7   : > { %4983 = vpow2.f32 %v3962_v53 }
0x16cc   : > { %v4978_v1 = vpop.eup %4977 }
0x16cd   : > { %v4980_v35 = vpop.eup %4979  ;;  %v3022_v22 = vadd.f32 1.0, %v4978_v1 }
0x16ce   : > { %v3021_v63 = vadd.f32 1.0, %v4980_v35 }
0x16cf   : > { %4985 = vrcp.f32 %v3022_v22 }
0x16d0   : > { %v4982_v56 = vpop.eup %4981  ;;  %4987 = vrcp.f32 %v3021_v63 }
0x16d1   : > { %v3024_v55 = vadd.f32 1.0, %v4982_v56  ;;  %v4984_v60 = vpop.eup %4983 }
0x16d2   : > { %v3023_v43 = vadd.f32 1.0, %v4984_v60 }
0x16d3   : > { %4989 = vrcp.f32 %v3024_v55 }
0x16d4   : > { %4991 = vrcp.f32 %v3023_v43 }
0x16d9   : > { %v4986_v54 = vpop.eup %4985 }
0x16da   : > { %v4988_v12 = vpop.eup %4987  ;;  %v3033_v16 = vmul.f32 %v4986_v54, %v2911_v38  ;;  %v3217_v38 = vadd.s32 56, %v6478_v19 }
0x16dc   : > { %vm3234_vm4 = vcmp.eq.s32.totalorder %v3217_v38, %v6481_v31  ;;  %v3334_v38 = vld [vmem:[#allocation5 + $0x20] sm:$0xff] }
0x16dd   : > { %v4990_v0 = vpop.eup %4989 }
0x16de   : > { %v3034_v33 = vmul.f32 %v4990_v0, %v4988_v12  ;;  %v4992_v4 = vpop.eup %4991  ;;  %v3222_v12 = vadd.s32 96, %v6478_v19  ;;  %v3223_v0 = vadd.s32 104, %v6478_v19 }
0x16e0   : > { %v6458_v21 = vadd.f32 %v3034_v33, %v3033_v16 }
0x16e2   : > { %4993 = vtanh.f32 %v6458_v21 }
0x16ec   : > { %v4994_v5 = vpop.eup %4993 }
0x16ed   : > { %v3037_v3 = vmul.f32 %v4994_v5, %v4992_v4  ;;  %v3224_v4 = vadd.s32 112, %v6478_v19  ;;  %v3225_v5 = vadd.s32 120, %v6478_v19 }
0x16ef   : > { %3041 = vrot.lane.b32.xlu1 %v3037_v3, %s5148_s17  ;;  %3038 = vrot.lane.b32.xlu0 %v3037_v3, %s5150_s15 }
0x1761   : > { %v3039_v14 = vpop.permute.xlu0 %3038  ;;  %v3042_v46 = vpop.permute.xlu1 %3041 }
0x1762   : > { %v4554_v52 = vpack.c.bf16 %v3037_v3, %v3039_v14 }
0x1764   : > { %4556 = vmatprep.subr.msk.bf16.mxu1 %vm5437_vm6, %v4554_v52 }
0x1765   : > { %4559 = vmatpush3.bf16.msk.msra.mxu1 %vm5437_vm6, %v4554_v52  ;;  %vm3227_vm6 = vcmp.eq.s32.totalorder %v6478_v19, %v6481_v31 }
0x1766   : > { %4309 = vmatprep.subr.msk.mxu1 %vm6827_vm15, %v3042_v46  ;;  %vm4561_vm8 = vmpackc.low %vm3228_vm13, %vm3227_vm6  ;;  %vm3238_vm6 = vcmp.eq.s32.totalorder %v3221_v42, %v6481_v31  ;;  %v3337_v42 = vld [vmem:[#allocation5 + $0x38] sm:$0xff] }
0x1767   : > { %4562 = vmatpush3.bf16.msk.msra.mxu0 %vm4561_vm8, %v5153_v50  ;;  %vm4570_vm15 = vmpackc.low %vm3234_vm4, %vm3233_vm3  ;;  %vm3183_vm3 = vcmask 1041408   ;;  %vm5154_vm4 = vmmov 0  }
0x1768   : > { %4563 = vmatprep.subr.bf16.mxu0 %v5152_v40  ;;  %4349 = vmatprep.mubr.msk.f32.mxu0 %vm5154_vm4, %v6748_v29 }
0x1769   : > { %4310 = vmatpush3.msk.msra.mxu1 %vm6828_vm11, %v3042_v46  ;;  %vm3235_vm11 = vcmp.eq.s32.totalorder %v3218_v45, %v6481_v31  ;;  %v3335_v45 = vld [vmem:[#allocation5 + $0x28] sm:$0xff] }
0x176a   : > { %4312 = vmatmul.mubr.msk.f32.vlgmr.msra.gmra.mrb[48].mxu1 %vm6829_vm12, %v6268_v48  ;;  %4584 = vmatprep.subr.bf16.mxu1 %v5152_v40  ;;  %v3212_v48 = vadd.s32 16, %v6478_v19  ;;  %vm3236_vm12 = vcmp.eq.s32.totalorder %v3219_v47, %v6481_v31  ;;  %v4591_v47 = vpack.c.bf16 %v3335_v45, %v3334_v38 }
0x176b   : > { %4314 = vmatprep.mubr.msk.f32.mxu1 %vm6830_vm7, %v6275_v57  ;;  %v3213_v57 = vadd.s32 24, %v6478_v19  ;;  %vm4573_vm7 = vmpackc.low %vm3236_vm12, %vm3235_vm11  ;;  %vm3189_vm11 = vcmp.ge.s32.totalorder %v5414_v18, 2  ;;  %vm6833_vm12 = vcmp.ge.s32.totalorder %v5414_v18, 1 }
0x176c   : > { %vm3229_vm1 = vcmp.eq.s32.totalorder %v3212_v48, %v6481_v31 }
0x176d   : > { %vm3230_vm9 = vcmp.eq.s32.totalorder %v3213_v57, %v6481_v31 }
0x176e   : > { %4315 = vmatmul.mubr.msk.f32.gmra.mrb[50].mxu1 %vm6831_vm14, %v6289_v10  ;;  %v3214_v10 = vadd.s32 32, %v6478_v19  ;;  %vm4564_vm0 = vmpackc.low %vm3230_vm9, %vm3229_vm1  ;;  %vm3237_vm14 = vcmp.eq.s32.totalorder %v3220_v32, %v6481_v31  ;;  %vm3239_vm1 = vcmp.eq.s32.totalorder %v3222_v12, %v6481_v31  ;;  %vm3240_vm9 = vcmp.eq.s32.totalorder %v3223_v0, %v6481_v31  ;;  %v3331_v19 = vld [vmem:[#allocation5 + $0x8] sm:$0xff]  ;;  %v3336_v32 = vld [vmem:[#allocation5 + $0x30] sm:$0xff] }
0x176f   : > { %4565 = vmatpush3.bf16.msk.msra.mxu0 %vm4564_vm0, %v5153_v50  ;;  %vm4576_vm13 = vmpackc.low %vm3238_vm6, %vm3237_vm14  ;;  %vm3241_vm0 = vcmp.eq.s32.totalorder %v3224_v4, %v6481_v31  ;;  %4368 = vmatprep.mubr.msk.f32.mxu1 %vm5154_vm4, %v6748_v29  ;;  %v4585_v57 = vpack.c.bf16 %v3331_v19, %v3330_v20  ;;  %vm6834_vm14 = vcmp.lt.s32.totalorder %v5414_v18, 127  ;;  %vm3338_vm6 = vcmask 523264   ;;  %v3502_v12 = vld [vmem:[#allocation5 + $0xa8] sm:$0xff]  ;;  %v3584_v20 = vld [vmem:[#allocation5 + $0xe0] sm:$0xff] }
0x1770   : > { %vm3231_vm5 = vcmp.eq.s32.totalorder %v3214_v10, %v6481_v31  ;;  %4566 = vmatprep.subr.bf16.mxu0 %v5152_v40  ;;  %vm4579_vm8 = vmpackc.low %vm3240_vm9, %vm3239_vm1  ;;  %v3333_v10 = vld [vmem:[#allocation5 + $0x18] sm:$0xff]  ;;  %v3581_v4 = vld [vmem:[#allocation5 + $0xc8] sm:$0xff] }
0x1771   : > { %vm4567_vm2 = vmpackc.low %vm3232_vm10, %vm3231_vm5  ;;  %vm3242_vm5 = vcmp.eq.s32.totalorder %v3225_v5, %v6481_v31  ;;  %4586 = vmatpush3.bf16.msra.mxu1 %v4585_v57  ;;  %v3585_v19 = vld [vmem:[#allocation5 + $0xe8] sm:$0xff] }
0x1772   : > { %vm4582_vm10 = vmpackc.low %vm3242_vm5, %vm3241_vm0  ;;  %4587 = vmatprep.subr.bf16.mxu1 %v5152_v40 }
0x1773   : > { %4568 = vmatpush3.bf16.msk.msra.mxu0 %vm4567_vm2, %v5153_v50  ;;  %vm3181_vm2 = vcmask 1040384  }
0x1774   : > { %4569 = vmatprep.subr.bf16.mxu0 %v5152_v40 }
0x1777   : > { %4571 = vmatpush3.bf16.msk.msra.mxu0 %vm4570_vm15, %v5153_v50  ;;  %vm3185_vm15 = vcmask 1042432  }
0x1778   : > { %4572 = vmatprep.subr.bf16.mxu0 %v5152_v40 }
0x177b   : > { %4574 = vmatpush3.bf16.msk.msra.mxu0 %vm4573_vm7, %v5153_v50  ;;  %vm3204_vm7 = vcmp.lt.s32.totalorder %v5414_v18, 126  ;;  %v3418_v18 = vld [vmem:[#allocation5 + $0x60] sm:$0xff] }
0x177c   : > { %4575 = vmatprep.subr.bf16.mxu0 %v5152_v40 }
0x177f   : > { %4577 = vmatpush3.bf16.msk.msra.mxu0 %vm4576_vm13, %v5153_v50 }
0x1780   : > { %4578 = vmatprep.subr.bf16.mxu0 %v5152_v40 }
0x1783   : > { %4580 = vmatpush3.bf16.msk.msra.mxu0 %vm4579_vm8, %v5153_v50 }
0x1784   : > { %4581 = vmatprep.subr.bf16.mxu0 %v5152_v40 }
0x1787   : > { %4583 = vmatpush3.bf16.msk.msra.mxu0 %vm4582_vm10, %v5153_v50  ;;  %v4588_v50 = vpack.c.bf16 %v3333_v10, %v3332_v30  ;;  %v4627_v30 = vpack.c.bf16 %v3585_v19, %v3584_v20  ;;  %v3329_v10 = vld [vmem:[%s6644_s8] sm:$0x1] }
0x1789   : > { %4589 = vmatpush3.bf16.msra.mxu1 %v4588_v50 }
0x178a   : > { %4590 = vmatprep.subr.bf16.mxu1 %v5152_v40 }
0x178d   : > { %4592 = vmatpush3.bf16.msra.mxu1 %v4591_v47 }
0x178e   : > { %4593 = vmatprep.subr.bf16.mxu1 %v5152_v40 }
0x183d   : > { %v4313_v13 = vpop.f32.mrb[48].mxu1 }
0x183e   : > { %v3130_v39 = vadd.f32 %v4313_v13, %v2239_v41  ;;  %v3110_v28 = vpop.f32.mrb[49].mxu1  ;;  %v4594_v41 = vpack.c.bf16 %v3337_v42, %v3336_v32 }
0x183f   : > { %v3129_v23 = vadd.f32 %v3110_v28, %v2233_v26 }
0x1840   : > { %v3971_v62 = vmul.f32 -1.442695, %v3130_v39  ;;  %4595 = vmatpush3.bf16.msra.mxu1 %v4594_v41 }
0x1841   : > { %v3970_v7 = vmul.f32 -1.442695, %v3129_v23  ;;  %v4316_v2 = vpop.f32.mrb[50].mxu1  ;;  %4596 = vmatprep.subr.bf16.mxu1 %v5152_v40 }
0x1842   : > { %4995 = vpow2.f32 %v3971_v62  ;;  %v3132_v11 = vadd.f32 %v4316_v2, %v2251_v9  ;;  %v3120_v58 = vpop.f32.mrb[51].mxu1 }
0x1843   : > { %4997 = vpow2.f32 %v3970_v7  ;;  %v3131_v37 = vadd.f32 %v3120_v58, %v2245_v6 }
0x1844   : > { %v3973_v61 = vmul.f32 -1.442695, %v3132_v11 }
0x1845   : > { %v3972_v24 = vmul.f32 -1.442695, %v3131_v37  ;;  %v3414_v37 = vld [vmem:[#allocation5 + $0x40] sm:$0xff] }
0x1846   : > { %4999 = vpow2.f32 %v3973_v61  ;;  %v3415_v61 = vld [vmem:[#allocation5 + $0x48] sm:$0xff] }
0x1847   : > { %5001 = vpow2.f32 %v3972_v24  ;;  %v3416_v24 = vld [vmem:[#allocation5 + $0x50] sm:$0xff] }
0x184c   : > { %v4996_v17 = vpop.eup %4995 }
0x184d   : > { %v4998_v27 = vpop.eup %4997  ;;  %v3146_v49 = vadd.f32 1.0, %v4996_v17  ;;  %v4597_v17 = vpack.c.bf16 %v3415_v61, %v3414_v37 }
0x184e   : > { %v3145_v59 = vadd.f32 1.0, %v4998_v27  ;;  %v3417_v27 = vld [vmem:[#allocation5 + $0x58] sm:$0xff] }
0x184f   : > { %5003 = vrcp.f32 %v3146_v49 }
0x1850   : > { %v5000_v25 = vpop.eup %4999  ;;  %5005 = vrcp.f32 %v3145_v59 }
0x1851   : > { %v3148_v34 = vadd.f32 1.0, %v5000_v25  ;;  %v5002_v36 = vpop.eup %5001  ;;  %v4600_v25 = vpack.c.bf16 %v3417_v27, %v3416_v24 }
0x1852   : > { %v3147_v53 = vadd.f32 1.0, %v5002_v36 }
0x1853   : > { %5007 = vrcp.f32 %v3148_v34  ;;  %v3419_v34 = vld [vmem:[#allocation5 + $0x68] sm:$0xff] }
0x1854   : > { %5009 = vrcp.f32 %v3147_v53  ;;  %v4603_v36 = vpack.c.bf16 %v3419_v34, %v3418_v18  ;;  %v3497_v53 = vld [vmem:[#allocation5 + $0x80] sm:$0xff] }
0x1859   : > { %v5004_v51 = vpop.eup %5003 }
0x185a   : > { %v5006_v8 = vpop.eup %5005  ;;  %v3157_v35 = vmul.f32 %v5004_v51, %v6458_v21  ;;  %v3420_v51 = vld [vmem:[#allocation5 + $0x70] sm:$0xff] }
0x185d   : > { %v5008_v1 = vpop.eup %5007 }
0x185e   : > { %v3158_v22 = vmul.f32 %v5008_v1, %v5006_v8  ;;  %v5010_v56 = vpop.eup %5009  ;;  %v3421_v8 = vld [vmem:[#allocation5 + $0x78] sm:$0xff] }
0x185f   : > { %v4606_v1 = vpack.c.bf16 %v3421_v8, %v3420_v51 }
0x1860   : > { %v3159_v63 = vadd.f32 %v3158_v22, %v3157_v35  ;;  %v3498_v35 = vld [vmem:[#allocation5 + $0x88] sm:$0xff] }
0x1861   : > { %v4609_v22 = vpack.c.bf16 %v3498_v35, %v3497_v53 }
0x1862   : > { %5011 = vtanh.f32 %v3159_v63 }
0x186c   : > { %v5012_v55 = vpop.eup %5011 }
0x186d   : > { %v3161_v60 = vmul.f32 %v5012_v55, %v5010_v56  ;;  %v3499_v56 = vld [vmem:[#allocation5 + $0x90] sm:$0xff]  ;;  %v3500_v55 = vld [vmem:[#allocation5 + $0x98] sm:$0xff] }
0x186f   : > { %v3163_v54 = vrot.slane %v3161_v60, 1  ;;  %v3166_v16 = vrot.slane %v3161_v60, 2  ;;  %v3169_v21 = vrot.slane %v3161_v60, 3  ;;  %v3172_v14 = vrot.slane %v3161_v60, 4 }
0x1871   : > { %v3165_v43 = vmax.f32 %v3161_v60, %v3163_v54  ;;  %v4612_v60 = vpack.c.bf16 %v3500_v55, %v3499_v56  ;;  %v3501_v54 = vld [vmem:[#allocation5 + $0xa0] sm:$0xff] }
0x1872   : > { %v4615_v0 = vpack.c.bf16 %v3502_v12, %v3501_v54 }
0x1873   : > { %v3168_v33 = vmax.f32 %v3165_v43, %v3166_v16  ;;  %v3503_v43 = vld [vmem:[#allocation5 + $0xb0] sm:$0xff]  ;;  %v3504_v16 = vld [vmem:[#allocation5 + $0xb8] sm:$0xff] }
0x1875   : > { %v3171_v3 = vmax.f32 %v3168_v33, %v3169_v21  ;;  %v3580_v21 = vld [vmem:[#allocation5 + $0xc0] sm:$0xff] }
0x1876   : > { %v4621_v5 = vpack.c.bf16 %v3581_v4, %v3580_v21 }
0x1877   : > { %v3174_v52 = vmax.f32 %v3171_v3, %v3172_v14  ;;  %v3179_v48 = vrot.slane %v3171_v3, 1  ;;  %v3582_v14 = vld [vmem:[#allocation5 + $0xd0] sm:$0xff] }
0x1879   : > { %v3176_v46 = vrot.slane %v3174_v52, 7 }
0x187b   : > { %v3182_v31 = vsel %vm3181_vm2, %v3168_v33, %v3176_v46  ;;  %v4618_v33 = vpack.c.bf16 %v3504_v16, %v3503_v43 }
0x187c   : > { %v3184_v44 = vsel %vm3183_vm3, %v3182_v31, %v3174_v52  ;;  %v3583_v52 = vld [vmem:[#allocation5 + $0xd8] sm:$0xff] }
0x187d   : > { %v3186_v15 = vsel %vm3185_vm15, %v3184_v44, %v3179_v48  ;;  %v4624_v46 = vpack.c.bf16 %v3583_v52, %v3582_v14  ;;  %v3586_v48 = vld [vmem:[#allocation5 + $0xf0] sm:$0xff]  ;;  %v3587_v31 = vld [vmem:[#allocation5 + $0xf8] sm:$0xff] }
0x187e   : > { %3194 = vrot.lane.b32.xlu1 %v3186_v15, %s5150_s15  ;;  %3187 = vrot.lane.b32.xlu0 %v3186_v15, %s5155_s14  ;;  %v4630_v57 = vpack.c.bf16 %v3587_v31, %v3586_v48  ;;  %s5077_s14 = scalar_lea.vmem %s5076_s24, 32 }
0x187f   : > { %p5079_p13 = scmp.lt.s32.totalorder %s5077_s14, %s5071_s23 }
0x1881   : > { %p5080_p3 = por %p5079_p13, %p5078_p10 }
0x1882   : > { %3202 = vrot.lane.b32.xlu1 %v3186_v15, %s5156_s19  ;;  %3198 = vrot.lane.b32.xlu0 %v3186_v15, %s5148_s17 }
0x1883   : > { %p5081_p7 = pnand %p5080_p3, %p5074_p8 }
0x18f0   : > { %v3195_v26 = vpop.permute.xlu1 %3194  ;;  %v3188_v13 = vpop.permute.xlu0 %3187 }
0x18f1   : > { %v3192_v39 = vsel %vm3189_vm11, %v3188_v13, -1e+30  ;;  %v3196_v23 = vsel %vm6833_vm12, %v3195_v26, -1e+30 }
0x18f2   : > { %v3193_v28 = vmax.f32 %v3186_v15, %v3192_v39 }
0x18f4   : > { %v3203_v9 = vpop.permute.xlu1 %3202  ;;  %v3197_v62 = vmax.f32 %v3193_v28, %v3196_v23  ;;  %v3199_v6 = vpop.permute.xlu0 %3198 }
0x18f5   : > { %v3200_v7 = vsel %vm6834_vm14, %v3199_v6, -1e+30  ;;  %v3207_v11 = vsel %vm3204_vm7, %v3203_v9, -1e+30 }
0x18f6   : > { %v3201_v2 = vmax.f32 %v3197_v62, %v3200_v7 }
0x18f8   : > { %v3208_v58 = vmax.f32 %v3201_v2, %v3207_v11 }
0x18fa   : > { %4350 = vmatmul.mubr.f32.vlgmr.msra.gmra.mrb[68].mxu0 %v3208_v58 }
0x19cd   : > { %v6557_v49 = vpop.f32.mrb[68].mxu0 }
0x19ce   : > { %v4351_v59 = vpop.f32.mrb[69].mxu0  ;;  %4369 = vmatmul.mubr.msk.f32.vlgmr.msra.gmra.mrb[52].mxu1 %vm3338_vm6, %v6557_v49  ;;  %v3422_v63 = vrot.slane %v6557_v49, 1  ;;  %v3505_v3 = vrot.slane %v6557_v49, 2 }
0x19cf   : > { %4598 = vmatpush3.bf16.msra.mxu1 %v4597_v17  ;;  %4387 = vmatprep.mubr.msk.f32.mxu1 %vm5154_vm4, %v6748_v29 }
0x19d0   : > { %4599 = vmatprep.subr.bf16.mxu1 %v5152_v40 }
0x19d3   : > { %4601 = vmatpush3.bf16.msra.mxu1 %v4600_v25 }
0x19d4   : > { %4602 = vmatprep.subr.bf16.mxu1 %v5152_v40 }
0x19d7   : > { %4604 = vmatpush3.bf16.msra.mxu1 %v4603_v36 }
0x19d8   : > { %4605 = vmatprep.subr.bf16.mxu1 %v5152_v40 }
0x19db   : > { %4607 = vmatpush3.bf16.msra.mxu1 %v4606_v1 }
0x19dc   : > { %4608 = vmatprep.subr.bf16.mxu1 %v5152_v40 }
0x19de   : > { %4388 = vmatmul.mubr.msk.f32.vlgmr.msra.gmra.mrb[52].mxu1 %vm3338_vm6, %v3422_v63 }
0x19df   : > { %4610 = vmatpush3.bf16.msra.mxu1 %v4609_v22  ;;  %4406 = vmatprep.mubr.msk.f32.mxu1 %vm5154_vm4, %v6748_v29 }
0x19e0   : > { %4611 = vmatprep.subr.bf16.mxu1 %v5152_v40 }
0x19e3   : > { %4613 = vmatpush3.bf16.msra.mxu1 %v4612_v60 }
0x19e4   : > { %4614 = vmatprep.subr.bf16.mxu1 %v5152_v40 }
0x19e7   : > { %4616 = vmatpush3.bf16.msra.mxu1 %v4615_v0 }
0x19e8   : > { %4617 = vmatprep.subr.bf16.mxu1 %v5152_v40 }
0x19eb   : > { %4619 = vmatpush3.bf16.msra.mxu1 %v4618_v33 }
0x19ec   : > { %4620 = vmatprep.subr.bf16.mxu1 %v5152_v40 }
0x19ee   : > { %4407 = vmatmul.mubr.msk.f32.vlgmr.msra.gmra.mrb[52].mxu1 %vm3338_vm6, %v3505_v3 }
0x19ef   : > { %4622 = vmatpush3.bf16.msra.mxu1 %v4621_v5  ;;  %4425 = vmatprep.mubr.msk.f32.mxu1 %vm5154_vm4, %v6748_v29  ;;  %v3588_v29 = vrot.slane %v6557_v49, 3 }
0x19f0   : > { %4623 = vmatprep.subr.bf16.mxu1 %v5152_v40 }
0x19f3   : > { %4625 = vmatpush3.bf16.msra.mxu1 %v4624_v46 }
0x19f4   : > { %4626 = vmatprep.subr.bf16.mxu1 %v5152_v40 }
0x19f7   : > { %4628 = vmatpush3.bf16.msra.mxu1 %v4627_v30 }
0x19f8   : > { %4629 = vmatprep.subr.bf16.mxu1 %v5152_v40 }
0x19fb   : > { %4631 = vmatpush3.bf16.msra.mxu1 %v4630_v57 }
0x19fe   : > { %4426 = vmatmul.mubr.msk.f32.vlgmr.msra.gmra.mrb[52].mxu1 %vm3338_vm6, %v3588_v29 }
0x1ad1   : > { %v3657_v44 = vpop.f32.mrb[52].mxu1 }
0x1ad2   : > { %v4632_v15 = vadd.f32 %v3657_v44, %v3329_v10  ;;  %v4427_v50 = vpop.f32.mrb[53].mxu1 }
0x1ad4   : > { %3662 = vst [vmem:[%s362_s21] sm:$0x1] %v4632_v15 }
0x1ad5   : > { %5084 = shalt.err (!%p5081_p7)
}
0x1ad6   : > { %s5085_s25 = scalar_lea.hbm %s6592_s26, 16  ;;  %s5089_s15 = scalar_lea.hbm %s6645_s9, 32 }
0x1ad7   : > { %p5086_p9 = scmp.ne.s32.totalorder %s6592_s26, %s5085_s25  ;;  %p5090_p0 = scmp.lt.u32.totalorder %s6592_s26, %s6645_s9 }
0x1ad8   : > { %p5091_p11 = scmp.lt.u32.totalorder %s5089_s15, %s5085_s25  ;;  %p5093_p4 = scmp.lt.u32.totalorder %s5085_s25, %s6592_s26 }
0x1ad9   : > { %p5087_p2 = pnand %p5086_p9, %p5299_p12 }
0x1ada   : > { %p5092_p1 = por %p5091_p11, %p5090_p0 }
0x1adb   : > { %p5088_p5 = pneg %p5087_p2 }
0x1adc   : > { %p5094_p6 = por %p5093_p4, %p5092_p1 }
0x1ade   : > { %p5095_p8 = pnand %p5094_p6, %p5088_p5 }
0x1ae0   : > { %5098 = shalt.err (!%p5095_p8)
}
0x1ae1   : > { %4645 = dma.vmem_to_hbm [thread:$0]  (%p5299_p12), %s6594_s27, 16, %s6592_s26, %s3664_s22  }
0x1ae2 PF: > { %s6835_s18 = sld [smem:[#allocation11_spill]]  ;;  %s3688_s20 = sand.u32 1, %s5129_s30  }
0x1ae3   : > { %p6837_p13 = scmp.ge.s32.totalorder %s5141_s12, 2  ;;  %s3689_s23 = scalar_lea.sflag [#allocation4], %s3688_s20 }
0x1ae8   : > { %p6836_p10 = scmp.ne.s32.totalorder %s6835_s18, 0 }
0x1aea   : > { %p4656_p3 = pnand %p6837_p13, %p6836_p10 }
0x1aec   : > { %5124 = dma.done.wait (!%p4656_p3), %s3689_s23, 16  }
0x1aed   : > { %5126 = vsyncadd (!%p4656_p3), %s3689_s23, 4294967280  ;;  %s6838_s12 = sld [smem:[#allocation12_spill]]  ;;  %s6839_s30 = smov %s5133_s10 }
0x1aee   : > { %s6840_s10 = smov %s5137_s11  ;;  %s6841_s11 = smov %s5295_s28 }
0x1af3   : > { %p23_p7 = scmp.ge.s32.totalorder %s6838_s12, 4  }
0x1af5   :  { %25 = sbr.rel (!%p23_p7) target bundleno = 6 (0x6), region = 108 }
0x1afc   :  { %3693 = vsyncpa [#allocation3], 1 }
0x1afd   :  { %3695 = vsyncpa [#allocation3 + $0x1], 1 }
0x1afe   :  { %3696 = vsyncpa [#allocation6], 1 }
0x1aff   :  { %3697 = vsyncpa [#allocation4], 1 }
0x1b00   :  { %3699 = vsyncpa [#allocation4 + $0x1], 1 }

</bundles_post_ra>
